<compile_context>
chip_gen: v7x
topology: tpu7x:2x2x1
jax: 0.10.0
libtpu: 0.0.40
codegen_flags: <defaults>
</compile_context>

<pallas_src>
import functools

import jax
import jax.numpy as jnp
from jax import lax
from jax.experimental import pallas as pl
from jax.experimental.pallas import tpu as pltpu


def _round_up(x, m):
    return (x + m - 1) // m * m


def _pad2d(a, rows, cols):
    out = jnp.zeros((rows, cols), a.dtype)
    return out.at[: a.shape[0], : a.shape[1]].set(a)


def _build_fused_gru_weights(w_ih, w_hh, b_ih, b_hh, hp):
    """Build the fused, lane-padded GRU weight/bias.

    w_ih, w_hh: (3H, H) PyTorch layout, gate order (r, z, n).
    Returns W_f (2*hp, 4*hp) and b_f (1, 4*hp) such that
      g = [x | h] @ W_f + b_f = [r_pre, z_pre, gx_n, gh_n]   (each hp wide).
    """
    H = w_ih.shape[1]
    w_f = jnp.zeros((2 * hp, 4 * hp), jnp.float32)
    # rows 0:H  -> contribution of x
    w_f = w_f.at[0:H, 0 * hp:0 * hp + H].set(w_ih[0:H].T)          # W_ir
    w_f = w_f.at[0:H, 1 * hp:1 * hp + H].set(w_ih[H:2 * H].T)      # W_iz
    w_f = w_f.at[0:H, 2 * hp:2 * hp + H].set(w_ih[2 * H:3 * H].T)  # W_in
    # rows hp:hp+H -> contribution of h
    w_f = w_f.at[hp:hp + H, 0 * hp:0 * hp + H].set(w_hh[0:H].T)          # W_hr
    w_f = w_f.at[hp:hp + H, 1 * hp:1 * hp + H].set(w_hh[H:2 * H].T)      # W_hz
    w_f = w_f.at[hp:hp + H, 3 * hp:3 * hp + H].set(w_hh[2 * H:3 * H].T)  # W_hn

    b_f = jnp.zeros((1, 4 * hp), jnp.float32)
    b_f = b_f.at[0, 0 * hp:0 * hp + H].set(b_ih[0:H] + b_hh[0:H])           # b_ir + b_hr
    b_f = b_f.at[0, 1 * hp:1 * hp + H].set(b_ih[H:2 * H] + b_hh[H:2 * H])   # b_iz + b_hz
    b_f = b_f.at[0, 2 * hp:2 * hp + H].set(b_ih[2 * H:3 * H])               # b_in
    b_f = b_f.at[0, 3 * hp:3 * hp + H].set(b_hh[2 * H:3 * H])               # b_hn
    return w_f, b_f


def _decoder_kernel(emb_ref,      # (T, Hp)  pre-gathered embedding rows (bf16)
                    h0_ref,       # (1, Hp)  initial hidden (f32)
                    w_gru_ref,    # (2Hp, 4Hp) fused GRU weight (bf16)
                    b_gru_ref,    # (1, 4Hp)   fused GRU bias (f32)
                    w_out_ref,    # (Hp, Op)   output Linear weight, pre-transposed (bf16)
                    b_out_ref,    # (1, Op)    output bias, padded lanes = -1e30 (f32)
                    logp_ref,     # out: (T, Op) log-probs
                    h_out_ref,    # out: (1, Hp) final hidden
                    *, n_layers, h_pad, seq_len):
    # Weights are VMEM-resident for the whole decode; kept in bf16 and fed
    # straight to the MXU (bf16 x bf16 -> f32 accumulate).
    w_gru = w_gru_ref[...]
    b_gru = b_gru_ref[...]
    w_out = w_out_ref[...]
    b_out = b_out_ref[...]          # -1e30 already baked into padded lanes

    def step(t, h):
        x = emb_ref[pl.ds(t, 1), :].astype(jnp.float32)       # (1, Hp)
        for _ in range(n_layers):   # module reuses one GRU n_layers times
            x = jnp.maximum(x, 0.0)                            # F.relu
            xh = jnp.concatenate([x, h], axis=-1).astype(jnp.bfloat16)  # (1, 2Hp)
            g = jnp.dot(xh, w_gru, preferred_element_type=jnp.float32) + b_gru
            r = jax.nn.sigmoid(g[:, 0 * h_pad:1 * h_pad])
            z = jax.nn.sigmoid(g[:, 1 * h_pad:2 * h_pad])
            n = jnp.tanh(g[:, 2 * h_pad:3 * h_pad] + r * g[:, 3 * h_pad:4 * h_pad])
            h = (1.0 - z) * n + z * h                          # f32 carried state
            x = h                                              # GRU output == new hidden

        # Output projection + numerically-stable log-softmax.  Padded vocab
        # lanes carry a -1e30 bias, so exp underflows to 0 with no extra mask.
        logits = jnp.dot(x.astype(jnp.bfloat16), w_out,
                         preferred_element_type=jnp.float32) + b_out       # (1, Op)
        m = jnp.max(logits, axis=-1, keepdims=True)
        s = logits - m
        lse = jnp.log(jnp.sum(jnp.exp(s), axis=-1, keepdims=True))
        logp_ref[pl.ds(t, 1), :] = s - lse
        return h

    h_final = lax.fori_loop(0, seq_len, step, h0_ref[...], unroll=True)
    h_out_ref[...] = h_final                                   # single writeback


def decoder_rnn_decode(tokens, hidden, params, *, n_layers=1,
                       weight_dtype=jnp.bfloat16):
    """Run T sequential DecoderRNN.forward steps (teacher-forced token stream)
    inside ONE pallas_call.  tokens: int32 (T,); hidden: (1, 1, H).
    Returns (log_probs (T, O), final hidden (1, 1, H))."""
    emb = params["embedding"]                 # (O, H)
    O, H = emb.shape
    Hp = _round_up(H, 128)
    Op = _round_up(O, 128)
    T = int(tokens.shape[0])

    # --- weight prep (lane padding, gate fusion, bf16 storage) -------------
    emb_p = _pad2d(emb.astype(jnp.float32), O, Hp).astype(weight_dtype)   # (O, Hp)
    emb_rows = jnp.take(emb_p, tokens.astype(jnp.int32), axis=0)          # (T, Hp)

    w_gru_f, b_gru_f = _build_fused_gru_weights(params["w_ih"], params["w_hh"],
                                                params["b_ih"], params["b_hh"], Hp)
    w_gru_f = w_gru_f.astype(weight_dtype)                                # (2Hp, 4Hp)
    w_out_p = _pad2d(params["w_out"].T.astype(jnp.float32), Hp, Op).astype(weight_dtype)
    # Bake the vocab-padding mask into the bias: padded lanes get -1e30.
    b_out_p = jnp.full((1, Op), -1e30, jnp.float32).at[0, :O].set(params["b_out"])
    h0_p = jnp.zeros((1, Hp), jnp.float32).at[:, :H].set(hidden.reshape(1, H))

    kernel = functools.partial(_decoder_kernel, n_layers=n_layers,
                               h_pad=Hp, seq_len=T)

    vmem = pl.BlockSpec(memory_space=pltpu.MemorySpace.VMEM)   # whole array, VMEM-resident

    logp_p, h_p = pl.pallas_call(
        kernel,
        out_shape=(jax.ShapeDtypeStruct((T, Op), jnp.float32),
                   jax.ShapeDtypeStruct((1, Hp), jnp.float32)),
        in_specs=[vmem] * 6,
        out_specs=(vmem, vmem),
    )(emb_rows, h0_p, w_gru_f, b_gru_f, w_out_p, b_out_p)

    return logp_p[:, :O], h_p[:, :H].reshape(1, 1, H)


def decoder_rnn_forward(token, hidden, params, *, n_layers=1,
                        weight_dtype=jnp.bfloat16):
    """Single-step forward, same signature/semantics as DecoderRNN.forward."""
    return decoder_rnn_decode(token.reshape(1), hidden, params,
                              n_layers=n_layers, weight_dtype=weight_dtype)


def _reference_decode(tokens, hidden, params, *, n_layers=1,
                      weight_dtype=jnp.bfloat16):
    """Pure-JAX reference mirroring the kernel's bf16-operand MXU path."""
    q = lambda w: w.astype(weight_dtype)
    emb = q(params["embedding"])                   # (O, H) bf16
    w_ih_t, w_hh_t = q(params["w_ih"]).T, q(params["w_hh"]).T   # (H, 3H)
    w_out_t = q(params["w_out"]).T                 # (H, O)
    b_ih, b_hh, b_out = params["b_ih"], params["b_hh"], params["b_out"]
    H = emb.shape[1]
    h = hidden.reshape(1, H).astype(jnp.float32)
    outs = []
    for i in range(int(tokens.shape[0])):
        x = emb[tokens[i]].astype(jnp.float32).reshape(1, H)
        for _ in range(n_layers):
            x = jnp.maximum(x, 0.0)
            gx = jnp.dot(x.astype(weight_dtype), w_ih_t,
                         preferred_element_type=jnp.float32) + b_ih
            gh = jnp.dot(h.astype(weight_dtype), w_hh_t,
                         preferred_element_type=jnp.float32) + b_hh
            r = jax.nn.sigmoid(gx[:, :H] + gh[:, :H])
            z = jax.nn.sigmoid(gx[:, H:2 * H] + gh[:, H:2 * H])
            n = jnp.tanh(gx[:, 2 * H:] + r * gh[:, 2 * H:])
            h = (1.0 - z) * n + z * h
            x = h
        logits = jnp.dot(x.astype(weight_dtype), w_out_t,
                         preferred_element_type=jnp.float32) + b_out
        outs.append(jax.nn.log_softmax(logits, axis=-1))
    return jnp.concatenate(outs, axis=0), h.reshape(1, 1, H)


if __name__ == "__main__":
    hidden_size = 32
    output_size = 64
    n_layers = 1
    seq_len = 8

    key = jax.random.PRNGKey(0)
    ks = jax.random.split(key, 8)
    bound = 1.0 / jnp.sqrt(hidden_size)

    params = {
        # nn.Embedding default init: N(0, 1)
        "embedding": jax.random.normal(ks[0], (output_size, hidden_size), jnp.float32),
        # nn.GRU default init: U(-1/sqrt(H), 1/sqrt(H)); gate order (r, z, n)
        "w_ih": jax.random.uniform(ks[1], (3 * hidden_size, hidden_size), jnp.float32, -bound, bound),
        "w_hh": jax.random.uniform(ks[2], (3 * hidden_size, hidden_size), jnp.float32, -bound, bound),
        "b_ih": jax.random.uniform(ks[3], (3 * hidden_size,), jnp.float32, -bound, bound),
        "b_hh": jax.random.uniform(ks[4], (3 * hidden_size,), jnp.float32, -bound, bound),
        # nn.Linear(hidden, output)
        "w_out": jax.random.uniform(ks[5], (output_size, hidden_size), jnp.float32, -bound, bound),
        "b_out": jax.random.uniform(ks[6], (output_size,), jnp.float32, -bound, bound),
    }

    tokens = jax.random.randint(ks[7], (seq_len,), 0, output_size, dtype=jnp.int32)
    hidden0 = jnp.zeros((1, 1, hidden_size), jnp.float32)     # init_hidden()

    # Multi-step decode (T forward steps fused into one kernel launch).
    logp, h_new = decoder_rnn_decode(tokens, hidden0, params, n_layers=n_layers)
    jax.block_until_ready((logp, h_new))
    logp_ref, h_ref = _reference_decode(tokens, hidden0, params, n_layers=n_layers)
    err_lp = float(jnp.max(jnp.abs(logp - logp_ref)))
    err_h = float(jnp.max(jnp.abs(h_new - h_ref)))
    assert err_lp < 1e-2, f"log-softmax mismatch (max abs err {err_lp})"
    assert err_h < 1e-2, f"hidden mismatch (max abs err {err_h})"

    # Single-step forward, matching DecoderRNN.forward exactly.
    logp1, h1 = decoder_rnn_forward(tokens[:1], hidden0, params, n_layers=n_layers)
    jax.block_until_ready((logp1, h1))
    logp1_ref, h1_ref = _reference_decode(tokens[:1], hidden0, params, n_layers=n_layers)
    assert float(jnp.max(jnp.abs(logp1 - logp1_ref))) < 1e-2, "single-step log-softmax mismatch"
    assert float(jnp.max(jnp.abs(h1 - h1_ref))) < 1e-2, "single-step hidden mismatch"

    print("KERNEL_OK")
</pallas_src>

<mosaic_0001>
module attributes {stable_mosaic.version = 11 : i64} {
  func.func @_decoder_kernel(%arg0: memref<8x128xbf16, #tpu.memory_space<vmem>>, %arg1: memref<1x128xf32, #tpu.memory_space<vmem>>, %arg2: memref<256x512xbf16, #tpu.memory_space<vmem>>, %arg3: memref<1x512xf32, #tpu.memory_space<vmem>>, %arg4: memref<128x128xbf16, #tpu.memory_space<vmem>>, %arg5: memref<1x128xf32, #tpu.memory_space<vmem>>, %arg6: memref<8x128xf32, #tpu.memory_space<vmem>>, %arg7: memref<1x128xf32, #tpu.memory_space<vmem>>) attributes {dimension_semantics = [], scalar_prefetch = 0 : i64, scratch_operands = 0 : i64, tpu.core_type = #tpu.core_type<tc>} {
    %c0 = arith.constant 0 : index
    %c0_0 = arith.constant 0 : index
    %0 = vector.load %arg2[%c0, %c0_0] : memref<256x512xbf16, #tpu.memory_space<vmem>>, vector<256x512xbf16>
    %c0_1 = arith.constant 0 : index
    %c0_2 = arith.constant 0 : index
    %1 = vector.load %arg3[%c0_1, %c0_2] : memref<1x512xf32, #tpu.memory_space<vmem>>, vector<1x512xf32>
    %c0_3 = arith.constant 0 : index
    %c0_4 = arith.constant 0 : index
    %2 = vector.load %arg4[%c0_3, %c0_4] : memref<128x128xbf16, #tpu.memory_space<vmem>>, vector<128x128xbf16>
    %c0_5 = arith.constant 0 : index
    %c0_6 = arith.constant 0 : index
    %3 = vector.load %arg5[%c0_5, %c0_6] : memref<1x128xf32, #tpu.memory_space<vmem>>, vector<1x128xf32>
    %c0_7 = arith.constant 0 : index
    %c0_8 = arith.constant 0 : index
    %4 = vector.load %arg1[%c0_7, %c0_8] : memref<1x128xf32, #tpu.memory_space<vmem>>, vector<1x128xf32>
    %c0_i32 = arith.constant 0 : i32
    %5 = arith.index_cast %c0_i32 : i32 to index
    %c0_9 = arith.constant 0 : index
    %6 = vector.load %arg0[%5, %c0_9] : memref<8x128xbf16, #tpu.memory_space<vmem>>, vector<1x128xbf16>
    %7 = arith.extf %6 : vector<1x128xbf16> to vector<1x128xf32>
    %cst = arith.constant 0.000000e+00 : f32
    %8 = vector.broadcast %cst : f32 to vector<1x128xf32>
    %9 = arith.maximumf %7, %8 : vector<1x128xf32>
    %10 = tpu.concatenate %9, %4 in 1 : vector<1x128xf32>, vector<1x128xf32> -> vector<1x256xf32>
    %11 = arith.truncf %10 : vector<1x256xf32> to vector<1x256xbf16>
    %cst_10 = arith.constant dense<0.000000e+00> : vector<1x512xf32>
    %12 = tpu.matmul %11, %0, %cst_10 {dimension_numbers = #tpu.dot_dimension_numbers<[1], [0], [0], [1], [0, 0, 1, 1], [], []>} : vector<1x256xbf16>, vector<256x512xbf16>, vector<1x512xf32> -> vector<1x512xf32>
    %13 = arith.addf %12, %1 : vector<1x512xf32>
    %14 = vector.extract_strided_slice %13 {offsets = [0, 0], sizes = [1, 128], strides = [1, 1]} : vector<1x512xf32> to vector<1x128xf32>
    %15 = arith.negf %14 : vector<1x128xf32>
    %16 = math.exp %15 : vector<1x128xf32>
    %cst_11 = arith.constant 1.000000e+00 : f32
    %17 = vector.broadcast %cst_11 : f32 to vector<1x128xf32>
    %18 = arith.addf %17, %16 : vector<1x128xf32>
    %19 = arith.divf %17, %18 : vector<1x128xf32>
    %20 = vector.extract_strided_slice %13 {offsets = [0, 128], sizes = [1, 128], strides = [1, 1]} : vector<1x512xf32> to vector<1x128xf32>
    %21 = arith.negf %20 : vector<1x128xf32>
    %22 = math.exp %21 : vector<1x128xf32>
    %cst_12 = arith.constant 1.000000e+00 : f32
    %23 = vector.broadcast %cst_12 : f32 to vector<1x128xf32>
    %24 = arith.addf %23, %22 : vector<1x128xf32>
    %25 = arith.divf %23, %24 : vector<1x128xf32>
    %26 = vector.extract_strided_slice %13 {offsets = [0, 256], sizes = [1, 128], strides = [1, 1]} : vector<1x512xf32> to vector<1x128xf32>
    %27 = vector.extract_strided_slice %13 {offsets = [0, 384], sizes = [1, 128], strides = [1, 1]} : vector<1x512xf32> to vector<1x128xf32>
    %28 = arith.mulf %19, %27 : vector<1x128xf32>
    %29 = arith.addf %26, %28 : vector<1x128xf32>
    %30 = math.tanh %29 : vector<1x128xf32>
    %cst_13 = arith.constant 1.000000e+00 : f32
    %31 = vector.broadcast %cst_13 : f32 to vector<1x128xf32>
    %32 = arith.subf %31, %25 : vector<1x128xf32>
    %33 = arith.mulf %32, %30 : vector<1x128xf32>
    %34 = arith.mulf %25, %4 : vector<1x128xf32>
    %35 = arith.addf %33, %34 : vector<1x128xf32>
    %36 = arith.truncf %35 : vector<1x128xf32> to vector<1x128xbf16>
    %cst_14 = arith.constant dense<0.000000e+00> : vector<1x128xf32>
    %37 = tpu.matmul %36, %2, %cst_14 {dimension_numbers = #tpu.dot_dimension_numbers<[1], [0], [0], [1], [0, 0, 1, 1], [], []>} : vector<1x128xbf16>, vector<128x128xbf16>, vector<1x128xf32> -> vector<1x128xf32>
    %38 = arith.addf %37, %3 : vector<1x128xf32>
    %cst_15 = arith.constant dense<0xFF800000> : vector<1xf32>
    %39 = vector.multi_reduction <maximumf>, %38, %cst_15 [1] : vector<1x128xf32> to vector<1xf32>
    %40 = vector.shape_cast %39 : vector<1xf32> to vector<1x1xf32>
    %41 = vector.broadcast %40 : vector<1x1xf32> to vector<1x128xf32>
    %42 = arith.subf %38, %41 : vector<1x128xf32>
    %43 = math.exp %42 : vector<1x128xf32>
    %cst_16 = arith.constant dense<0.000000e+00> : vector<1xf32>
    %44 = vector.multi_reduction <add>, %43, %cst_16 [1] : vector<1x128xf32> to vector<1xf32>
    %45 = vector.shape_cast %44 : vector<1xf32> to vector<1x1xf32>
    %46 = math.log %45 : vector<1x1xf32>
    %47 = vector.broadcast %46 : vector<1x1xf32> to vector<1x128xf32>
    %48 = arith.subf %42, %47 : vector<1x128xf32>
    %49 = arith.index_cast %c0_i32 : i32 to index
    %c0_17 = arith.constant 0 : index
    %50 = vector.load %arg6[%49, %c0_17] : memref<8x128xf32, #tpu.memory_space<vmem>>, vector<1x128xf32>
    tpu.vector_store %arg6[%49, %c0_17], %48 {strides = array<i32>} : memref<8x128xf32, #tpu.memory_space<vmem>>, vector<1x128xf32>,
    %c1_i32 = arith.constant 1 : i32
    %51 = arith.index_cast %c1_i32 : i32 to index
    %c0_18 = arith.constant 0 : index
    %52 = vector.load %arg0[%51, %c0_18] : memref<8x128xbf16, #tpu.memory_space<vmem>>, vector<1x128xbf16>
    %53 = arith.extf %52 : vector<1x128xbf16> to vector<1x128xf32>
    %cst_19 = arith.constant 0.000000e+00 : f32
    %54 = vector.broadcast %cst_19 : f32 to vector<1x128xf32>
    %55 = arith.maximumf %53, %54 : vector<1x128xf32>
    %56 = tpu.concatenate %55, %35 in 1 : vector<1x128xf32>, vector<1x128xf32> -> vector<1x256xf32>
    %57 = arith.truncf %56 : vector<1x256xf32> to vector<1x256xbf16>
    %cst_20 = arith.constant dense<0.000000e+00> : vector<1x512xf32>
    %58 = tpu.matmul %57, %0, %cst_20 {dimension_numbers = #tpu.dot_dimension_numbers<[1], [0], [0], [1], [0, 0, 1, 1], [], []>} : vector<1x256xbf16>, vector<256x512xbf16>, vector<1x512xf32> -> vector<1x512xf32>
    %59 = arith.addf %58, %1 : vector<1x512xf32>
    %60 = vector.extract_strided_slice %59 {offsets = [0, 0], sizes = [1, 128], strides = [1, 1]} : vector<1x512xf32> to vector<1x128xf32>
    %61 = arith.negf %60 : vector<1x128xf32>
    %62 = math.exp %61 : vector<1x128xf32>
    %cst_21 = arith.constant 1.000000e+00 : f32
    %63 = vector.broadcast %cst_21 : f32 to vector<1x128xf32>
    %64 = arith.addf %63, %62 : vector<1x128xf32>
    %65 = arith.divf %63, %64 : vector<1x128xf32>
    %66 = vector.extract_strided_slice %59 {offsets = [0, 128], sizes = [1, 128], strides = [1, 1]} : vector<1x512xf32> to vector<1x128xf32>
    %67 = arith.negf %66 : vector<1x128xf32>
    %68 = math.exp %67 : vector<1x128xf32>
    %cst_22 = arith.constant 1.000000e+00 : f32
    %69 = vector.broadcast %cst_22 : f32 to vector<1x128xf32>
    %70 = arith.addf %69, %68 : vector<1x128xf32>
    %71 = arith.divf %69, %70 : vector<1x128xf32>
    %72 = vector.extract_strided_slice %59 {offsets = [0, 256], sizes = [1, 128], strides = [1, 1]} : vector<1x512xf32> to vector<1x128xf32>
    %73 = vector.extract_strided_slice %59 {offsets = [0, 384], sizes = [1, 128], strides = [1, 1]} : vector<1x512xf32> to vector<1x128xf32>
    %74 = arith.mulf %65, %73 : vector<1x128xf32>
    %75 = arith.addf %72, %74 : vector<1x128xf32>
    %76 = math.tanh %75 : vector<1x128xf32>
    %cst_23 = arith.constant 1.000000e+00 : f32
    %77 = vector.broadcast %cst_23 : f32 to vector<1x128xf32>
    %78 = arith.subf %77, %71 : vector<1x128xf32>
    %79 = arith.mulf %78, %76 : vector<1x128xf32>
    %80 = arith.mulf %71, %35 : vector<1x128xf32>
    %81 = arith.addf %79, %80 : vector<1x128xf32>
    %82 = arith.truncf %81 : vector<1x128xf32> to vector<1x128xbf16>
    %cst_24 = arith.constant dense<0.000000e+00> : vector<1x128xf32>
    %83 = tpu.matmul %82, %2, %cst_24 {dimension_numbers = #tpu.dot_dimension_numbers<[1], [0], [0], [1], [0, 0, 1, 1], [], []>} : vector<1x128xbf16>, vector<128x128xbf16>, vector<1x128xf32> -> vector<1x128xf32>
    %84 = arith.addf %83, %3 : vector<1x128xf32>
    %cst_25 = arith.constant dense<0xFF800000> : vector<1xf32>
    %85 = vector.multi_reduction <maximumf>, %84, %cst_25 [1] : vector<1x128xf32> to vector<1xf32>
    %86 = vector.shape_cast %85 : vector<1xf32> to vector<1x1xf32>
    %87 = vector.broadcast %86 : vector<1x1xf32> to vector<1x128xf32>
    %88 = arith.subf %84, %87 : vector<1x128xf32>
    %89 = math.exp %88 : vector<1x128xf32>
    %cst_26 = arith.constant dense<0.000000e+00> : vector<1xf32>
    %90 = vector.multi_reduction <add>, %89, %cst_26 [1] : vector<1x128xf32> to vector<1xf32>
    %91 = vector.shape_cast %90 : vector<1xf32> to vector<1x1xf32>
    %92 = math.log %91 : vector<1x1xf32>
    %93 = vector.broadcast %92 : vector<1x1xf32> to vector<1x128xf32>
    %94 = arith.subf %88, %93 : vector<1x128xf32>
    %95 = arith.index_cast %c1_i32 : i32 to index
    %c0_27 = arith.constant 0 : index
    %96 = vector.load %arg6[%95, %c0_27] : memref<8x128xf32, #tpu.memory_space<vmem>>, vector<1x128xf32>
    tpu.vector_store %arg6[%95, %c0_27], %94 {strides = array<i32>} : memref<8x128xf32, #tpu.memory_space<vmem>>, vector<1x128xf32>,
    %c2_i32 = arith.constant 2 : i32
    %97 = arith.index_cast %c2_i32 : i32 to index
    %c0_28 = arith.constant 0 : index
    %98 = vector.load %arg0[%97, %c0_28] : memref<8x128xbf16, #tpu.memory_space<vmem>>, vector<1x128xbf16>
    %99 = arith.extf %98 : vector<1x128xbf16> to vector<1x128xf32>
    %cst_29 = arith.constant 0.000000e+00 : f32
    %100 = vector.broadcast %cst_29 : f32 to vector<1x128xf32>
    %101 = arith.maximumf %99, %100 : vector<1x128xf32>
    %102 = tpu.concatenate %101, %81 in 1 : vector<1x128xf32>, vector<1x128xf32> -> vector<1x256xf32>
    %103 = arith.truncf %102 : vector<1x256xf32> to vector<1x256xbf16>
    %cst_30 = arith.constant dense<0.000000e+00> : vector<1x512xf32>
    %104 = tpu.matmul %103, %0, %cst_30 {dimension_numbers = #tpu.dot_dimension_numbers<[1], [0], [0], [1], [0, 0, 1, 1], [], []>} : vector<1x256xbf16>, vector<256x512xbf16>, vector<1x512xf32> -> vector<1x512xf32>
    %105 = arith.addf %104, %1 : vector<1x512xf32>
    %106 = vector.extract_strided_slice %105 {offsets = [0, 0], sizes = [1, 128], strides = [1, 1]} : vector<1x512xf32> to vector<1x128xf32>
    %107 = arith.negf %106 : vector<1x128xf32>
    %108 = math.exp %107 : vector<1x128xf32>
    %cst_31 = arith.constant 1.000000e+00 : f32
    %109 = vector.broadcast %cst_31 : f32 to vector<1x128xf32>
    %110 = arith.addf %109, %108 : vector<1x128xf32>
    %111 = arith.divf %109, %110 : vector<1x128xf32>
    %112 = vector.extract_strided_slice %105 {offsets = [0, 128], sizes = [1, 128], strides = [1, 1]} : vector<1x512xf32> to vector<1x128xf32>
    %113 = arith.negf %112 : vector<1x128xf32>
    %114 = math.exp %113 : vector<1x128xf32>
    %cst_32 = arith.constant 1.000000e+00 : f32
    %115 = vector.broadcast %cst_32 : f32 to vector<1x128xf32>
    %116 = arith.addf %115, %114 : vector<1x128xf32>
    %117 = arith.divf %115, %116 : vector<1x128xf32>
    %118 = vector.extract_strided_slice %105 {offsets = [0, 256], sizes = [1, 128], strides = [1, 1]} : vector<1x512xf32> to vector<1x128xf32>
    %119 = vector.extract_strided_slice %105 {offsets = [0, 384], sizes = [1, 128], strides = [1, 1]} : vector<1x512xf32> to vector<1x128xf32>
    %120 = arith.mulf %111, %119 : vector<1x128xf32>
    %121 = arith.addf %118, %120 : vector<1x128xf32>
    %122 = math.tanh %121 : vector<1x128xf32>
    %cst_33 = arith.constant 1.000000e+00 : f32
    %123 = vector.broadcast %cst_33 : f32 to vector<1x128xf32>
    %124 = arith.subf %123, %117 : vector<1x128xf32>
    %125 = arith.mulf %124, %122 : vector<1x128xf32>
    %126 = arith.mulf %117, %81 : vector<1x128xf32>
    %127 = arith.addf %125, %126 : vector<1x128xf32>
    %128 = arith.truncf %127 : vector<1x128xf32> to vector<1x128xbf16>
    %cst_34 = arith.constant dense<0.000000e+00> : vector<1x128xf32>
    %129 = tpu.matmul %128, %2, %cst_34 {dimension_numbers = #tpu.dot_dimension_numbers<[1], [0], [0], [1], [0, 0, 1, 1], [], []>} : vector<1x128xbf16>, vector<128x128xbf16>, vector<1x128xf32> -> vector<1x128xf32>
    %130 = arith.addf %129, %3 : vector<1x128xf32>
    %cst_35 = arith.constant dense<0xFF800000> : vector<1xf32>
    %131 = vector.multi_reduction <maximumf>, %130, %cst_35 [1] : vector<1x128xf32> to vector<1xf32>
    %132 = vector.shape_cast %131 : vector<1xf32> to vector<1x1xf32>
    %133 = vector.broadcast %132 : vector<1x1xf32> to vector<1x128xf32>
    %134 = arith.subf %130, %133 : vector<1x128xf32>
    %135 = math.exp %134 : vector<1x128xf32>
    %cst_36 = arith.constant dense<0.000000e+00> : vector<1xf32>
    %136 = vector.multi_reduction <add>, %135, %cst_36 [1] : vector<1x128xf32> to vector<1xf32>
    %137 = vector.shape_cast %136 : vector<1xf32> to vector<1x1xf32>
    %138 = math.log %137 : vector<1x1xf32>
    %139 = vector.broadcast %138 : vector<1x1xf32> to vector<1x128xf32>
    %140 = arith.subf %134, %139 : vector<1x128xf32>
    %141 = arith.index_cast %c2_i32 : i32 to index
    %c0_37 = arith.constant 0 : index
    %142 = vector.load %arg6[%141, %c0_37] : memref<8x128xf32, #tpu.memory_space<vmem>>, vector<1x128xf32>
    tpu.vector_store %arg6[%141, %c0_37], %140 {strides = array<i32>} : memref<8x128xf32, #tpu.memory_space<vmem>>, vector<1x128xf32>,
    %c3_i32 = arith.constant 3 : i32
    %143 = arith.index_cast %c3_i32 : i32 to index
    %c0_38 = arith.constant 0 : index
    %144 = vector.load %arg0[%143, %c0_38] : memref<8x128xbf16, #tpu.memory_space<vmem>>, vector<1x128xbf16>
    %145 = arith.extf %144 : vector<1x128xbf16> to vector<1x128xf32>
    %cst_39 = arith.constant 0.000000e+00 : f32
    %146 = vector.broadcast %cst_39 : f32 to vector<1x128xf32>
    %147 = arith.maximumf %145, %146 : vector<1x128xf32>
    %148 = tpu.concatenate %147, %127 in 1 : vector<1x128xf32>, vector<1x128xf32> -> vector<1x256xf32>
    %149 = arith.truncf %148 : vector<1x256xf32> to vector<1x256xbf16>
    %cst_40 = arith.constant dense<0.000000e+00> : vector<1x512xf32>
    %150 = tpu.matmul %149, %0, %cst_40 {dimension_numbers = #tpu.dot_dimension_numbers<[1], [0], [0], [1], [0, 0, 1, 1], [], []>} : vector<1x256xbf16>, vector<256x512xbf16>, vector<1x512xf32> -> vector<1x512xf32>
    %151 = arith.addf %150, %1 : vector<1x512xf32>
    %152 = vector.extract_strided_slice %151 {offsets = [0, 0], sizes = [1, 128], strides = [1, 1]} : vector<1x512xf32> to vector<1x128xf32>
    %153 = arith.negf %152 : vector<1x128xf32>
    %154 = math.exp %153 : vector<1x128xf32>
    %cst_41 = arith.constant 1.000000e+00 : f32
    %155 = vector.broadcast %cst_41 : f32 to vector<1x128xf32>
    %156 = arith.addf %155, %154 : vector<1x128xf32>
    %157 = arith.divf %155, %156 : vector<1x128xf32>
    %158 = vector.extract_strided_slice %151 {offsets = [0, 128], sizes = [1, 128], strides = [1, 1]} : vector<1x512xf32> to vector<1x128xf32>
    %159 = arith.negf %158 : vector<1x128xf32>
    %160 = math.exp %159 : vector<1x128xf32>
    %cst_42 = arith.constant 1.000000e+00 : f32
    %161 = vector.broadcast %cst_42 : f32 to vector<1x128xf32>
    %162 = arith.addf %161, %160 : vector<1x128xf32>
    %163 = arith.divf %161, %162 : vector<1x128xf32>
    %164 = vector.extract_strided_slice %151 {offsets = [0, 256], sizes = [1, 128], strides = [1, 1]} : vector<1x512xf32> to vector<1x128xf32>
    %165 = vector.extract_strided_slice %151 {offsets = [0, 384], sizes = [1, 128], strides = [1, 1]} : vector<1x512xf32> to vector<1x128xf32>
    %166 = arith.mulf %157, %165 : vector<1x128xf32>
    %167 = arith.addf %164, %166 : vector<1x128xf32>
    %168 = math.tanh %167 : vector<1x128xf32>
    %cst_43 = arith.constant 1.000000e+00 : f32
    %169 = vector.broadcast %cst_43 : f32 to vector<1x128xf32>
    %170 = arith.subf %169, %163 : vector<1x128xf32>
    %171 = arith.mulf %170, %168 : vector<1x128xf32>
    %172 = arith.mulf %163, %127 : vector<1x128xf32>
    %173 = arith.addf %171, %172 : vector<1x128xf32>
    %174 = arith.truncf %173 : vector<1x128xf32> to vector<1x128xbf16>
    %cst_44 = arith.constant dense<0.000000e+00> : vector<1x128xf32>
    %175 = tpu.matmul %174, %2, %cst_44 {dimension_numbers = #tpu.dot_dimension_numbers<[1], [0], [0], [1], [0, 0, 1, 1], [], []>} : vector<1x128xbf16>, vector<128x128xbf16>, vector<1x128xf32> -> vector<1x128xf32>
    %176 = arith.addf %175, %3 : vector<1x128xf32>
    %cst_45 = arith.constant dense<0xFF800000> : vector<1xf32>
    %177 = vector.multi_reduction <maximumf>, %176, %cst_45 [1] : vector<1x128xf32> to vector<1xf32>
    %178 = vector.shape_cast %177 : vector<1xf32> to vector<1x1xf32>
    %179 = vector.broadcast %178 : vector<1x1xf32> to vector<1x128xf32>
    %180 = arith.subf %176, %179 : vector<1x128xf32>
    %181 = math.exp %180 : vector<1x128xf32>
    %cst_46 = arith.constant dense<0.000000e+00> : vector<1xf32>
    %182 = vector.multi_reduction <add>, %181, %cst_46 [1] : vector<1x128xf32> to vector<1xf32>
    %183 = vector.shape_cast %182 : vector<1xf32> to vector<1x1xf32>
    %184 = math.log %183 : vector<1x1xf32>
    %185 = vector.broadcast %184 : vector<1x1xf32> to vector<1x128xf32>
    %186 = arith.subf %180, %185 : vector<1x128xf32>
    %187 = arith.index_cast %c3_i32 : i32 to index
    %c0_47 = arith.constant 0 : index
    %188 = vector.load %arg6[%187, %c0_47] : memref<8x128xf32, #tpu.memory_space<vmem>>, vector<1x128xf32>
    tpu.vector_store %arg6[%187, %c0_47], %186 {strides = array<i32>} : memref<8x128xf32, #tpu.memory_space<vmem>>, vector<1x128xf32>,
    %c4_i32 = arith.constant 4 : i32
    %189 = arith.index_cast %c4_i32 : i32 to index
    %c0_48 = arith.constant 0 : index
    %190 = vector.load %arg0[%189, %c0_48] : memref<8x128xbf16, #tpu.memory_space<vmem>>, vector<1x128xbf16>
    %191 = arith.extf %190 : vector<1x128xbf16> to vector<1x128xf32>
    %cst_49 = arith.constant 0.000000e+00 : f32
    %192 = vector.broadcast %cst_49 : f32 to vector<1x128xf32>
    %193 = arith.maximumf %191, %192 : vector<1x128xf32>
    %194 = tpu.concatenate %193, %173 in 1 : vector<1x128xf32>, vector<1x128xf32> -> vector<1x256xf32>
    %195 = arith.truncf %194 : vector<1x256xf32> to vector<1x256xbf16>
    %cst_50 = arith.constant dense<0.000000e+00> : vector<1x512xf32>
    %196 = tpu.matmul %195, %0, %cst_50 {dimension_numbers = #tpu.dot_dimension_numbers<[1], [0], [0], [1], [0, 0, 1, 1], [], []>} : vector<1x256xbf16>, vector<256x512xbf16>, vector<1x512xf32> -> vector<1x512xf32>
    %197 = arith.addf %196, %1 : vector<1x512xf32>
    %198 = vector.extract_strided_slice %197 {offsets = [0, 0], sizes = [1, 128], strides = [1, 1]} : vector<1x512xf32> to vector<1x128xf32>
    %199 = arith.negf %198 : vector<1x128xf32>
    %200 = math.exp %199 : vector<1x128xf32>
    %cst_51 = arith.constant 1.000000e+00 : f32
    %201 = vector.broadcast %cst_51 : f32 to vector<1x128xf32>
    %202 = arith.addf %201, %200 : vector<1x128xf32>
    %203 = arith.divf %201, %202 : vector<1x128xf32>
    %204 = vector.extract_strided_slice %197 {offsets = [0, 128], sizes = [1, 128], strides = [1, 1]} : vector<1x512xf32> to vector<1x128xf32>
    %205 = arith.negf %204 : vector<1x128xf32>
    %206 = math.exp %205 : vector<1x128xf32>
    %cst_52 = arith.constant 1.000000e+00 : f32
    %207 = vector.broadcast %cst_52 : f32 to vector<1x128xf32>
    %208 = arith.addf %207, %206 : vector<1x128xf32>
    %209 = arith.divf %207, %208 : vector<1x128xf32>
    %210 = vector.extract_strided_slice %197 {offsets = [0, 256], sizes = [1, 128], strides = [1, 1]} : vector<1x512xf32> to vector<1x128xf32>
    %211 = vector.extract_strided_slice %197 {offsets = [0, 384], sizes = [1, 128], strides = [1, 1]} : vector<1x512xf32> to vector<1x128xf32>
    %212 = arith.mulf %203, %211 : vector<1x128xf32>
    %213 = arith.addf %210, %212 : vector<1x128xf32>
    %214 = math.tanh %213 : vector<1x128xf32>
    %cst_53 = arith.constant 1.000000e+00 : f32
    %215 = vector.broadcast %cst_53 : f32 to vector<1x128xf32>
    %216 = arith.subf %215, %209 : vector<1x128xf32>
    %217 = arith.mulf %216, %214 : vector<1x128xf32>
    %218 = arith.mulf %209, %173 : vector<1x128xf32>
    %219 = arith.addf %217, %218 : vector<1x128xf32>
    %220 = arith.truncf %219 : vector<1x128xf32> to vector<1x128xbf16>
    %cst_54 = arith.constant dense<0.000000e+00> : vector<1x128xf32>
    %221 = tpu.matmul %220, %2, %cst_54 {dimension_numbers = #tpu.dot_dimension_numbers<[1], [0], [0], [1], [0, 0, 1, 1], [], []>} : vector<1x128xbf16>, vector<128x128xbf16>, vector<1x128xf32> -> vector<1x128xf32>
    %222 = arith.addf %221, %3 : vector<1x128xf32>
    %cst_55 = arith.constant dense<0xFF800000> : vector<1xf32>
    %223 = vector.multi_reduction <maximumf>, %222, %cst_55 [1] : vector<1x128xf32> to vector<1xf32>
    %224 = vector.shape_cast %223 : vector<1xf32> to vector<1x1xf32>
    %225 = vector.broadcast %224 : vector<1x1xf32> to vector<1x128xf32>
    %226 = arith.subf %222, %225 : vector<1x128xf32>
    %227 = math.exp %226 : vector<1x128xf32>
    %cst_56 = arith.constant dense<0.000000e+00> : vector<1xf32>
    %228 = vector.multi_reduction <add>, %227, %cst_56 [1] : vector<1x128xf32> to vector<1xf32>
    %229 = vector.shape_cast %228 : vector<1xf32> to vector<1x1xf32>
    %230 = math.log %229 : vector<1x1xf32>
    %231 = vector.broadcast %230 : vector<1x1xf32> to vector<1x128xf32>
    %232 = arith.subf %226, %231 : vector<1x128xf32>
    %233 = arith.index_cast %c4_i32 : i32 to index
    %c0_57 = arith.constant 0 : index
    %234 = vector.load %arg6[%233, %c0_57] : memref<8x128xf32, #tpu.memory_space<vmem>>, vector<1x128xf32>
    tpu.vector_store %arg6[%233, %c0_57], %232 {strides = array<i32>} : memref<8x128xf32, #tpu.memory_space<vmem>>, vector<1x128xf32>,
    %c5_i32 = arith.constant 5 : i32
    %235 = arith.index_cast %c5_i32 : i32 to index
    %c0_58 = arith.constant 0 : index
    %236 = vector.load %arg0[%235, %c0_58] : memref<8x128xbf16, #tpu.memory_space<vmem>>, vector<1x128xbf16>
    %237 = arith.extf %236 : vector<1x128xbf16> to vector<1x128xf32>
    %cst_59 = arith.constant 0.000000e+00 : f32
    %238 = vector.broadcast %cst_59 : f32 to vector<1x128xf32>
    %239 = arith.maximumf %237, %238 : vector<1x128xf32>
    %240 = tpu.concatenate %239, %219 in 1 : vector<1x128xf32>, vector<1x128xf32> -> vector<1x256xf32>
    %241 = arith.truncf %240 : vector<1x256xf32> to vector<1x256xbf16>
    %cst_60 = arith.constant dense<0.000000e+00> : vector<1x512xf32>
    %242 = tpu.matmul %241, %0, %cst_60 {dimension_numbers = #tpu.dot_dimension_numbers<[1], [0], [0], [1], [0, 0, 1, 1], [], []>} : vector<1x256xbf16>, vector<256x512xbf16>, vector<1x512xf32> -> vector<1x512xf32>
    %243 = arith.addf %242, %1 : vector<1x512xf32>
    %244 = vector.extract_strided_slice %243 {offsets = [0, 0], sizes = [1, 128], strides = [1, 1]} : vector<1x512xf32> to vector<1x128xf32>
    %245 = arith.negf %244 : vector<1x128xf32>
    %246 = math.exp %245 : vector<1x128xf32>
    %cst_61 = arith.constant 1.000000e+00 : f32
    %247 = vector.broadcast %cst_61 : f32 to vector<1x128xf32>
    %248 = arith.addf %247, %246 : vector<1x128xf32>
    %249 = arith.divf %247, %248 : vector<1x128xf32>
    %250 = vector.extract_strided_slice %243 {offsets = [0, 128], sizes = [1, 128], strides = [1, 1]} : vector<1x512xf32> to vector<1x128xf32>
    %251 = arith.negf %250 : vector<1x128xf32>
    %252 = math.exp %251 : vector<1x128xf32>
    %cst_62 = arith.constant 1.000000e+00 : f32
    %253 = vector.broadcast %cst_62 : f32 to vector<1x128xf32>
    %254 = arith.addf %253, %252 : vector<1x128xf32>
    %255 = arith.divf %253, %254 : vector<1x128xf32>
    %256 = vector.extract_strided_slice %243 {offsets = [0, 256], sizes = [1, 128], strides = [1, 1]} : vector<1x512xf32> to vector<1x128xf32>
    %257 = vector.extract_strided_slice %243 {offsets = [0, 384], sizes = [1, 128], strides = [1, 1]} : vector<1x512xf32> to vector<1x128xf32>
    %258 = arith.mulf %249, %257 : vector<1x128xf32>
    %259 = arith.addf %256, %258 : vector<1x128xf32>
    %260 = math.tanh %259 : vector<1x128xf32>
    %cst_63 = arith.constant 1.000000e+00 : f32
    %261 = vector.broadcast %cst_63 : f32 to vector<1x128xf32>
    %262 = arith.subf %261, %255 : vector<1x128xf32>
    %263 = arith.mulf %262, %260 : vector<1x128xf32>
    %264 = arith.mulf %255, %219 : vector<1x128xf32>
    %265 = arith.addf %263, %264 : vector<1x128xf32>
    %266 = arith.truncf %265 : vector<1x128xf32> to vector<1x128xbf16>
    %cst_64 = arith.constant dense<0.000000e+00> : vector<1x128xf32>
    %267 = tpu.matmul %266, %2, %cst_64 {dimension_numbers = #tpu.dot_dimension_numbers<[1], [0], [0], [1], [0, 0, 1, 1], [], []>} : vector<1x128xbf16>, vector<128x128xbf16>, vector<1x128xf32> -> vector<1x128xf32>
    %268 = arith.addf %267, %3 : vector<1x128xf32>
    %cst_65 = arith.constant dense<0xFF800000> : vector<1xf32>
    %269 = vector.multi_reduction <maximumf>, %268, %cst_65 [1] : vector<1x128xf32> to vector<1xf32>
    %270 = vector.shape_cast %269 : vector<1xf32> to vector<1x1xf32>
    %271 = vector.broadcast %270 : vector<1x1xf32> to vector<1x128xf32>
    %272 = arith.subf %268, %271 : vector<1x128xf32>
    %273 = math.exp %272 : vector<1x128xf32>
    %cst_66 = arith.constant dense<0.000000e+00> : vector<1xf32>
    %274 = vector.multi_reduction <add>, %273, %cst_66 [1] : vector<1x128xf32> to vector<1xf32>
    %275 = vector.shape_cast %274 : vector<1xf32> to vector<1x1xf32>
    %276 = math.log %275 : vector<1x1xf32>
    %277 = vector.broadcast %276 : vector<1x1xf32> to vector<1x128xf32>
    %278 = arith.subf %272, %277 : vector<1x128xf32>
    %279 = arith.index_cast %c5_i32 : i32 to index
    %c0_67 = arith.constant 0 : index
    %280 = vector.load %arg6[%279, %c0_67] : memref<8x128xf32, #tpu.memory_space<vmem>>, vector<1x128xf32>
    tpu.vector_store %arg6[%279, %c0_67], %278 {strides = array<i32>} : memref<8x128xf32, #tpu.memory_space<vmem>>, vector<1x128xf32>,
    %c6_i32 = arith.constant 6 : i32
    %281 = arith.index_cast %c6_i32 : i32 to index
    %c0_68 = arith.constant 0 : index
    %282 = vector.load %arg0[%281, %c0_68] : memref<8x128xbf16, #tpu.memory_space<vmem>>, vector<1x128xbf16>
    %283 = arith.extf %282 : vector<1x128xbf16> to vector<1x128xf32>
    %cst_69 = arith.constant 0.000000e+00 : f32
    %284 = vector.broadcast %cst_69 : f32 to vector<1x128xf32>
    %285 = arith.maximumf %283, %284 : vector<1x128xf32>
    %286 = tpu.concatenate %285, %265 in 1 : vector<1x128xf32>, vector<1x128xf32> -> vector<1x256xf32>
    %287 = arith.truncf %286 : vector<1x256xf32> to vector<1x256xbf16>
    %cst_70 = arith.constant dense<0.000000e+00> : vector<1x512xf32>
    %288 = tpu.matmul %287, %0, %cst_70 {dimension_numbers = #tpu.dot_dimension_numbers<[1], [0], [0], [1], [0, 0, 1, 1], [], []>} : vector<1x256xbf16>, vector<256x512xbf16>, vector<1x512xf32> -> vector<1x512xf32>
    %289 = arith.addf %288, %1 : vector<1x512xf32>
    %290 = vector.extract_strided_slice %289 {offsets = [0, 0], sizes = [1, 128], strides = [1, 1]} : vector<1x512xf32> to vector<1x128xf32>
    %291 = arith.negf %290 : vector<1x128xf32>
    %292 = math.exp %291 : vector<1x128xf32>
    %cst_71 = arith.constant 1.000000e+00 : f32
    %293 = vector.broadcast %cst_71 : f32 to vector<1x128xf32>
    %294 = arith.addf %293, %292 : vector<1x128xf32>
    %295 = arith.divf %293, %294 : vector<1x128xf32>
    %296 = vector.extract_strided_slice %289 {offsets = [0, 128], sizes = [1, 128], strides = [1, 1]} : vector<1x512xf32> to vector<1x128xf32>
    %297 = arith.negf %296 : vector<1x128xf32>
    %298 = math.exp %297 : vector<1x128xf32>
    %cst_72 = arith.constant 1.000000e+00 : f32
    %299 = vector.broadcast %cst_72 : f32 to vector<1x128xf32>
    %300 = arith.addf %299, %298 : vector<1x128xf32>
    %301 = arith.divf %299, %300 : vector<1x128xf32>
    %302 = vector.extract_strided_slice %289 {offsets = [0, 256], sizes = [1, 128], strides = [1, 1]} : vector<1x512xf32> to vector<1x128xf32>
    %303 = vector.extract_strided_slice %289 {offsets = [0, 384], sizes = [1, 128], strides = [1, 1]} : vector<1x512xf32> to vector<1x128xf32>
    %304 = arith.mulf %295, %303 : vector<1x128xf32>
    %305 = arith.addf %302, %304 : vector<1x128xf32>
    %306 = math.tanh %305 : vector<1x128xf32>
    %cst_73 = arith.constant 1.000000e+00 : f32
    %307 = vector.broadcast %cst_73 : f32 to vector<1x128xf32>
    %308 = arith.subf %307, %301 : vector<1x128xf32>
    %309 = arith.mulf %308, %306 : vector<1x128xf32>
    %310 = arith.mulf %301, %265 : vector<1x128xf32>
    %311 = arith.addf %309, %310 : vector<1x128xf32>
    %312 = arith.truncf %311 : vector<1x128xf32> to vector<1x128xbf16>
    %cst_74 = arith.constant dense<0.000000e+00> : vector<1x128xf32>
    %313 = tpu.matmul %312, %2, %cst_74 {dimension_numbers = #tpu.dot_dimension_numbers<[1], [0], [0], [1], [0, 0, 1, 1], [], []>} : vector<1x128xbf16>, vector<128x128xbf16>, vector<1x128xf32> -> vector<1x128xf32>
    %314 = arith.addf %313, %3 : vector<1x128xf32>
    %cst_75 = arith.constant dense<0xFF800000> : vector<1xf32>
    %315 = vector.multi_reduction <maximumf>, %314, %cst_75 [1] : vector<1x128xf32> to vector<1xf32>
    %316 = vector.shape_cast %315 : vector<1xf32> to vector<1x1xf32>
    %317 = vector.broadcast %316 : vector<1x1xf32> to vector<1x128xf32>
    %318 = arith.subf %314, %317 : vector<1x128xf32>
    %319 = math.exp %318 : vector<1x128xf32>
    %cst_76 = arith.constant dense<0.000000e+00> : vector<1xf32>
    %320 = vector.multi_reduction <add>, %319, %cst_76 [1] : vector<1x128xf32> to vector<1xf32>
    %321 = vector.shape_cast %320 : vector<1xf32> to vector<1x1xf32>
    %322 = math.log %321 : vector<1x1xf32>
    %323 = vector.broadcast %322 : vector<1x1xf32> to vector<1x128xf32>
    %324 = arith.subf %318, %323 : vector<1x128xf32>
    %325 = arith.index_cast %c6_i32 : i32 to index
    %c0_77 = arith.constant 0 : index
    %326 = vector.load %arg6[%325, %c0_77] : memref<8x128xf32, #tpu.memory_space<vmem>>, vector<1x128xf32>
    tpu.vector_store %arg6[%325, %c0_77], %324 {strides = array<i32>} : memref<8x128xf32, #tpu.memory_space<vmem>>, vector<1x128xf32>,
    %c7_i32 = arith.constant 7 : i32
    %327 = arith.index_cast %c7_i32 : i32 to index
    %c0_78 = arith.constant 0 : index
    %328 = vector.load %arg0[%327, %c0_78] : memref<8x128xbf16, #tpu.memory_space<vmem>>, vector<1x128xbf16>
    %329 = arith.extf %328 : vector<1x128xbf16> to vector<1x128xf32>
    %cst_79 = arith.constant 0.000000e+00 : f32
    %330 = vector.broadcast %cst_79 : f32 to vector<1x128xf32>
    %331 = arith.maximumf %329, %330 : vector<1x128xf32>
    %332 = tpu.concatenate %331, %311 in 1 : vector<1x128xf32>, vector<1x128xf32> -> vector<1x256xf32>
    %333 = arith.truncf %332 : vector<1x256xf32> to vector<1x256xbf16>
    %cst_80 = arith.constant dense<0.000000e+00> : vector<1x512xf32>
    %334 = tpu.matmul %333, %0, %cst_80 {dimension_numbers = #tpu.dot_dimension_numbers<[1], [0], [0], [1], [0, 0, 1, 1], [], []>} : vector<1x256xbf16>, vector<256x512xbf16>, vector<1x512xf32> -> vector<1x512xf32>
    %335 = arith.addf %334, %1 : vector<1x512xf32>
    %336 = vector.extract_strided_slice %335 {offsets = [0, 0], sizes = [1, 128], strides = [1, 1]} : vector<1x512xf32> to vector<1x128xf32>
    %337 = arith.negf %336 : vector<1x128xf32>
    %338 = math.exp %337 : vector<1x128xf32>
    %cst_81 = arith.constant 1.000000e+00 : f32
    %339 = vector.broadcast %cst_81 : f32 to vector<1x128xf32>
    %340 = arith.addf %339, %338 : vector<1x128xf32>
    %341 = arith.divf %339, %340 : vector<1x128xf32>
    %342 = vector.extract_strided_slice %335 {offsets = [0, 128], sizes = [1, 128], strides = [1, 1]} : vector<1x512xf32> to vector<1x128xf32>
    %343 = arith.negf %342 : vector<1x128xf32>
    %344 = math.exp %343 : vector<1x128xf32>
    %cst_82 = arith.constant 1.000000e+00 : f32
    %345 = vector.broadcast %cst_82 : f32 to vector<1x128xf32>
    %346 = arith.addf %345, %344 : vector<1x128xf32>
    %347 = arith.divf %345, %346 : vector<1x128xf32>
    %348 = vector.extract_strided_slice %335 {offsets = [0, 256], sizes = [1, 128], strides = [1, 1]} : vector<1x512xf32> to vector<1x128xf32>
    %349 = vector.extract_strided_slice %335 {offsets = [0, 384], sizes = [1, 128], strides = [1, 1]} : vector<1x512xf32> to vector<1x128xf32>
    %350 = arith.mulf %341, %349 : vector<1x128xf32>
    %351 = arith.addf %348, %350 : vector<1x128xf32>
    %352 = math.tanh %351 : vector<1x128xf32>
    %cst_83 = arith.constant 1.000000e+00 : f32
    %353 = vector.broadcast %cst_83 : f32 to vector<1x128xf32>
    %354 = arith.subf %353, %347 : vector<1x128xf32>
    %355 = arith.mulf %354, %352 : vector<1x128xf32>
    %356 = arith.mulf %347, %311 : vector<1x128xf32>
    %357 = arith.addf %355, %356 : vector<1x128xf32>
    %358 = arith.truncf %357 : vector<1x128xf32> to vector<1x128xbf16>
    %cst_84 = arith.constant dense<0.000000e+00> : vector<1x128xf32>
    %359 = tpu.matmul %358, %2, %cst_84 {dimension_numbers = #tpu.dot_dimension_numbers<[1], [0], [0], [1], [0, 0, 1, 1], [], []>} : vector<1x128xbf16>, vector<128x128xbf16>, vector<1x128xf32> -> vector<1x128xf32>
    %360 = arith.addf %359, %3 : vector<1x128xf32>
    %cst_85 = arith.constant dense<0xFF800000> : vector<1xf32>
    %361 = vector.multi_reduction <maximumf>, %360, %cst_85 [1] : vector<1x128xf32> to vector<1xf32>
    %362 = vector.shape_cast %361 : vector<1xf32> to vector<1x1xf32>
    %363 = vector.broadcast %362 : vector<1x1xf32> to vector<1x128xf32>
    %364 = arith.subf %360, %363 : vector<1x128xf32>
    %365 = math.exp %364 : vector<1x128xf32>
    %cst_86 = arith.constant dense<0.000000e+00> : vector<1xf32>
    %366 = vector.multi_reduction <add>, %365, %cst_86 [1] : vector<1x128xf32> to vector<1xf32>
    %367 = vector.shape_cast %366 : vector<1xf32> to vector<1x1xf32>
    %368 = math.log %367 : vector<1x1xf32>
    %369 = vector.broadcast %368 : vector<1x1xf32> to vector<1x128xf32>
    %370 = arith.subf %364, %369 : vector<1x128xf32>
    %371 = arith.index_cast %c7_i32 : i32 to index
    %c0_87 = arith.constant 0 : index
    %372 = vector.load %arg6[%371, %c0_87] : memref<8x128xf32, #tpu.memory_space<vmem>>, vector<1x128xf32>
    tpu.vector_store %arg6[%371, %c0_87], %370 {strides = array<i32>} : memref<8x128xf32, #tpu.memory_space<vmem>>, vector<1x128xf32>,
    %c8_i32 = arith.constant 8 : i32
    %c0_88 = arith.constant 0 : index
    %c0_89 = arith.constant 0 : index
    %373 = vector.load %arg7[%c0_88, %c0_89] : memref<1x128xf32, #tpu.memory_space<vmem>>, vector<1x128xf32>
    tpu.vector_store %arg7[%c0_88, %c0_89], %357 {strides = array<i32>} : memref<1x128xf32, #tpu.memory_space<vmem>>, vector<1x128xf32>,
    return
  }
}

</mosaic_0001>

<bundles_post_ra>
// kernel: tpu_custom_call.1
= control target key start
LH: loop header
LB: loop body
LE: loop exit
PB: predicated region body
PF: predicated region fallthrough
CT: control target
= control target key end

     0   :  { %13 = vsyncpa [#allocation3], 0  ;;  %s3904_s0 = inlined_call_operand.hbm [shape: bf16[8,128], index: 0, kind: input, shape index: {}]   ;;  %s3905_s1 = inlined_call_operand.vmem [shape: f32[1,128], index: 1, kind: input, shape index: {}]   ;;  %s3906_s2 = inlined_call_operand.hbm [shape: bf16[256,512], index: 2, kind: input, shape index: {}]   ;;  %s3907_s3 = inlined_call_operand.vmem [shape: f32[1,512], index: 3, kind: input, shape index: {}]   ;;  %s3908_s4 = inlined_call_operand.hbm [shape: bf16[128,128], index: 4, kind: input, shape index: {}]   ;;  %s3909_s5 = inlined_call_operand.vmem [shape: f32[1,128], index: 5, kind: input, shape index: {}]   ;;  %s3910_s6 = inlined_call_operand.hbm [shape: f32[8,128], index: 6, kind: output, shape index: {0}]   ;;  %s3911_s7 = inlined_call_operand.hbm [shape: f32[1,128], index: 7, kind: output, shape index: {1}]  }
   0x1   :  { %14 = vsyncpa [#allocation6], 0 }
   0x2   :  { %15 = vsyncpa [#allocation4], 0 }
   0x3   :  { %16 = vsyncpa [#allocation10], 0  ;;  %s2685_s24 = smov [#allocation5]   ;;  %s2567_s28 = scalar_lea.hbm %s3906_s2, 8192 }
   0x4   :  { %s34_s25 = sshll.u32 %s2685_s24, 4  ;;  %p2568_p0 = scmp.ne.s32.totalorder %s3906_s2, %s2567_s28  ;;  %s35_s25 = int_to_ptr.vmem [resolvable:$true] %s34_s25 }
   0x5   :  { %p2571_p1 = scmp.lt.u32.totalorder %s2567_s28, %s3906_s2 }
   0x7   :  { %p2573_p2 = pnand %p2571_p1, %p2568_p0 }
   0x9   :  { %2576 = shalt.err (!%p2573_p2)
}
   0xa   :  { %s2577_s10 = scalar_lea.vmem %s35_s25, 8192  ;;  %p2582_p4 = scmp.lt.s32.totalorder %s35_s25, %s35_s25 }
   0xb   :  { %p2578_p3 = scmp.ne.s32.totalorder %s35_s25, %s2577_s10  ;;  %p2583_p5 = scmp.lt.s32.totalorder %s2577_s10, %s2577_s10 }
   0xd   :  { %p2584_p6 = por %p2583_p5, %p2582_p4 }
   0xf   :  { %p2585_p7 = pnand %p2584_p6, %p2578_p3 }
  0x11   :  { %2588 = shalt.err (!%p2585_p7)
}
  0x12   :  { %s2686_s11 = smov 256   ;;  %s2687_s12 = smov 16  }
  0x13   :  { %40 = dma.hbm_to_vmem [thread:$0]  %s3906_s2, 8192, %s35_s25, [#allocation6], %s2686_s11, %s2686_s11, %s2687_s12  }
  0x14   :  { %s2688_s15 = smov [#allocation2]   ;;  %s2689_s17 = smov [#allocation7]  }
  0x15   :  { %s23_s16 = sshll.u32 %s2688_s15, 4  ;;  %s48_s18 = sshll.u32 %s2689_s17, 4  ;;  %s24_s16 = int_to_ptr.vmem [resolvable:$true] %s23_s16  ;;  %s49_s18 = int_to_ptr.vmem [resolvable:$true] %s48_s18 }
  0x16   :  { %s2589_s21 = scalar_lea.hbm %s3904_s0, 64 }
  0x17   :  { %p2590_p8 = scmp.ne.s32.totalorder %s3904_s0, %s2589_s21  ;;  %p2593_p9 = scmp.lt.u32.totalorder %s2589_s21, %s3904_s0 }
  0x19   :  { %p2595_p10 = pnand %p2593_p9, %p2590_p8 }
  0x1b   :  { %2598 = shalt.err (!%p2595_p10)
}
  0x1c   :  { %s2599_s2 = scalar_lea.vmem %s24_s16, 64  ;;  %p2604_p12 = scmp.lt.s32.totalorder %s24_s16, %s24_s16 }
  0x1d   :  { %p2600_p11 = scmp.ne.s32.totalorder %s24_s16, %s2599_s2  ;;  %p2605_p13 = scmp.lt.s32.totalorder %s2599_s2, %s2599_s2 }
  0x1f   :  { %p2606_p0 = por %p2605_p13, %p2604_p12 }
  0x21   :  { %p2607_p1 = pnand %p2606_p0, %p2600_p11 }
  0x23   :  { %2610 = shalt.err (!%p2607_p1)
}
  0x24   :  { %26 = dma.hbm_to_vmem [thread:$0]  %s3904_s0, 64, %s24_s16, [#allocation3]  }
  0x25   :  { %s2611_s30 = scalar_lea.hbm %s3908_s4, 1024 }
  0x26   :  { %p2612_p2 = scmp.ne.s32.totalorder %s3908_s4, %s2611_s30  ;;  %p2615_p3 = scmp.lt.u32.totalorder %s2611_s30, %s3908_s4 }
  0x28   :  { %p2617_p4 = pnand %p2615_p3, %p2612_p2 }
  0x2a   :  { %2620 = shalt.err (!%p2617_p4)
}
  0x2b   :  { %s2621_s12 = scalar_lea.vmem %s49_s18, 1024  ;;  %p2626_p6 = scmp.lt.s32.totalorder %s49_s18, %s49_s18 }
  0x2c   :  { %p2622_p5 = scmp.ne.s32.totalorder %s49_s18, %s2621_s12  ;;  %p2627_p7 = scmp.lt.s32.totalorder %s2621_s12, %s2621_s12 }
  0x2e   :  { %p2628_p8 = por %p2627_p7, %p2626_p6 }
  0x30   :  { %p2629_p9 = pnand %p2628_p8, %p2622_p5 }
  0x32   :  { %2632 = shalt.err (!%p2629_p9)
}
  0x33   :  { %s2690_s0 = smov 64   ;;  %s2691_s13 = smov 4  }
  0x34   :  { %54 = dma.hbm_to_vmem [thread:$0]  %s3908_s4, 1024, %s49_s18, [#allocation6], %s2690_s0, %s2690_s0, %s2691_s13  }
  0x35   :  { %2677 = dma.done.wait [#allocation3], 64  }
  0x36   :  { %2678 = vsyncadd [#allocation3], 4294967232 }
  0x37   :  { %2679 = dma.done.wait [#allocation6], 9216  }
  0x38   :  { %2680 = vsyncadd [#allocation6], 4294958080  ;;  %v2772_v0 = vld [vmem:[#allocation5 + $0x4] ss:$16 sps:$4 sm:$0xff]   ;;  %v2774_v1 = vld [vmem:[#allocation5] ss:$16 sps:$4 sm:$0xff]  }
  0x39   :  { %496 = vmatprep.subr.bf16.mxu0 %v2772_v0  ;;  %v2777_v2 = vld [vmem:[#allocation5 + $0x24] ss:$16 sps:$4 sm:$0xff]   ;;  %v2780_v3 = vld [vmem:[#allocation5 + $0x20] ss:$16 sps:$4 sm:$0xff]   ;;  %v2791_v7 = vld [vmem:[#allocation5 + $0xc] ss:$16 sps:$4 sm:$0xff]  }
  0x3a   :  { %497 = vmatpush1.bf16.msra.mxu0 %v2774_v1  ;;  %v2783_v4 = vld [vmem:[#allocation5 + $0x44] ss:$16 sps:$4 sm:$0xff]   ;;  %v2786_v5 = vld [vmem:[#allocation5 + $0x40] ss:$16 sps:$4 sm:$0xff]   ;;  %v2793_v8 = vld [vmem:[#allocation5 + $0x8] ss:$16 sps:$4 sm:$0xff]   ;;  %537 = vmatprep.subr.bf16.mxu1 %v2791_v7 }
  0x3b   :  { %498 = vmatprep.subr.bf16.mxu0 %v2777_v2  ;;  %4041 = vst [vmem:[#allocation15_spill] sm:$0xff] %v2786_v5  ;;  %v2788_v6 = vld [vmem:[#allocation5 + $0x64] ss:$16 sps:$4 sm:$0xff]   ;;  %v2795_v9 = vld [vmem:[#allocation5 + $0x60] ss:$16 sps:$4 sm:$0xff]   ;;  %538 = vmatpush1.bf16.msra.mxu1 %v2793_v8  ;;  %vm2693_vm0 = vmmov 0  }
  0x3c   :  { %4042 = vst [vmem:[#allocation16_spill] sm:$0xff] %v2788_v6  ;;  %4043 = vst [vmem:[#allocation17_spill] sm:$0xff] %v2795_v9  ;;  %v2800_v10 = vld [vmem:[#allocation5 + $0x2c] ss:$16 sps:$4 sm:$0xff]   ;;  %v2802_v11 = vld [vmem:[#allocation5 + $0x28] ss:$16 sps:$4 sm:$0xff]  }
  0x3d   :  { %v2805_v12 = vld [vmem:[#allocation5 + $0x84] ss:$16 sps:$4 sm:$0xff]   ;;  %539 = vmatprep.subr.bf16.mxu1 %v2800_v10  ;;  %v2808_v13 = vld [vmem:[#allocation5 + $0x80] ss:$16 sps:$4 sm:$0xff]   ;;  %v2810_v14 = vld [vmem:[#allocation5 + $0x4c] ss:$16 sps:$4 sm:$0xff]  }
  0x3e   :  { %499 = vmatpush1.bf16.msra.mxu0 %v2780_v3  ;;  %4044 = vst [vmem:[#allocation18_spill] sm:$0xff] %v2805_v12  ;;  %4045 = vst [vmem:[#allocation19_spill] sm:$0xff] %v2808_v13  ;;  %v2813_v15 = vld [vmem:[#allocation5 + $0xa4] ss:$16 sps:$4 sm:$0xff]   ;;  %v2816_v16 = vld [vmem:[#allocation5 + $0x48] ss:$16 sps:$4 sm:$0xff]  }
  0x3f   :  { %500 = vmatprep.subr.bf16.mxu0 %v2783_v4  ;;  %4046 = vst [vmem:[#allocation20_spill] sm:$0xff] %v2813_v15  ;;  %540 = vmatpush1.bf16.msra.mxu1 %v2802_v11  ;;  %v2820_v17 = vld [vmem:[#allocation5 + $0x6c] ss:$16 sps:$4 sm:$0xff]   ;;  %v2822_v18 = vld [vmem:[#allocation5 + $0xa0] ss:$16 sps:$4 sm:$0xff]   ;;  %vm686_vm1 = vcmask 1040384  }
  0x40   :  { %541 = vmatprep.subr.bf16.mxu1 %v2810_v14  ;;  %4047 = vst [vmem:[#allocation21_spill] sm:$0xff] %v2822_v18  ;;  %v2825_v19 = vld [vmem:[#allocation5 + $0xc4] ss:$16 sps:$4 sm:$0xff]   ;;  %v2828_v20 = vld [vmem:[#allocation5 + $0x68] ss:$16 sps:$4 sm:$0xff]  }
  0x41   :  { %4048 = vst [vmem:[#allocation22_spill] sm:$0xff] %v2825_v19  ;;  %v2832_v21 = vld [vmem:[#allocation5 + $0x8c] ss:$16 sps:$4 sm:$0xff]   ;;  %v2834_v22 = vld [vmem:[#allocation5 + $0xc0] ss:$16 sps:$4 sm:$0xff]  }
  0x42   :  { %501 = vmatpush1.bf16.msra.mxu0 %v2786_v5  ;;  %4049 = vst [vmem:[#allocation23_spill] sm:$0xff] %v2834_v22  ;;  %v2837_v23 = vld [vmem:[#allocation5 + $0xe4] ss:$16 sps:$4 sm:$0xff]   ;;  %v2840_v24 = vld [vmem:[#allocation5 + $0x88] ss:$16 sps:$4 sm:$0xff]  }
  0x43   :  { %502 = vmatprep.subr.bf16.mxu0 %v2788_v6  ;;  %542 = vmatpush1.bf16.msra.mxu1 %v2816_v16  ;;  %4050 = vst [vmem:[#allocation24_spill] sm:$0xff] %v2837_v23  ;;  %v2844_v25 = vld [vmem:[#allocation5 + $0xac] ss:$16 sps:$4 sm:$0xff]   ;;  %v2846_v26 = vld [vmem:[#allocation5 + $0xe0] ss:$16 sps:$4 sm:$0xff]  }
  0x44   :  { %543 = vmatprep.subr.bf16.mxu1 %v2820_v17  ;;  %4051 = vst [vmem:[#allocation25_spill] sm:$0xff] %v2846_v26  ;;  %v2849_v27 = vld [vmem:[#allocation5 + $0x104] ss:$16 sps:$4 sm:$0xff]   ;;  %v2852_v28 = vld [vmem:[#allocation5 + $0xa8] ss:$16 sps:$4 sm:$0xff]  }
  0x45   :  { %4052 = vst [vmem:[#allocation26_spill] sm:$0xff] %v2849_v27  ;;  %v2856_v29 = vld [vmem:[#allocation5 + $0xcc] ss:$16 sps:$4 sm:$0xff]   ;;  %v2858_v30 = vld [vmem:[#allocation5 + $0x100] ss:$16 sps:$4 sm:$0xff]  }
  0x46   :  { %503 = vmatpush1.bf16.msra.mxu0 %v2795_v9  ;;  %4053 = vst [vmem:[#allocation27_spill] sm:$0xff] %v2858_v30  ;;  %v2861_v31 = vld [vmem:[#allocation5 + $0x124] ss:$16 sps:$4 sm:$0xff]   ;;  %v2864_v32 = vld [vmem:[#allocation5 + $0xc8] ss:$16 sps:$4 sm:$0xff]  }
  0x47   :  { %504 = vmatprep.subr.bf16.mxu0 %v2805_v12  ;;  %544 = vmatpush1.bf16.msra.mxu1 %v2828_v20  ;;  %4054 = vst [vmem:[#allocation28_spill] sm:$0xff] %v2861_v31  ;;  %v2868_v33 = vld [vmem:[#allocation5 + $0xec] ss:$16 sps:$4 sm:$0xff]   ;;  %v2870_v34 = vld [vmem:[#allocation5 + $0x120] ss:$16 sps:$4 sm:$0xff]  }
  0x48   :  { %545 = vmatprep.subr.bf16.mxu1 %v2832_v21  ;;  %4055 = vst [vmem:[#allocation29_spill] sm:$0xff] %v2870_v34  ;;  %v2874_v35 = vld [vmem:[#allocation5 + $0xe8] ss:$16 sps:$4 sm:$0xff]   ;;  %v2879_v36 = vld [vmem:[%s3905_s1] sm:$0x1] }
  0x49   :  { %v2882_v37 = vld [vmem:[#allocation5 + $0x144] ss:$16 sps:$4 sm:$0xff]   ;;  %v2885_v38 = vld [vmem:[#allocation5 + $0x10c] ss:$16 sps:$4 sm:$0xff]   ;;  %v154_v39 = vpack.c.bf16 %v2879_v36, %v2879_v36  ;;  %v2889_v40 = vld [vmem:[#allocation5 + $0x140] ss:$16 sps:$4 sm:$0xff]  }
  0x4a   :  { %505 = vmatpush1.bf16.msra.mxu0 %v2808_v13  ;;  %4056 = vst [vmem:[#allocation30_spill] sm:$0xff] %v2882_v37  ;;  %4057 = vst [vmem:[#allocation31_spill] sm:$0xff] %v2889_v40  ;;  %v2893_v41 = vld [vmem:[#allocation5 + $0x108] ss:$16 sps:$4 sm:$0xff]   ;;  %v2896_v42 = vld [vmem:[#allocation5 + $0x164] ss:$16 sps:$4 sm:$0xff]  }
  0x4b   :  { %506 = vmatprep.subr.bf16.mxu0 %v2813_v15  ;;  %546 = vmatpush1.bf16.msra.mxu1 %v2840_v24  ;;  %4058 = vst [vmem:[#allocation32_spill] sm:$0xff] %v2896_v42  ;;  %v2899_v43 = vld [vmem:[#allocation5 + $0x12c] ss:$16 sps:$4 sm:$0xff]   ;;  %v2901_v44 = vld [vmem:[#allocation5 + $0x160] ss:$16 sps:$4 sm:$0xff]  }
  0x4c   :  { %547 = vmatprep.subr.bf16.mxu1 %v2844_v25  ;;  %528 = vmatprep.mubr.bf16.mxu0 %v154_v39  ;;  %4059 = vst [vmem:[#allocation33_spill] sm:$0xff] %v2901_v44  ;;  %v2903_v45 = vld [vmem:[#allocation5 + $0x184] ss:$16 sps:$4 sm:$0xff]   ;;  %v2907_v46 = vld [vmem:[#allocation5 + $0x128] ss:$16 sps:$4 sm:$0xff]  }
  0x4d   :  { %569 = vmatprep.mubr.bf16.mxu1 %v154_v39  ;;  %4060 = vst [vmem:[#allocation34_spill] sm:$0xff] %v2903_v45  ;;  %v2909_v47 = vld [vmem:[#allocation5 + $0x14c] ss:$16 sps:$4 sm:$0xff]   ;;  %v2913_v48 = vld [vmem:[#allocation5 + $0x180] ss:$16 sps:$4 sm:$0xff]  }
  0x4e   :  { %507 = vmatpush1.bf16.msra.mxu0 %v2822_v18  ;;  %4061 = vst [vmem:[#allocation35_spill] sm:$0xff] %v2913_v48  ;;  %v2915_v49 = vld [vmem:[#allocation5 + $0x148] ss:$16 sps:$4 sm:$0xff]   ;;  %v2917_v50 = vld [vmem:[#allocation5 + $0x1a4] ss:$16 sps:$4 sm:$0xff]  }
  0x4f   :  { %508 = vmatprep.subr.bf16.mxu0 %v2825_v19  ;;  %548 = vmatpush1.bf16.msra.mxu1 %v2852_v28  ;;  %4062 = vst [vmem:[#allocation36_spill] sm:$0xff] %v2917_v50  ;;  %v2919_v51 = vld [vmem:[#allocation5 + $0x16c] ss:$16 sps:$4 sm:$0xff]   ;;  %v2926_v52 = vld [vmem:[#allocation5 + $0x1a0] ss:$16 sps:$4 sm:$0xff]  }
  0x50   :  { %549 = vmatprep.subr.bf16.mxu1 %v2856_v29  ;;  %4063 = vst [vmem:[#allocation37_spill] sm:$0xff] %v2926_v52  ;;  %v150_v53 = vld [vmem:[#allocation2] sm:$0x1]  ;;  %v2929_v54 = vld [vmem:[#allocation5 + $0x168] ss:$16 sps:$4 sm:$0xff]  }
  0x51   :  { %4064 = vst [vmem:[#allocation38_spill] sm:$0xff] %v2929_v54  ;;  %v2932_v55 = vld [vmem:[#allocation5 + $0x1c4] ss:$16 sps:$4 sm:$0xff]   ;;  %v2935_v56 = vld [vmem:[#allocation5 + $0x18c] ss:$16 sps:$4 sm:$0xff]   ;;  %v151_v57 = vunpack.c.l.bf16 %v150_v53 }
  0x52   :  { %509 = vmatpush1.bf16.msra.mxu0 %v2834_v22  ;;  %4065 = vst [vmem:[#allocation39_spill] sm:$0xff] %v2932_v55  ;;  %4066 = vst [vmem:[#allocation40_spill] sm:$0xff] %v2935_v56  ;;  %v2938_v58 = vld [vmem:[#allocation5 + $0x1c0] ss:$16 sps:$4 sm:$0xff]   ;;  %v2941_v59 = vld [vmem:[#allocation5 + $0x188] ss:$16 sps:$4 sm:$0xff]  }
  0x53   :  { %510 = vmatprep.subr.bf16.mxu0 %v2837_v23  ;;  %550 = vmatpush1.bf16.msra.mxu1 %v2864_v32  ;;  %4067 = vst [vmem:[#allocation41_spill] sm:$0xff] %v2938_v58  ;;  %4068 = vst [vmem:[#allocation42_spill] sm:$0xff] %v2941_v59  ;;  %v2944_v60 = vld [vmem:[#allocation5 + $0x1e4] ss:$16 sps:$4 sm:$0xff]   ;;  %v2947_v61 = vld [vmem:[#allocation5 + $0x1ac] ss:$16 sps:$4 sm:$0xff]  }
  0x54   :  { %551 = vmatprep.subr.bf16.mxu1 %v2868_v33  ;;  %4069 = vst [vmem:[#allocation43_spill] sm:$0xff] %v2944_v60  ;;  %v152_v62 = vmax.f32 %v151_v57, 0.0  ;;  %v2950_v63 = vld [vmem:[#allocation5 + $0x1e0] ss:$16 sps:$4 sm:$0xff]   ;;  %v2953_v39 = vld [vmem:[#allocation5 + $0x1a8] ss:$16 sps:$4 sm:$0xff]  }
  0x55   :  { %4070 = vst [vmem:[#allocation44_spill] sm:$0xff] %v2950_v63  ;;  %v2957_v53 = vld [vmem:[#allocation5 + $0x1cc] ss:$16 sps:$4 sm:$0xff]   ;;  %v2961_v57 = vld [vmem:[#allocation5 + $0x1c8] ss:$16 sps:$4 sm:$0xff]  }
  0x56   :  { %511 = vmatpush1.bf16.msra.mxu0 %v2846_v26 }
  0x57   :  { %512 = vmatprep.subr.bf16.mxu0 %v2849_v27  ;;  %552 = vmatpush1.bf16.msra.mxu1 %v2874_v35 }
  0x58   :  { %553 = vmatprep.subr.bf16.mxu1 %v2885_v38 }
  0x5a   :  { %513 = vmatpush1.bf16.msra.mxu0 %v2858_v30 }
  0x5b   :  { %514 = vmatprep.subr.bf16.mxu0 %v2861_v31  ;;  %554 = vmatpush1.bf16.msra.mxu1 %v2893_v41 }
  0x5c   :  { %555 = vmatprep.subr.bf16.mxu1 %v2899_v43 }
  0x5e   :  { %515 = vmatpush1.bf16.msra.mxu0 %v2870_v34 }
  0x5f   :  { %516 = vmatprep.subr.bf16.mxu0 %v2882_v37  ;;  %556 = vmatpush1.bf16.msra.mxu1 %v2907_v46 }
  0x60   :  { %557 = vmatprep.subr.bf16.mxu1 %v2909_v47 }
  0x62   :  { %517 = vmatpush1.bf16.msra.mxu0 %v2889_v40 }
  0x63   :  { %518 = vmatprep.subr.bf16.mxu0 %v2896_v42  ;;  %558 = vmatpush1.bf16.msra.mxu1 %v2915_v49 }
  0x64   :  { %559 = vmatprep.subr.bf16.mxu1 %v2919_v51 }
  0x66   :  { %519 = vmatpush1.bf16.msra.mxu0 %v2901_v44 }
  0x67   :  { %520 = vmatprep.subr.bf16.mxu0 %v2903_v45  ;;  %560 = vmatpush1.bf16.msra.mxu1 %v2929_v54  ;;  %v153_v54 = vpack.c.bf16 %v152_v62, %v152_v62  ;;  %v3950_v62 = vmov 0.0  }
  0x68   :  { %561 = vmatprep.subr.bf16.mxu1 %v2935_v56  ;;  %v2964_v56 = vld [vmem:[#allocation5 + $0x1ec] ss:$16 sps:$4 sm:$0xff]  }
  0x6a   :  { %521 = vmatpush1.bf16.msra.mxu0 %v2913_v48 }
  0x6b   :  { %522 = vmatprep.subr.bf16.mxu0 %v2917_v50  ;;  %562 = vmatpush1.bf16.msra.mxu1 %v2941_v59  ;;  %v2967_v59 = vld [vmem:[#allocation5 + $0x1e8] ss:$16 sps:$4 sm:$0xff]  }
  0x6c   :  { %563 = vmatprep.subr.bf16.mxu1 %v2947_v61 }
  0x6e   :  { %523 = vmatpush1.bf16.msra.mxu0 %v2926_v52 }
  0x6f   :  { %524 = vmatprep.subr.bf16.mxu0 %v2932_v55  ;;  %564 = vmatpush1.bf16.msra.mxu1 %v2953_v39 }
  0x70   :  { %565 = vmatprep.subr.bf16.mxu1 %v2957_v53 }
  0x72   :  { %525 = vmatpush1.bf16.msra.mxu0 %v2938_v58 }
  0x73   :  { %526 = vmatprep.subr.bf16.mxu0 %v2944_v60  ;;  %566 = vmatpush1.bf16.msra.mxu1 %v2961_v57 }
  0x74   :  { %567 = vmatprep.subr.bf16.mxu1 %v2964_v56 }
  0x76   :  { %527 = vmatpush1.bf16.msra.mxu0 %v2950_v63 }
  0x77   :  { %568 = vmatpush1.bf16.msra.mxu1 %v2967_v59  ;;  %2088 = vmatprep.subr.bf16.mxu0 %v3950_v62 }
  0x78   :  { %716 = vmatprep.subr.bf16.mxu1 %v2772_v0 }
  0x79   :  { %529 = vmatmul.mubr.bf16.vlgmr.msra.gmra.mrb[0].mxu0 %v153_v54 }
  0x7a   :  { %570 = vmatmul.mubr.bf16.vlgmr.msra.gmra.mrb[0].mxu1 %v153_v54  ;;  %v3003_v54 = vld [vmem:[#allocation7] sm:$0xff]   ;;  %2104 = vmatprep.mubr.msk.bf16.mxu0 %vm2693_vm0, %v3950_v62 }
  0x7b   :  { %717 = vmatpush1.bf16.msra.mxu1 %v2774_v1  ;;  %2089 = vmatpush3.bf16.msra.mxu0 %v3003_v54 }
  0x7c   :  { %718 = vmatprep.subr.bf16.mxu1 %v2777_v2  ;;  %2090 = vmatprep.subr.bf16.mxu0 %v3950_v62 }
  0x7f   :  { %719 = vmatpush1.bf16.msra.mxu1 %v2780_v3 }
  0x80   :  { %720 = vmatprep.subr.bf16.mxu1 %v2783_v4 }
  0x83   :  { %721 = vmatpush1.bf16.msra.mxu1 %v2786_v5 }
  0x84   :  { %722 = vmatprep.subr.bf16.mxu1 %v2788_v6 }
  0x87   :  { %723 = vmatpush1.bf16.msra.mxu1 %v2795_v9 }
  0x88   :  { %724 = vmatprep.subr.bf16.mxu1 %v2805_v12 }
  0x8b   :  { %725 = vmatpush1.bf16.msra.mxu1 %v2808_v13 }
  0x8c   :  { %726 = vmatprep.subr.bf16.mxu1 %v2813_v15 }
  0x8f   :  { %727 = vmatpush1.bf16.msra.mxu1 %v2822_v18 }
  0x90   :  { %728 = vmatprep.subr.bf16.mxu1 %v2825_v19 }
  0x93   :  { %729 = vmatpush1.bf16.msra.mxu1 %v2834_v22 }
  0x94   :  { %730 = vmatprep.subr.bf16.mxu1 %v2837_v23 }
  0x97   :  { %731 = vmatpush1.bf16.msra.mxu1 %v2846_v26 }
  0x98   :  { %732 = vmatprep.subr.bf16.mxu1 %v2849_v27 }
  0x9b   :  { %733 = vmatpush1.bf16.msra.mxu1 %v2858_v30 }
  0x9c   :  { %734 = vmatprep.subr.bf16.mxu1 %v2861_v31 }
  0x9f   :  { %735 = vmatpush1.bf16.msra.mxu1 %v2870_v34 }
  0xa0   :  { %736 = vmatprep.subr.bf16.mxu1 %v2882_v37 }
  0xa3   :  { %737 = vmatpush1.bf16.msra.mxu1 %v2889_v40  ;;  %v131_v40 = vld [vmem:[%s3907_s3] sm:$0xf] }
  0xa4   :  { %738 = vmatprep.subr.bf16.mxu1 %v2896_v42 }
  0xa7   :  { %739 = vmatpush1.bf16.msra.mxu1 %v2901_v44 }
  0xa8   :  { %740 = vmatprep.subr.bf16.mxu1 %v2903_v45  ;;  %v476_v45 = vlaneseq }
  0xaa   :  { %v477_v44 = vshrl.u32 %v476_v45, 7 }
  0xab   :  { %741 = vmatpush1.bf16.msra.mxu1 %v2913_v48  ;;  %v3034_v48 = vld [vmem:[#allocation7 + $0x38] sm:$0xff]  }
  0xac   :  { %742 = vmatprep.subr.bf16.mxu1 %v2917_v50  ;;  %v3030_v50 = vld [vmem:[#allocation7 + $0x30] sm:$0xff]   ;;  %v478_v42 = vsub.s32 0, %v477_v44  ;;  %v482_v37 = vsub.s32 1, %v477_v44  ;;  %v490_v6 = vsub.s32 3, %v477_v44 }
  0xae   :  { %v3042_v34 = vrot.slane %v131_v40, %v478_v42  ;;  %v3044_v30 = vrot.slane %v131_v40, %v482_v37  ;;  %v486_v37 = vsub.s32 2, %v477_v44  ;;  %v3048_v5 = vrot.slane %v131_v40, %v490_v6 }
  0xaf   :  { %743 = vmatpush1.bf16.msra.mxu1 %v2926_v52  ;;  %v3009_v52 = vld [vmem:[#allocation7 + $0x8] sm:$0xff]  }
  0xb0   :  { %744 = vmatprep.subr.bf16.mxu1 %v2932_v55  ;;  %2091 = vmatpush3.bf16.msra.mxu0 %v3009_v52  ;;  %v3024_v55 = vld [vmem:[#allocation7 + $0x28] sm:$0xff]   ;;  %4071 = vst [vmem:[#allocation45_spill] sm:$0xff] %v3042_v34  ;;  %4072 = vst [vmem:[#allocation46_spill] sm:$0xff] %v3044_v30 }
  0xb1   :  { %2092 = vmatprep.subr.bf16.mxu0 %v3950_v62 }
  0xb3   :  { %745 = vmatpush1.bf16.msra.mxu1 %v2938_v58  ;;  %v3021_v58 = vld [vmem:[#allocation7 + $0x20] sm:$0xff]  }
  0xb4   :  { %746 = vmatprep.subr.bf16.mxu1 %v2944_v60  ;;  %v3013_v60 = vld [vmem:[#allocation7 + $0x10] sm:$0xff]  }
  0xb5   :  { %2093 = vmatpush3.bf16.msra.mxu0 %v3013_v60 }
  0xb6   :  { %2094 = vmatprep.subr.bf16.mxu0 %v3950_v62 }
  0xb7   :  { %747 = vmatpush1.bf16.msra.mxu1 %v2950_v63  ;;  %v3017_v63 = vld [vmem:[#allocation7 + $0x18] sm:$0xff]  }
  0xb8   :  { %2108 = vmatprep.subr.bf16.mxu1 %v3950_v62 }
  0xb9   :  { %2095 = vmatpush3.bf16.msra.mxu0 %v3017_v63 }
  0xba   :  { %2096 = vmatprep.subr.bf16.mxu0 %v3950_v62 }
  0xbd   :  { %2097 = vmatpush3.bf16.msra.mxu0 %v3021_v58 }
  0xbe   :  { %2098 = vmatprep.subr.bf16.mxu0 %v3950_v62 }
  0xc1   :  { %2099 = vmatpush3.bf16.msra.mxu0 %v3024_v55 }
  0xc2   :  { %2100 = vmatprep.subr.bf16.mxu0 %v3950_v62 }
  0xc5   :  { %2101 = vmatpush3.bf16.msra.mxu0 %v3030_v50 }
  0xc6   :  { %2102 = vmatprep.subr.bf16.mxu0 %v3950_v62 }
  0xc9   :  { %2103 = vmatpush3.bf16.msra.mxu0 %v3034_v48 }
  0xca   :  { %757 = vmatprep.subr.bf16.mxu0 %v2791_v7 }
 0x14c   :  { %v530_v31 = vpop.f32.mrb[0].mxu0 }
 0x14d   :  { %v531_v27 = vadd.f32 %v530_v31, %v3042_v34  ;;  %v532_v62 = vpop.f32.mrb[1].mxu0  ;;  %v571_v18 = vpop.f32.mrb[0].mxu1 }
 0x14e   :  { %v534_v26 = vpop.f32.mrb[2].mxu0  ;;  %v533_v19 = vadd.f32 %v532_v62, %v3044_v30  ;;  %v573_v15 = vpop.f32.mrb[1].mxu1  ;;  %v700_v62 = vld [vmem:[#allocation2] sm:$0x1] }
 0x14f   :  { %v1992_v23 = vmul.f32 -1.442695, %v531_v27  ;;  %v535_v22 = vpop.f32.mrb[3].mxu0  ;;  %v575_v13 = vpop.f32.mrb[2].mxu1  ;;  %v3050_v27 = vrot.slane %v131_v40, %v486_v37 }
 0x150   :  { %v1993_v45 = vmul.f32 -1.442695, %v533_v19  ;;  %v576_v12 = vpop.f32.mrb[3].mxu1  ;;  %v574_v22 = vadd.f32 %v573_v15, %v3048_v5 }
 0x151   :  { %2363 = vpow2.f32 %v1992_v23  ;;  %v572_v19 = vadd.f32 %v571_v18, %v3050_v27 }
 0x152   :  { %2365 = vpow2.f32 %v1993_v45 }
 0x15b   :  { %v2364_v42 = vpop.eup %2363 }
 0x15c   :  { %v581_v9 = vadd.f32 1.0, %v2364_v42  ;;  %v2366_v31 = vpop.eup %2365  ;;  %v701_v42 = vunpack.c.l.bf16 %v700_v62  ;;  %v4078_v62 = vld [vmem:[#allocation16_spill] sm:$0xff] }
 0x15d   :  { %v587_v26 = vadd.f32 1.0, %v2366_v31 }
 0x15e   :  { %2367 = vrcp.f32 %v581_v9  ;;  %v702_v6 = vmax.f32 %v701_v42, 0.0  ;;  %v4080_v42 = vld [vmem:[#allocation18_spill] sm:$0xff] }
 0x15f   :  { %2369 = vrcp.f32 %v587_v26 }
 0x160   :  { %v706_v37 = vpack.c.bf16 %v702_v6, %v702_v6  ;;  %v4087_v6 = vld [vmem:[#allocation25_spill] sm:$0xff] }
 0x168   :  { %v2368_v23 = vpop.eup %2367 }
 0x169   :  { %v590_v13 = vmul.f32 %v2368_v23, %v574_v22  ;;  %v2370_v45 = vpop.eup %2369  ;;  %v709_v22 = vshrl.u32 %v706_v37, 16  ;;  %v4089_v37 = vld [vmem:[#allocation27_spill] sm:$0xff] }
 0x16a   :  { %v593_v9 = vsub.f32 1.0, %v2370_v45  ;;  %v595_v31 = vmul.f32 %v2370_v45, %v2879_v36  ;;  %v4074_v36 = vld [vmem:[#allocation38_spill] sm:$0xff]  ;;  %v4079_v45 = vld [vmem:[#allocation17_spill] sm:$0xff] }
 0x16b   :  { %v591_v12 = vadd.f32 %v590_v13, %v572_v19  ;;  %v4075_v19 = vld [vmem:[#allocation40_spill] sm:$0xff]  ;;  %v4076_v13 = vld [vmem:[#allocation42_spill] sm:$0xff] }
 0x16d   :  { %2371 = vtanh.f32 %v591_v12  ;;  %v4077_v12 = vld [vmem:[#allocation15_spill] sm:$0xff] }
 0x177   :  { %v2372_v44 = vpop.eup %2371 }
 0x178   :  { %v594_v30 = vmul.f32 %v2372_v44, %v593_v9  ;;  %v4081_v9 = vld [vmem:[#allocation19_spill] sm:$0xff]  ;;  %v4083_v44 = vld [vmem:[#allocation21_spill] sm:$0xff] }
 0x17a   :  { %v3055_v40 = vadd.f32 %v595_v31, %v594_v30  ;;  %v4073_v30 = vmov 0.0   ;;  %v4088_v31 = vld [vmem:[#allocation26_spill] sm:$0xff] }
 0x17c   :  { %v597_v15 = vpack.c.bf16 %v3055_v40, %v3055_v40  ;;  %v704_v18 = vrot.slane %v3055_v40, 7 }
 0x17e   :  { %2105 = vmatmul.mubr.bf16.vlgmr.msra.gmra.mrb[4].mxu0 %v597_v15  ;;  %v707_v26 = vpack.c.bf16 %v704_v18, %v704_v18  ;;  %v4090_v15 = vld [vmem:[#allocation28_spill] sm:$0xff]  ;;  %v4091_v18 = vld [vmem:[#allocation29_spill] sm:$0xff] }
 0x17f   :  { %758 = vmatpush1.bf16.msra.mxu0 %v2793_v8 }
 0x180   :  { %759 = vmatprep.subr.bf16.mxu0 %v2800_v10  ;;  %v712_v23 = vshrl.u32 %v707_v26, 16  ;;  %v4092_v26 = vld [vmem:[#allocation30_spill] sm:$0xff] }
 0x182   :  { %748 = vmatprep.mubr.bf16.mxu1 %v712_v23  ;;  %789 = vmatprep.mubr.bf16.mxu0 %v712_v23  ;;  %v4094_v23 = vld [vmem:[#allocation32_spill] sm:$0xff] }
 0x183   :  { %760 = vmatpush1.bf16.msra.mxu0 %v2802_v11  ;;  %749 = vmatmul.mubr.bf16.vlgmr.msra.gmra.mrb[4].mxu1 %v709_v22 }
 0x184   :  { %761 = vmatprep.subr.bf16.mxu0 %v2810_v14  ;;  %2109 = vmatpush3.bf16.msra.mxu1 %v3003_v54 }
 0x185   :  { %2110 = vmatprep.subr.bf16.mxu1 %v4073_v30  ;;  %2124 = vmatprep.mubr.msk.bf16.mxu1 %vm2693_vm0, %v4073_v30 }
 0x187   :  { %762 = vmatpush1.bf16.msra.mxu0 %v2816_v16 }
 0x188   :  { %763 = vmatprep.subr.bf16.mxu0 %v2820_v17  ;;  %2111 = vmatpush3.bf16.msra.mxu1 %v3009_v52 }
 0x189   :  { %2112 = vmatprep.subr.bf16.mxu1 %v4073_v30 }
 0x18b   :  { %764 = vmatpush1.bf16.msra.mxu0 %v2828_v20 }
 0x18c   :  { %765 = vmatprep.subr.bf16.mxu0 %v2832_v21  ;;  %2113 = vmatpush3.bf16.msra.mxu1 %v3013_v60 }
 0x18d   :  { %2114 = vmatprep.subr.bf16.mxu1 %v4073_v30 }
 0x18f   :  { %766 = vmatpush1.bf16.msra.mxu0 %v2840_v24 }
 0x190   :  { %767 = vmatprep.subr.bf16.mxu0 %v2844_v25  ;;  %2115 = vmatpush3.bf16.msra.mxu1 %v3017_v63 }
 0x191   :  { %2116 = vmatprep.subr.bf16.mxu1 %v4073_v30 }
 0x193   :  { %768 = vmatpush1.bf16.msra.mxu0 %v2852_v28 }
 0x194   :  { %769 = vmatprep.subr.bf16.mxu0 %v2856_v29  ;;  %2117 = vmatpush3.bf16.msra.mxu1 %v3021_v58 }
 0x195   :  { %2118 = vmatprep.subr.bf16.mxu1 %v4073_v30 }
 0x197   :  { %770 = vmatpush1.bf16.msra.mxu0 %v2864_v32 }
 0x198   :  { %771 = vmatprep.subr.bf16.mxu0 %v2868_v33  ;;  %2119 = vmatpush3.bf16.msra.mxu1 %v3024_v55 }
 0x199   :  { %2120 = vmatprep.subr.bf16.mxu1 %v4073_v30 }
 0x19b   :  { %772 = vmatpush1.bf16.msra.mxu0 %v2874_v35 }
 0x19c   :  { %773 = vmatprep.subr.bf16.mxu0 %v2885_v38  ;;  %2121 = vmatpush3.bf16.msra.mxu1 %v3030_v50 }
 0x19d   :  { %2122 = vmatprep.subr.bf16.mxu1 %v4073_v30 }
 0x19f   :  { %774 = vmatpush1.bf16.msra.mxu0 %v2893_v41 }
 0x1a0   :  { %775 = vmatprep.subr.bf16.mxu0 %v2899_v43  ;;  %2123 = vmatpush3.bf16.msra.mxu1 %v3034_v48 }
 0x1a1   :  { %926 = vmatprep.subr.bf16.mxu1 %v2791_v7 }
 0x1a3   :  { %776 = vmatpush1.bf16.msra.mxu0 %v2907_v46 }
 0x1a4   :  { %777 = vmatprep.subr.bf16.mxu0 %v2909_v47 }
 0x1a7   :  { %778 = vmatpush1.bf16.msra.mxu0 %v2915_v49 }
 0x1a8   :  { %779 = vmatprep.subr.bf16.mxu0 %v2919_v51 }
 0x1ab   :  { %780 = vmatpush1.bf16.msra.mxu0 %v4074_v36 }
 0x1ac   :  { %781 = vmatprep.subr.bf16.mxu0 %v4075_v19 }
 0x1af   :  { %782 = vmatpush1.bf16.msra.mxu0 %v4076_v13 }
 0x1b0   :  { %783 = vmatprep.subr.bf16.mxu0 %v2947_v61 }
 0x1b3   :  { %784 = vmatpush1.bf16.msra.mxu0 %v2953_v39 }
 0x1b4   :  { %785 = vmatprep.subr.bf16.mxu0 %v2957_v53 }
 0x1b7   :  { %786 = vmatpush1.bf16.msra.mxu0 %v2961_v57 }
 0x1b8   :  { %787 = vmatprep.subr.bf16.mxu0 %v2964_v56 }
 0x1bb   :  { %788 = vmatpush1.bf16.msra.mxu0 %v2967_v59 }
 0x1bc   :  { %885 = vmatprep.subr.bf16.mxu0 %v2772_v0  ;;  %v4082_v0 = vld [vmem:[#allocation20_spill] sm:$0xff] }
 0x1be   :  { %790 = vmatmul.mubr.bf16.vlgmr.msra.gmra.mrb[8].mxu0 %v709_v22  ;;  %v4093_v22 = vld [vmem:[#allocation31_spill] sm:$0xff] }
 0x1bf   :  { %886 = vmatpush1.bf16.msra.mxu0 %v2774_v1  ;;  %v4084_v1 = vld [vmem:[#allocation22_spill] sm:$0xff] }
 0x1c0   :  { %887 = vmatprep.subr.bf16.mxu0 %v2777_v2  ;;  %v4085_v2 = vld [vmem:[#allocation23_spill] sm:$0xff] }
 0x1c3   :  { %888 = vmatpush1.bf16.msra.mxu0 %v2780_v3  ;;  %v4086_v3 = vld [vmem:[#allocation24_spill] sm:$0xff] }
 0x1c4   :  { %889 = vmatprep.subr.bf16.mxu0 %v2783_v4 }
 0x1c7   :  { %890 = vmatpush1.bf16.msra.mxu0 %v4077_v12 }
 0x1c8   :  { %891 = vmatprep.subr.bf16.mxu0 %v4078_v62 }
 0x1cb   :  { %892 = vmatpush1.bf16.msra.mxu0 %v4079_v45 }
 0x1cc   :  { %893 = vmatprep.subr.bf16.mxu0 %v4080_v42 }
 0x1cf   :  { %894 = vmatpush1.bf16.msra.mxu0 %v4081_v9  ;;  %v4106_v9 = vld [vmem:[#allocation46_spill] sm:$0xff] }
 0x1d0   :  { %895 = vmatprep.subr.bf16.mxu0 %v4082_v0 }
 0x1d3   :  { %896 = vmatpush1.bf16.msra.mxu0 %v4083_v44 }
 0x1d4   :  { %897 = vmatprep.subr.bf16.mxu0 %v4084_v1  ;;  %v4095_v1 = vld [vmem:[#allocation33_spill] sm:$0xff] }
 0x1d7   :  { %898 = vmatpush1.bf16.msra.mxu0 %v4085_v2  ;;  %v4096_v2 = vld [vmem:[#allocation34_spill] sm:$0xff] }
 0x1d8   :  { %899 = vmatprep.subr.bf16.mxu0 %v4086_v3  ;;  %v4097_v3 = vld [vmem:[#allocation35_spill] sm:$0xff] }
 0x1db   :  { %900 = vmatpush1.bf16.msra.mxu0 %v4087_v6  ;;  %v4098_v6 = vld [vmem:[#allocation36_spill] sm:$0xff] }
 0x1dc   :  { %901 = vmatprep.subr.bf16.mxu0 %v4088_v31  ;;  %v4099_v31 = vld [vmem:[#allocation37_spill] sm:$0xff] }
 0x1df   :  { %902 = vmatpush1.bf16.msra.mxu0 %v4089_v37  ;;  %v4100_v37 = vld [vmem:[#allocation39_spill] sm:$0xff] }
 0x1e0   :  { %903 = vmatprep.subr.bf16.mxu0 %v4090_v15  ;;  %v4101_v15 = vld [vmem:[#allocation41_spill] sm:$0xff] }
 0x1e3   :  { %904 = vmatpush1.bf16.msra.mxu0 %v4091_v18  ;;  %v4102_v18 = vld [vmem:[#allocation43_spill] sm:$0xff] }
 0x1e4   :  { %905 = vmatprep.subr.bf16.mxu0 %v4092_v26  ;;  %v4103_v26 = vld [vmem:[#allocation44_spill] sm:$0xff] }
 0x1e7   :  { %906 = vmatpush1.bf16.msra.mxu0 %v4093_v22 }
 0x1e8   :  { %907 = vmatprep.subr.bf16.mxu0 %v4094_v23 }
 0x1eb   :  { %908 = vmatpush1.bf16.msra.mxu0 %v4095_v1 }
 0x1ec   :  { %909 = vmatprep.subr.bf16.mxu0 %v4096_v2  ;;  %v3145_v2 = vld [vmem:[%s3909_s5] sm:$0x1] }
 0x1ed   :  { %4104 = vst [vmem:[#allocation38_spill] sm:$0xff] %v3145_v2 }
 0x1ef   :  { %910 = vmatpush1.bf16.msra.mxu0 %v4097_v3 }
 0x1f0   :  { %911 = vmatprep.subr.bf16.mxu0 %v4098_v6 }
 0x1f3   :  { %912 = vmatpush1.bf16.msra.mxu0 %v4099_v31 }
 0x1f4   :  { %913 = vmatprep.subr.bf16.mxu0 %v4100_v37 }
 0x1f7   :  { %914 = vmatpush1.bf16.msra.mxu0 %v4101_v15 }
 0x1f8   :  { %915 = vmatprep.subr.bf16.mxu0 %v4102_v18 }
 0x1fb   :  { %916 = vmatpush1.bf16.msra.mxu0 %v4103_v26 }
 0x1fc   :  { %2128 = vmatprep.subr.bf16.mxu0 %v4073_v30 }
 0x251   :  { %v680_v3 = vpop.f32.mrb[4].mxu0 }
 0x252   :  { %v3148_v6 = vadd.f32 %v680_v3, %v3145_v2  ;;  %v2106_v31 = vpop.f32.mrb[5].mxu0 }
 0x253   :  { %v683_v37 = vpop.f32.mrb[6].mxu0 }
 0x254   :  { %4105 = vst [vmem:[#allocation40_spill] sm:$0xff] %v3148_v6  ;;  %v2107_v1 = vpop.f32.mrb[7].mxu0  ;;  %v687_v18 = vsel %vm686_vm1, %v3148_v6, -inf }
 0x255   :  { %688 = vmax.xlane.f32.xlu0 %v687_v18 }
 0x256   :  { %v750_v26 = vpop.f32.mrb[4].mxu1 }
 0x257   :  { %v752_v15 = vpop.f32.mrb[5].mxu1  ;;  %v751_v44 = vadd.f32 %v750_v26, %v3042_v34 }
 0x258   :  { %v754_v23 = vpop.f32.mrb[6].mxu1  ;;  %v753_v42 = vadd.f32 %v752_v15, %v4106_v9  ;;  %v871_v15 = vld [vmem:[#allocation2] sm:$0x2] }
 0x259   :  { %v755_v22 = vpop.f32.mrb[7].mxu1  ;;  %v2002_v0 = vmul.f32 -1.442695, %v751_v44 }
 0x25a   :  { %v2003_v3 = vmul.f32 -1.442695, %v753_v42  ;;  %v872_v42 = vunpack.c.l.bf16 %v871_v15  ;;  %v4128_v15 = vld [vmem:[#allocation36_spill] sm:$0xff] }
 0x25b   :  { %2373 = vpow2.f32 %v2002_v0 }
 0x25c   :  { %2375 = vpow2.f32 %v2003_v3  ;;  %v873_v9 = vmax.f32 %v872_v42, 0.0  ;;  %v4129_v42 = vld [vmem:[#allocation37_spill] sm:$0xff] }
 0x265   :  { %v2374_v45 = vpop.eup %2373 }
 0x266   :  { %v801_v2 = vadd.f32 1.0, %v2374_v45  ;;  %v2376_v1 = vpop.eup %2375 }
 0x267   :  { %v807_v18 = vadd.f32 1.0, %v2376_v1 }
 0x268   :  { %2377 = vrcp.f32 %v801_v2 }
 0x269   :  { %2379 = vrcp.f32 %v807_v18 }
 0x272   :  { %v2378_v37 = vpop.eup %2377 }
 0x273   :  { %v2380_v45 = vpop.eup %2379 }
 0x274   :  { %v813_v3 = vsub.f32 1.0, %v2380_v45  ;;  %v815_v12 = vmul.f32 %v2380_v45, %v3055_v40  ;;  %v4121_v40 = vld [vmem:[#allocation29_spill] sm:$0xff]  ;;  %v4130_v45 = vld [vmem:[#allocation39_spill] sm:$0xff] }
 0x291   :  { %v791_v31 = vpop.f32.mrb[8].mxu0 }
 0x292   :  { %v793_v6 = vpop.f32.mrb[9].mxu0  ;;  %v792_v26 = vadd.f32 %v791_v31, %v3050_v27 }
 0x293   :  { %v794_v62 = vadd.f32 %v793_v6, %v3048_v5  ;;  %v795_v23 = vpop.f32.mrb[10].mxu0  ;;  %v877_v6 = vpack.c.bf16 %v873_v9, %v873_v9  ;;  %v4123_v9 = vld [vmem:[#allocation31_spill] sm:$0xff] }
 0x294   :  { %v796_v22 = vpop.f32.mrb[11].mxu0 }
 0x295   :  { %v810_v44 = vmul.f32 %v2378_v37, %v794_v62  ;;  %v881_v37 = vrot.slane %v877_v6, 1  ;;  %v4124_v22 = vld [vmem:[#allocation32_spill] sm:$0xff] }
 0x296   :  { %v4133_v6 = vld [vmem:[#allocation44_spill] sm:$0xff] }
 0x297   :  { %v811_v0 = vadd.f32 %v810_v44, %v792_v26  ;;  %v4125_v26 = vld [vmem:[#allocation33_spill] sm:$0xff]  ;;  %v4126_v44 = vld [vmem:[#allocation34_spill] sm:$0xff] }
 0x299   :  { %2381 = vtanh.f32 %v811_v0  ;;  %v4127_v0 = vld [vmem:[#allocation35_spill] sm:$0xff] }
 0x2a3   :  { %v2382_v2 = vpop.eup %2381 }
 0x2a4   :  { %v814_v34 = vmul.f32 %v2382_v2, %v813_v3  ;;  %v4131_v3 = vld [vmem:[#allocation41_spill] sm:$0xff]  ;;  %v4132_v2 = vld [vmem:[#allocation43_spill] sm:$0xff] }
 0x2a6   :  { %v3157_v1 = vadd.f32 %v815_v12, %v814_v34  ;;  %v4119_v34 = vld [vmem:[#allocation27_spill] sm:$0xff]  ;;  %v4122_v12 = vld [vmem:[#allocation30_spill] sm:$0xff] }
 0x2a8   :  { %v817_v23 = vpack.c.bf16 %v3157_v1, %v3157_v1  ;;  %v875_v62 = vrot.slane %v3157_v1, 6 }
 0x2aa   :  { %2125 = vmatmul.mubr.bf16.vlgmr.msra.gmra.mrb[8].mxu1 %v817_v23  ;;  %v878_v31 = vpack.c.bf16 %v875_v62, %v875_v62  ;;  %v4134_v62 = vld [vmem:[#allocation38_spill] sm:$0xff] }
 0x2ab   :  { %927 = vmatpush1.bf16.msra.mxu1 %v2793_v8  ;;  %v3214_v8 = vld [vmem:[#allocation5] ss:$16 sps:$4 sm:$0xff]  }
 0x2ac   :  { %928 = vmatprep.subr.bf16.mxu1 %v2800_v10  ;;  %v882_v18 = vrot.slane %v878_v31, 1  ;;  %v3217_v10 = vld [vmem:[#allocation5 + $0x24] ss:$16 sps:$4 sm:$0xff]  }
 0x2ae   :  { %917 = vmatprep.mubr.bf16.mxu0 %v882_v18  ;;  %958 = vmatprep.mubr.bf16.mxu1 %v882_v18 }
 0x2af   :  { %929 = vmatpush1.bf16.msra.mxu1 %v2802_v11  ;;  %918 = vmatmul.mubr.bf16.vlgmr.msra.gmra.mrb[12].mxu0 %v881_v37  ;;  %v3220_v11 = vld [vmem:[#allocation5 + $0x20] ss:$16 sps:$4 sm:$0xff]  }
 0x2b0   :  { %930 = vmatprep.subr.bf16.mxu1 %v2810_v14  ;;  %2129 = vmatpush3.bf16.msra.mxu0 %v3003_v54  ;;  %v4107_v14 = vld [vmem:[#allocation15_spill] sm:$0xff] }
 0x2b1   :  { %2130 = vmatprep.subr.bf16.mxu0 %v4073_v30  ;;  %2144 = vmatprep.mubr.msk.bf16.mxu0 %vm2693_vm0, %v4073_v30 }
 0x2b3   :  { %931 = vmatpush1.bf16.msra.mxu1 %v2816_v16  ;;  %v4108_v16 = vld [vmem:[#allocation16_spill] sm:$0xff] }
 0x2b4   :  { %932 = vmatprep.subr.bf16.mxu1 %v2820_v17  ;;  %2131 = vmatpush3.bf16.msra.mxu0 %v3009_v52  ;;  %v4109_v17 = vld [vmem:[#allocation17_spill] sm:$0xff] }
 0x2b5   :  { %2132 = vmatprep.subr.bf16.mxu0 %v4073_v30 }
 0x2b7   :  { %933 = vmatpush1.bf16.msra.mxu1 %v2828_v20  ;;  %v4110_v20 = vld [vmem:[#allocation18_spill] sm:$0xff] }
 0x2b8   :  { %934 = vmatprep.subr.bf16.mxu1 %v2832_v21  ;;  %2133 = vmatpush3.bf16.msra.mxu0 %v3013_v60  ;;  %v4111_v21 = vld [vmem:[#allocation19_spill] sm:$0xff] }
 0x2b9   :  { %2134 = vmatprep.subr.bf16.mxu0 %v4073_v30 }
 0x2bb   :  { %935 = vmatpush1.bf16.msra.mxu1 %v2840_v24  ;;  %v4112_v24 = vld [vmem:[#allocation20_spill] sm:$0xff] }
 0x2bc   :  { %936 = vmatprep.subr.bf16.mxu1 %v2844_v25  ;;  %2135 = vmatpush3.bf16.msra.mxu0 %v3017_v63  ;;  %v4113_v25 = vld [vmem:[#allocation21_spill] sm:$0xff] }
 0x2bd   :  { %2136 = vmatprep.subr.bf16.mxu0 %v4073_v30 }
 0x2bf   :  { %937 = vmatpush1.bf16.msra.mxu1 %v2852_v28  ;;  %v4114_v28 = vld [vmem:[#allocation22_spill] sm:$0xff] }
 0x2c0   :  { %938 = vmatprep.subr.bf16.mxu1 %v2856_v29  ;;  %2137 = vmatpush3.bf16.msra.mxu0 %v3021_v58  ;;  %v4115_v29 = vld [vmem:[#allocation23_spill] sm:$0xff] }
 0x2c1   :  { %2138 = vmatprep.subr.bf16.mxu0 %v4073_v30 }
 0x2c3   :  { %939 = vmatpush1.bf16.msra.mxu1 %v2864_v32  ;;  %v4116_v32 = vld [vmem:[#allocation24_spill] sm:$0xff] }
 0x2c4   :  { %940 = vmatprep.subr.bf16.mxu1 %v2868_v33  ;;  %2139 = vmatpush3.bf16.msra.mxu0 %v3024_v55  ;;  %v4118_v33 = vld [vmem:[#allocation26_spill] sm:$0xff] }
 0x2c5   :  { %2140 = vmatprep.subr.bf16.mxu0 %v4073_v30 }
 0x2c7   :  { %941 = vmatpush1.bf16.msra.mxu1 %v2874_v35  ;;  %v4120_v35 = vld [vmem:[#allocation28_spill] sm:$0xff] }
 0x2c8   :  { %942 = vmatprep.subr.bf16.mxu1 %v2885_v38  ;;  %2141 = vmatpush3.bf16.msra.mxu0 %v3030_v50 }
 0x2c9   :  { %2142 = vmatprep.subr.bf16.mxu0 %v4073_v30 }
 0x2cb   :  { %943 = vmatpush1.bf16.msra.mxu1 %v2893_v41 }
 0x2cc   :  { %944 = vmatprep.subr.bf16.mxu1 %v2899_v43  ;;  %2143 = vmatpush3.bf16.msra.mxu0 %v3034_v48 }
 0x2cd   :  { %1099 = vmatprep.subr.bf16.mxu0 %v2791_v7  ;;  %v3211_v7 = vld [vmem:[#allocation5 + $0x4] ss:$16 sps:$4 sm:$0xff]  }
 0x2cf   :  { %945 = vmatpush1.bf16.msra.mxu1 %v2907_v46 }
 0x2d0   :  { %946 = vmatprep.subr.bf16.mxu1 %v2909_v47 }
 0x2d3   :  { %947 = vmatpush1.bf16.msra.mxu1 %v2915_v49 }
 0x2d4   :  { %948 = vmatprep.subr.bf16.mxu1 %v2919_v51 }
 0x2d7   :  { %949 = vmatpush1.bf16.msra.mxu1 %v4074_v36 }
 0x2d8   :  { %950 = vmatprep.subr.bf16.mxu1 %v4075_v19 }
 0x2db   :  { %951 = vmatpush1.bf16.msra.mxu1 %v4076_v13 }
 0x2dc   :  { %952 = vmatprep.subr.bf16.mxu1 %v2947_v61 }
 0x2df   :  { %953 = vmatpush1.bf16.msra.mxu1 %v2953_v39 }
 0x2e0   :  { %954 = vmatprep.subr.bf16.mxu1 %v2957_v53 }
 0x2e3   :  { %955 = vmatpush1.bf16.msra.mxu1 %v2961_v57 }
 0x2e4   :  { %956 = vmatprep.subr.bf16.mxu1 %v2964_v56 }
 0x2e7   :  { %957 = vmatpush1.bf16.msra.mxu1 %v2967_v59 }
 0x2e8   :  { %1058 = vmatprep.subr.bf16.mxu1 %v3211_v7 }
 0x2ea   :  { %959 = vmatmul.mubr.bf16.vlgmr.msra.gmra.mrb[12].mxu1 %v881_v37 }
 0x2eb   :  { %1059 = vmatpush1.bf16.msra.mxu1 %v3214_v8 }
 0x2ec   :  { %1060 = vmatprep.subr.bf16.mxu1 %v3217_v10 }
 0x2ef   :  { %1061 = vmatpush1.bf16.msra.mxu1 %v3220_v11 }
 0x2f0   :  { %1062 = vmatprep.subr.bf16.mxu1 %v2783_v4  ;;  %v4117_v4 = vld [vmem:[#allocation25_spill] sm:$0xff] }
 0x2f3   :  { %1063 = vmatpush1.bf16.msra.mxu1 %v4107_v14 }
 0x2f4   :  { %1064 = vmatprep.subr.bf16.mxu1 %v4108_v16 }
 0x2f7   :  { %1065 = vmatpush1.bf16.msra.mxu1 %v4109_v17 }
 0x2f8   :  { %1066 = vmatprep.subr.bf16.mxu1 %v4110_v20 }
 0x2fb   :  { %1067 = vmatpush1.bf16.msra.mxu1 %v4111_v21 }
 0x2fc   :  { %1068 = vmatprep.subr.bf16.mxu1 %v4112_v24 }
 0x2ff   :  { %1069 = vmatpush1.bf16.msra.mxu1 %v4113_v25  ;;  %v4136_v25 = vld [vmem:[#allocation45_spill] sm:$0xff] }
 0x300   :  { %1070 = vmatprep.subr.bf16.mxu1 %v4114_v28 }
 0x303   :  { %1071 = vmatpush1.bf16.msra.mxu1 %v4115_v29 }
 0x304   :  { %1072 = vmatprep.subr.bf16.mxu1 %v4116_v32  ;;  %v4137_v32 = vld [vmem:[#allocation46_spill] sm:$0xff] }
 0x307   :  { %1073 = vmatpush1.bf16.msra.mxu1 %v4117_v4 }
 0x308   :  { %1074 = vmatprep.subr.bf16.mxu1 %v4118_v33 }
 0x30b   :  { %1075 = vmatpush1.bf16.msra.mxu1 %v4119_v34 }
 0x30c   :  { %1076 = vmatprep.subr.bf16.mxu1 %v4120_v35 }
 0x30f   :  { %1077 = vmatpush1.bf16.msra.mxu1 %v4121_v40 }
 0x310   :  { %1078 = vmatprep.subr.bf16.mxu1 %v4122_v12 }
 0x313   :  { %1079 = vmatpush1.bf16.msra.mxu1 %v4123_v9 }
 0x314   :  { %1080 = vmatprep.subr.bf16.mxu1 %v4124_v22 }
 0x317   :  { %1081 = vmatpush1.bf16.msra.mxu1 %v4125_v26 }
 0x318   :  { %1082 = vmatprep.subr.bf16.mxu1 %v4126_v44 }
 0x31b   :  { %1083 = vmatpush1.bf16.msra.mxu1 %v4127_v0 }
 0x31c   :  { %1084 = vmatprep.subr.bf16.mxu1 %v4128_v15 }
 0x31f   :  { %1085 = vmatpush1.bf16.msra.mxu1 %v4129_v42 }
 0x320   :  { %1086 = vmatprep.subr.bf16.mxu1 %v4130_v45 }
 0x323   :  { %1087 = vmatpush1.bf16.msra.mxu1 %v4131_v3 }
 0x324   :  { %1088 = vmatprep.subr.bf16.mxu1 %v4132_v2 }
 0x327   :  { %1089 = vmatpush1.bf16.msra.mxu1 %v4133_v6 }
 0x328   :  { %2148 = vmatprep.subr.bf16.mxu1 %v4073_v30 }
 0x37d   :  { %v852_v23 = vpop.f32.mrb[8].mxu1 }
 0x37e   :  { %v3253_v31 = vadd.f32 %v852_v23, %v4134_v62  ;;  %v2126_v37 = vpop.f32.mrb[9].mxu1 }
 0x37f   :  { %v855_v18 = vpop.f32.mrb[10].mxu1 }
 0x380   :  { %4135 = vst [vmem:[#allocation42_spill] sm:$0xff] %v3253_v31  ;;  %v2127_v14 = vpop.f32.mrb[11].mxu1  ;;  %v858_v16 = vsel %vm686_vm1, %v3253_v31, -inf }
 0x381   :  { %859 = vmax.xlane.f32.xlu0 %v858_v16  ;;  %v1040_v14 = vld [vmem:[#allocation2] sm:$0x2] }
 0x382   :  { %v919_v17 = vpop.f32.mrb[12].mxu0  ;;  %v1041_v16 = vunpack.c.l.bf16 %v1040_v14  ;;  %v3299_v14 = vld [vmem:[#allocation5 + $0x8c] ss:$16 sps:$4 sm:$0xff]  }
 0x383   :  { %v921_v20 = vpop.f32.mrb[13].mxu0  ;;  %v920_v28 = vadd.f32 %v919_v17, %v4136_v25 }
 0x384   :  { %v923_v21 = vpop.f32.mrb[14].mxu0  ;;  %v922_v4 = vadd.f32 %v921_v20, %v4137_v32  ;;  %v1042_v20 = vmax.f32 %v1041_v16, 0.0  ;;  %v3303_v16 = vld [vmem:[#allocation5 + $0x88] ss:$16 sps:$4 sm:$0xff]  }
 0x385   :  { %v924_v24 = vpop.f32.mrb[15].mxu0  ;;  %v2004_v29 = vmul.f32 -1.442695, %v920_v28 }
 0x386   :  { %v2005_v34 = vmul.f32 -1.442695, %v922_v4  ;;  %v1046_v4 = vpack.c.bf16 %v1042_v20, %v1042_v20  ;;  %v3311_v20 = vld [vmem:[#allocation5 + $0xa8] ss:$16 sps:$4 sm:$0xff]  }
 0x387   :  { %2383 = vpow2.f32 %v2004_v29 }
 0x388   :  { %2385 = vpow2.f32 %v2005_v34 }
 0x391   :  { %v2384_v33 = vpop.eup %2383 }
 0x392   :  { %v970_v35 = vadd.f32 1.0, %v2384_v33  ;;  %v2386_v40 = vpop.eup %2385 }
 0x393   :  { %v976_v26 = vadd.f32 1.0, %v2386_v40  ;;  %v3267_v40 = vshrl.u32 %v1046_v4, 16  ;;  %v3338_v4 = vld [vmem:[#allocation5 + $0xc] ss:$16 sps:$4 sm:$0xff]  }
 0x394   :  { %2387 = vrcp.f32 %v970_v35 }
 0x395   :  { %2389 = vrcp.f32 %v976_v26  ;;  %v1051_v26 = vrot.slane %v3267_v40, 1  ;;  %v3413_v40 = vld [vmem:[#allocation5 + $0x164] ss:$16 sps:$4 sm:$0xff]  }
 0x396   :  { %4155 = vst [vmem:[#allocation32_spill] sm:$0xff] %v3413_v40 }
 0x39e   :  { %v2388_v9 = vpop.eup %2387 }
 0x39f   :  { %v2390_v17 = vpop.eup %2389 }
 0x3a0   :  { %v982_v21 = vsub.f32 1.0, %v2390_v17  ;;  %v984_v29 = vmul.f32 %v2390_v17, %v3157_v1  ;;  %v3307_v17 = vld [vmem:[#allocation5 + $0xac] ss:$16 sps:$4 sm:$0xff]  }
 0x3bd   :  { %v960_v12 = vpop.f32.mrb[12].mxu1 }
 0x3be   :  { %v962_v22 = vpop.f32.mrb[13].mxu1  ;;  %v961_v23 = vadd.f32 %v960_v12, %v3050_v27 }
 0x3bf   :  { %v963_v44 = vadd.f32 %v962_v22, %v3048_v5  ;;  %v964_v0 = vpop.f32.mrb[14].mxu1  ;;  %v3272_v22 = vld [vmem:[#allocation5 + $0x2c] ss:$16 sps:$4 sm:$0xff]  }
 0x3c0   :  { %v965_v15 = vpop.f32.mrb[15].mxu1  ;;  %v3276_v0 = vld [vmem:[#allocation5 + $0x28] ss:$16 sps:$4 sm:$0xff]  }
 0x3c1   :  { %v979_v37 = vmul.f32 %v2388_v9, %v963_v44  ;;  %v3269_v9 = vld [vmem:[#allocation5 + $0x8] ss:$16 sps:$4 sm:$0xff]   ;;  %v3281_v15 = vld [vmem:[#allocation5 + $0x4c] ss:$16 sps:$4 sm:$0xff]  }
 0x3c3   :  { %v980_v18 = vadd.f32 %v979_v37, %v961_v23  ;;  %v3287_v23 = vld [vmem:[#allocation5 + $0x48] ss:$16 sps:$4 sm:$0xff]   ;;  %v3291_v37 = vld [vmem:[#allocation5 + $0x6c] ss:$16 sps:$4 sm:$0xff]  }
 0x3c5   :  { %2391 = vtanh.f32 %v980_v18  ;;  %v3295_v18 = vld [vmem:[#allocation5 + $0x68] ss:$16 sps:$4 sm:$0xff]  }
 0x3cf   :  { %v2392_v24 = vpop.eup %2391 }
 0x3d0   :  { %v983_v28 = vmul.f32 %v2392_v24, %v982_v21  ;;  %v3315_v21 = vld [vmem:[#allocation5 + $0xcc] ss:$16 sps:$4 sm:$0xff]   ;;  %v3319_v24 = vld [vmem:[#allocation5 + $0xc8] ss:$16 sps:$4 sm:$0xff]  }
 0x3d2   :  { %v3262_v33 = vadd.f32 %v984_v29, %v983_v28  ;;  %v3323_v28 = vld [vmem:[#allocation5 + $0xec] ss:$16 sps:$4 sm:$0xff]   ;;  %v3327_v29 = vld [vmem:[#allocation5 + $0xe8] ss:$16 sps:$4 sm:$0xff]  }
 0x3d4   :  { %v986_v34 = vpack.c.bf16 %v3262_v33, %v3262_v33  ;;  %v1044_v35 = vrot.slane %v3262_v33, 5 }
 0x3d6   :  { %2145 = vmatmul.mubr.bf16.vlgmr.msra.gmra.mrb[16].mxu0 %v986_v34  ;;  %v1047_v12 = vpack.c.bf16 %v1044_v35, %v1044_v35  ;;  %v3407_v34 = vld [vmem:[#allocation5 + $0x144] ss:$16 sps:$4 sm:$0xff]   ;;  %v3410_v35 = vld [vmem:[#allocation5 + $0x140] ss:$16 sps:$4 sm:$0xff]  }
 0x3d7   :  { %1100 = vmatpush1.bf16.msra.mxu0 %v3269_v9  ;;  %4153 = vst [vmem:[#allocation30_spill] sm:$0xff] %v3407_v34  ;;  %4154 = vst [vmem:[#allocation31_spill] sm:$0xff] %v3410_v35 }
 0x3d8   :  { %1101 = vmatprep.subr.bf16.mxu0 %v3272_v22  ;;  %v1053_v1 = vshrl.u32 %v1047_v12, 16  ;;  %v3416_v12 = vld [vmem:[#allocation5 + $0x160] ss:$16 sps:$4 sm:$0xff]  }
 0x3d9   :  { %4156 = vst [vmem:[#allocation33_spill] sm:$0xff] %v3416_v12 }
 0x3da   :  { %v1055_v44 = vrot.slane %v1053_v1, 1  ;;  %v3419_v1 = vld [vmem:[#allocation5 + $0x184] ss:$16 sps:$4 sm:$0xff]  }
 0x3db   :  { %1102 = vmatpush1.bf16.msra.mxu0 %v3276_v0  ;;  %4157 = vst [vmem:[#allocation34_spill] sm:$0xff] %v3419_v1 }
 0x3dc   :  { %1090 = vmatprep.mubr.bf16.mxu1 %v1055_v44  ;;  %1131 = vmatprep.mubr.bf16.mxu0 %v1055_v44  ;;  %v3425_v44 = vld [vmem:[#allocation5 + $0x1a4] ss:$16 sps:$4 sm:$0xff]  }
 0x3dd   :  { %1091 = vmatmul.mubr.bf16.vlgmr.msra.gmra.mrb[16].mxu1 %v1051_v26  ;;  %1103 = vmatprep.subr.bf16.mxu0 %v3281_v15  ;;  %4159 = vst [vmem:[#allocation36_spill] sm:$0xff] %v3425_v44 }
 0x3de   :  { %2149 = vmatpush3.bf16.msra.mxu1 %v3003_v54  ;;  %2164 = vmatprep.mubr.msk.bf16.mxu1 %vm2693_vm0, %v4073_v30 }
 0x3df   :  { %1104 = vmatpush1.bf16.msra.mxu0 %v3287_v23  ;;  %2150 = vmatprep.subr.bf16.mxu1 %v4073_v30 }
 0x3e0   :  { %1105 = vmatprep.subr.bf16.mxu0 %v3291_v37 }
 0x3e2   :  { %2151 = vmatpush3.bf16.msra.mxu1 %v3009_v52 }
 0x3e3   :  { %1106 = vmatpush1.bf16.msra.mxu0 %v3295_v18  ;;  %2152 = vmatprep.subr.bf16.mxu1 %v4073_v30 }
 0x3e4   :  { %1107 = vmatprep.subr.bf16.mxu0 %v3299_v14 }
 0x3e6   :  { %2153 = vmatpush3.bf16.msra.mxu1 %v3013_v60 }
 0x3e7   :  { %1108 = vmatpush1.bf16.msra.mxu0 %v3303_v16  ;;  %2154 = vmatprep.subr.bf16.mxu1 %v4073_v30 }
 0x3e8   :  { %1109 = vmatprep.subr.bf16.mxu0 %v3307_v17 }
 0x3ea   :  { %2155 = vmatpush3.bf16.msra.mxu1 %v3017_v63 }
 0x3eb   :  { %1110 = vmatpush1.bf16.msra.mxu0 %v3311_v20  ;;  %2156 = vmatprep.subr.bf16.mxu1 %v4073_v30 }
 0x3ec   :  { %1111 = vmatprep.subr.bf16.mxu0 %v3315_v21 }
 0x3ee   :  { %2157 = vmatpush3.bf16.msra.mxu1 %v3021_v58 }
 0x3ef   :  { %1112 = vmatpush1.bf16.msra.mxu0 %v3319_v24  ;;  %2158 = vmatprep.subr.bf16.mxu1 %v4073_v30 }
 0x3f0   :  { %1113 = vmatprep.subr.bf16.mxu0 %v3323_v28 }
 0x3f2   :  { %2159 = vmatpush3.bf16.msra.mxu1 %v3024_v55 }
 0x3f3   :  { %1114 = vmatpush1.bf16.msra.mxu0 %v3327_v29  ;;  %2160 = vmatprep.subr.bf16.mxu1 %v4073_v30 }
 0x3f4   :  { %1115 = vmatprep.subr.bf16.mxu0 %v2885_v38  ;;  %v3359_v38 = vld [vmem:[#allocation5 + $0x44] ss:$16 sps:$4 sm:$0xff]  }
 0x3f6   :  { %2161 = vmatpush3.bf16.msra.mxu1 %v3030_v50 }
 0x3f7   :  { %1116 = vmatpush1.bf16.msra.mxu0 %v2893_v41  ;;  %2162 = vmatprep.subr.bf16.mxu1 %v4073_v30  ;;  %v3362_v41 = vld [vmem:[#allocation5 + $0x40] ss:$16 sps:$4 sm:$0xff]  }
 0x3f8   :  { %1117 = vmatprep.subr.bf16.mxu0 %v2899_v43  ;;  %4138 = vst [vmem:[#allocation15_spill] sm:$0xff] %v3362_v41  ;;  %v3365_v43 = vld [vmem:[#allocation5 + $0x64] ss:$16 sps:$4 sm:$0xff]  }
 0x3f9   :  { %4139 = vst [vmem:[#allocation16_spill] sm:$0xff] %v3365_v43 }
 0x3fa   :  { %2163 = vmatpush3.bf16.msra.mxu1 %v3034_v48 }
 0x3fb   :  { %1118 = vmatpush1.bf16.msra.mxu0 %v2907_v46  ;;  %1268 = vmatprep.subr.bf16.mxu1 %v3338_v4  ;;  %v3368_v46 = vld [vmem:[#allocation5 + $0x60] ss:$16 sps:$4 sm:$0xff]  }
 0x3fc   :  { %1119 = vmatprep.subr.bf16.mxu0 %v2909_v47  ;;  %4140 = vst [vmem:[#allocation17_spill] sm:$0xff] %v3368_v46  ;;  %v3371_v47 = vld [vmem:[#allocation5 + $0x84] ss:$16 sps:$4 sm:$0xff]  }
 0x3fd   :  { %4141 = vst [vmem:[#allocation18_spill] sm:$0xff] %v3371_v47 }
 0x3ff   :  { %1120 = vmatpush1.bf16.msra.mxu0 %v2915_v49  ;;  %v3374_v49 = vld [vmem:[#allocation5 + $0x80] ss:$16 sps:$4 sm:$0xff]  }
 0x400   :  { %1121 = vmatprep.subr.bf16.mxu0 %v2919_v51  ;;  %4142 = vst [vmem:[#allocation19_spill] sm:$0xff] %v3374_v49  ;;  %v3377_v51 = vld [vmem:[#allocation5 + $0xa4] ss:$16 sps:$4 sm:$0xff]  }
 0x401   :  { %4143 = vst [vmem:[#allocation20_spill] sm:$0xff] %v3377_v51 }
 0x403   :  { %1122 = vmatpush1.bf16.msra.mxu0 %v4074_v36  ;;  %v3398_v36 = vld [vmem:[#allocation5 + $0x100] ss:$16 sps:$4 sm:$0xff]  }
 0x404   :  { %1123 = vmatprep.subr.bf16.mxu0 %v4075_v19  ;;  %4150 = vst [vmem:[#allocation27_spill] sm:$0xff] %v3398_v36  ;;  %v3401_v19 = vld [vmem:[#allocation5 + $0x124] ss:$16 sps:$4 sm:$0xff]  }
 0x405   :  { %4151 = vst [vmem:[#allocation28_spill] sm:$0xff] %v3401_v19 }
 0x407   :  { %1124 = vmatpush1.bf16.msra.mxu0 %v4076_v13  ;;  %v3404_v13 = vld [vmem:[#allocation5 + $0x120] ss:$16 sps:$4 sm:$0xff]  }
 0x408   :  { %1125 = vmatprep.subr.bf16.mxu0 %v2947_v61  ;;  %v3386_v61 = vld [vmem:[#allocation5 + $0xc0] ss:$16 sps:$4 sm:$0xff]   ;;  %4152 = vst [vmem:[#allocation29_spill] sm:$0xff] %v3404_v13 }
 0x409   :  { %4146 = vst [vmem:[#allocation23_spill] sm:$0xff] %v3386_v61 }
 0x40b   :  { %1126 = vmatpush1.bf16.msra.mxu0 %v2953_v39  ;;  %v3389_v39 = vld [vmem:[#allocation5 + $0xe4] ss:$16 sps:$4 sm:$0xff]  }
 0x40c   :  { %1127 = vmatprep.subr.bf16.mxu0 %v2957_v53  ;;  %4147 = vst [vmem:[#allocation24_spill] sm:$0xff] %v3389_v39  ;;  %v3392_v53 = vld [vmem:[#allocation5 + $0xe0] ss:$16 sps:$4 sm:$0xff]  }
 0x40d   :  { %4148 = vst [vmem:[#allocation25_spill] sm:$0xff] %v3392_v53 }
 0x40f   :  { %1128 = vmatpush1.bf16.msra.mxu0 %v2961_v57  ;;  %v3395_v57 = vld [vmem:[#allocation5 + $0x104] ss:$16 sps:$4 sm:$0xff]  }
 0x410   :  { %1129 = vmatprep.subr.bf16.mxu0 %v2964_v56  ;;  %v3380_v56 = vld [vmem:[#allocation5 + $0xa0] ss:$16 sps:$4 sm:$0xff]   ;;  %4149 = vst [vmem:[#allocation26_spill] sm:$0xff] %v3395_v57 }
 0x411   :  { %4144 = vst [vmem:[#allocation21_spill] sm:$0xff] %v3380_v56 }
 0x413   :  { %1130 = vmatpush1.bf16.msra.mxu0 %v2967_v59  ;;  %v3383_v59 = vld [vmem:[#allocation5 + $0xc4] ss:$16 sps:$4 sm:$0xff]  }
 0x414   :  { %1227 = vmatprep.subr.bf16.mxu0 %v3211_v7  ;;  %4145 = vst [vmem:[#allocation22_spill] sm:$0xff] %v3383_v59 }
 0x416   :  { %1132 = vmatmul.mubr.bf16.vlgmr.msra.gmra.mrb[20].mxu0 %v1051_v26  ;;  %v3422_v26 = vld [vmem:[#allocation5 + $0x180] ss:$16 sps:$4 sm:$0xff]  }
 0x417   :  { %1228 = vmatpush1.bf16.msra.mxu0 %v3214_v8  ;;  %4158 = vst [vmem:[#allocation35_spill] sm:$0xff] %v3422_v26 }
 0x418   :  { %1229 = vmatprep.subr.bf16.mxu0 %v3217_v10 }
 0x41b   :  { %1230 = vmatpush1.bf16.msra.mxu0 %v3220_v11 }
 0x41c   :  { %1231 = vmatprep.subr.bf16.mxu0 %v3359_v38 }
 0x41f   :  { %1232 = vmatpush1.bf16.msra.mxu0 %v3362_v41 }
 0x420   :  { %1233 = vmatprep.subr.bf16.mxu0 %v3365_v43 }
 0x423   :  { %1234 = vmatpush1.bf16.msra.mxu0 %v3368_v46 }
 0x424   :  { %1235 = vmatprep.subr.bf16.mxu0 %v3371_v47 }
 0x427   :  { %1236 = vmatpush1.bf16.msra.mxu0 %v3374_v49 }
 0x428   :  { %1237 = vmatprep.subr.bf16.mxu0 %v3377_v51 }
 0x42b   :  { %1238 = vmatpush1.bf16.msra.mxu0 %v3380_v56 }
 0x42c   :  { %1239 = vmatprep.subr.bf16.mxu0 %v3383_v59 }
 0x42f   :  { %1240 = vmatpush1.bf16.msra.mxu0 %v3386_v61 }
 0x430   :  { %1241 = vmatprep.subr.bf16.mxu0 %v3389_v39 }
 0x433   :  { %1242 = vmatpush1.bf16.msra.mxu0 %v3392_v53 }
 0x434   :  { %1243 = vmatprep.subr.bf16.mxu0 %v3395_v57 }
 0x437   :  { %1244 = vmatpush1.bf16.msra.mxu0 %v3398_v36 }
 0x438   :  { %1245 = vmatprep.subr.bf16.mxu0 %v3401_v19 }
 0x43b   :  { %1246 = vmatpush1.bf16.msra.mxu0 %v3404_v13 }
 0x43c   :  { %1247 = vmatprep.subr.bf16.mxu0 %v3407_v34 }
 0x43f   :  { %1248 = vmatpush1.bf16.msra.mxu0 %v3410_v35 }
 0x440   :  { %1249 = vmatprep.subr.bf16.mxu0 %v3413_v40 }
 0x443   :  { %1250 = vmatpush1.bf16.msra.mxu0 %v3416_v12 }
 0x444   :  { %1251 = vmatprep.subr.bf16.mxu0 %v3419_v1 }
 0x447   :  { %1252 = vmatpush1.bf16.msra.mxu0 %v3422_v26 }
 0x448   :  { %1253 = vmatprep.subr.bf16.mxu0 %v3425_v44 }
 0x44b   :  { %1254 = vmatpush1.bf16.msra.mxu0 %v4129_v42 }
 0x44c   :  { %1255 = vmatprep.subr.bf16.mxu0 %v4130_v45 }
 0x44f   :  { %1256 = vmatpush1.bf16.msra.mxu0 %v4131_v3 }
 0x450   :  { %1257 = vmatprep.subr.bf16.mxu0 %v4132_v2 }
 0x453   :  { %1258 = vmatpush1.bf16.msra.mxu0 %v4133_v6 }
 0x454   :  { %2168 = vmatprep.subr.bf16.mxu0 %v4073_v30 }
 0x4a9   :  { %v1021_v31 = vpop.f32.mrb[16].mxu0 }
 0x4aa   :  { %v3435_v1 = vadd.f32 %v1021_v31, %v4134_v62  ;;  %v2146_v26 = vpop.f32.mrb[17].mxu0 }
 0x4ab   :  { %v1024_v12 = vpop.f32.mrb[18].mxu0 }
 0x4ac   :  { %4160 = vst [vmem:[#allocation37_spill] sm:$0xff] %v3435_v1  ;;  %v2147_v40 = vpop.f32.mrb[19].mxu0  ;;  %v1027_v42 = vsel %vm686_vm1, %v3435_v1, -inf }
 0x4ad   :  { %1028 = vmax.xlane.f32.xlu1 %v1027_v42 }
 0x4b0   :  { %v1092_v45 = vpop.f32.mrb[16].mxu1 }
 0x4b1   :  { %v1094_v44 = vpop.f32.mrb[17].mxu1  ;;  %v1093_v2 = vadd.f32 %v1092_v45, %v4136_v25 }
 0x4b2   :  { %v1096_v3 = vpop.f32.mrb[18].mxu1  ;;  %v1095_v34 = vadd.f32 %v1094_v44, %v4137_v32  ;;  %v1213_v44 = vld [vmem:[#allocation2] sm:$0x4] }
 0x4b3   :  { %v1097_v35 = vpop.f32.mrb[19].mxu1  ;;  %v2006_v6 = vmul.f32 -1.442695, %v1093_v2 }
 0x4b4   :  { %v2007_v31 = vmul.f32 -1.442695, %v1095_v34  ;;  %v1214_v34 = vunpack.c.l.bf16 %v1213_v44  ;;  %v4161_v44 = vld [vmem:[#allocation27_spill] sm:$0xff] }
 0x4b5   :  { %2393 = vpow2.f32 %v2006_v6 }
 0x4b6   :  { %2395 = vpow2.f32 %v2007_v31  ;;  %v1215_v32 = vmax.f32 %v1214_v34, 0.0  ;;  %v4162_v34 = vld [vmem:[#allocation28_spill] sm:$0xff] }
 0x4bf   :  { %v2394_v13 = vpop.eup %2393 }
 0x4c0   :  { %v1143_v62 = vadd.f32 1.0, %v2394_v13  ;;  %v2396_v40 = vpop.eup %2395 }
 0x4c1   :  { %v1149_v42 = vadd.f32 1.0, %v2396_v40 }
 0x4c2   :  { %2397 = vrcp.f32 %v1143_v62 }
 0x4c3   :  { %2399 = vrcp.f32 %v1149_v42 }
 0x4cc   :  { %v2398_v26 = vpop.eup %2397 }
 0x4cd   :  { %v2400_v13 = vpop.eup %2399 }
 0x4ce   :  { %v1155_v31 = vsub.f32 1.0, %v2400_v13  ;;  %v1157_v36 = vmul.f32 %v2400_v13, %v3262_v33  ;;  %v3515_v33 = vld [vmem:[#allocation5 + $0x1ac] ss:$16 sps:$4 sm:$0xff]  }
 0x4cf   :  { %v4163_v13 = vld [vmem:[#allocation29_spill] sm:$0xff] }
 0x4e9   :  { %v1133_v12 = vpop.f32.mrb[20].mxu0 }
 0x4ea   :  { %v1135_v1 = vpop.f32.mrb[21].mxu0  ;;  %v1134_v45 = vadd.f32 %v1133_v12, %v3050_v27 }
 0x4eb   :  { %v1136_v19 = vadd.f32 %v1135_v1, %v3048_v5  ;;  %v1137_v3 = vpop.f32.mrb[22].mxu0  ;;  %v1219_v1 = vpack.c.bf16 %v1215_v32, %v1215_v32  ;;  %v3512_v32 = vld [vmem:[#allocation5 + $0x188] ss:$16 sps:$4 sm:$0xff]  }
 0x4ec   :  { %v1138_v35 = vpop.f32.mrb[23].mxu0 }
 0x4ed   :  { %v1152_v2 = vmul.f32 %v2398_v26, %v1136_v19  ;;  %v3450_v26 = vrot.slane %v1219_v1, 2  ;;  %v3521_v35 = vld [vmem:[#allocation5 + $0x1cc] ss:$16 sps:$4 sm:$0xff]   ;;  %v4166_v1 = vld [vmem:[#allocation32_spill] sm:$0xff] }
 0x4ef   :  { %v1153_v6 = vadd.f32 %v1152_v2, %v1134_v45  ;;  %v3524_v45 = vld [vmem:[#allocation5 + $0x1c8] ss:$16 sps:$4 sm:$0xff]   ;;  %v3527_v2 = vld [vmem:[#allocation5 + $0x1ec] ss:$16 sps:$4 sm:$0xff]  }
 0x4f1   :  { %2401 = vtanh.f32 %v1153_v6  ;;  %v3530_v6 = vld [vmem:[#allocation5 + $0x1e8] ss:$16 sps:$4 sm:$0xff]  }
 0x4fb   :  { %v2402_v62 = vpop.eup %2401 }
 0x4fc   :  { %v1156_v25 = vmul.f32 %v2402_v62, %v1155_v31  ;;  %v4164_v31 = vld [vmem:[#allocation30_spill] sm:$0xff]  ;;  %v4165_v62 = vld [vmem:[#allocation31_spill] sm:$0xff] }
 0x4fe   :  { %v3444_v40 = vadd.f32 %v1157_v36, %v1156_v25  ;;  %v3506_v25 = vld [vmem:[#allocation5 + $0x168] ss:$16 sps:$4 sm:$0xff]  }
 0x4ff   :  { %v3518_v36 = vld [vmem:[#allocation5 + $0x1a8] ss:$16 sps:$4 sm:$0xff]  }
 0x500   :  { %v1159_v3 = vpack.c.bf16 %v3444_v40, %v3444_v40  ;;  %v1217_v19 = vrot.slane %v3444_v40, 4 }
 0x502   :  { %2165 = vmatmul.mubr.bf16.vlgmr.msra.gmra.mrb[20].mxu1 %v1159_v3  ;;  %v1220_v12 = vpack.c.bf16 %v1217_v19, %v1217_v19  ;;  %v4167_v3 = vld [vmem:[#allocation33_spill] sm:$0xff]  ;;  %v4168_v19 = vld [vmem:[#allocation34_spill] sm:$0xff] }
 0x503   :  { %1269 = vmatpush1.bf16.msra.mxu1 %v3269_v9 }
 0x504   :  { %1270 = vmatprep.subr.bf16.mxu1 %v3272_v22  ;;  %v1224_v42 = vrot.slane %v1220_v12, 2  ;;  %v4169_v12 = vld [vmem:[#allocation35_spill] sm:$0xff] }
 0x506   :  { %1259 = vmatprep.mubr.bf16.mxu0 %v1224_v42  ;;  %1300 = vmatprep.mubr.bf16.mxu1 %v1224_v42  ;;  %v3561_v42 = vld [vmem:[#allocation5 + $0x1a0] ss:$16 sps:$4 sm:$0xff]  }
 0x507   :  { %1271 = vmatpush1.bf16.msra.mxu1 %v3276_v0  ;;  %1260 = vmatmul.mubr.bf16.vlgmr.msra.gmra.mrb[24].mxu0 %v3450_v26  ;;  %4171 = vst [vmem:[#allocation39_spill] sm:$0xff] %v3561_v42 }
 0x508   :  { %1272 = vmatprep.subr.bf16.mxu1 %v3281_v15  ;;  %2169 = vmatpush3.bf16.msra.mxu0 %v3003_v54  ;;  %v3503_v54 = vld [vmem:[#allocation5 + $0x16c] ss:$16 sps:$4 sm:$0xff]  }
 0x509   :  { %2170 = vmatprep.subr.bf16.mxu0 %v4073_v30  ;;  %2184 = vmatprep.mubr.msk.bf16.mxu0 %vm2693_vm0, %v4073_v30 }
 0x50b   :  { %1273 = vmatpush1.bf16.msra.mxu1 %v3287_v23 }
 0x50c   :  { %1274 = vmatprep.subr.bf16.mxu1 %v3291_v37  ;;  %2171 = vmatpush3.bf16.msra.mxu0 %v3009_v52  ;;  %v3481_v52 = vld [vmem:[#allocation5 + $0x10c] ss:$16 sps:$4 sm:$0xff]  }
 0x50d   :  { %2172 = vmatprep.subr.bf16.mxu0 %v4073_v30 }
 0x50f   :  { %1275 = vmatpush1.bf16.msra.mxu1 %v3295_v18 }
 0x510   :  { %1276 = vmatprep.subr.bf16.mxu1 %v3299_v14  ;;  %2173 = vmatpush3.bf16.msra.mxu0 %v3013_v60  ;;  %v3489_v60 = vld [vmem:[#allocation5 + $0x12c] ss:$16 sps:$4 sm:$0xff]  }
 0x511   :  { %2174 = vmatprep.subr.bf16.mxu0 %v4073_v30 }
 0x513   :  { %1277 = vmatpush1.bf16.msra.mxu1 %v3303_v16 }
 0x514   :  { %1278 = vmatprep.subr.bf16.mxu1 %v3307_v17  ;;  %2175 = vmatpush3.bf16.msra.mxu0 %v3017_v63  ;;  %v3497_v63 = vld [vmem:[#allocation5 + $0x14c] ss:$16 sps:$4 sm:$0xff]  }
 0x515   :  { %2176 = vmatprep.subr.bf16.mxu0 %v4073_v30 }
 0x517   :  { %1279 = vmatpush1.bf16.msra.mxu1 %v3311_v20 }
 0x518   :  { %1280 = vmatprep.subr.bf16.mxu1 %v3315_v21  ;;  %2177 = vmatpush3.bf16.msra.mxu0 %v3021_v58  ;;  %v3486_v58 = vld [vmem:[#allocation5 + $0x108] ss:$16 sps:$4 sm:$0xff]  }
 0x519   :  { %2178 = vmatprep.subr.bf16.mxu0 %v4073_v30 }
 0x51b   :  { %1281 = vmatpush1.bf16.msra.mxu1 %v3319_v24 }
 0x51c   :  { %1282 = vmatprep.subr.bf16.mxu1 %v3323_v28  ;;  %2179 = vmatpush3.bf16.msra.mxu0 %v3024_v55  ;;  %v3494_v55 = vld [vmem:[#allocation5 + $0x128] ss:$16 sps:$4 sm:$0xff]  }
 0x51d   :  { %2180 = vmatprep.subr.bf16.mxu0 %v4073_v30 }
 0x51f   :  { %1283 = vmatpush1.bf16.msra.mxu1 %v3327_v29 }
 0x520   :  { %1284 = vmatprep.subr.bf16.mxu1 %v3481_v52  ;;  %2181 = vmatpush3.bf16.msra.mxu0 %v3030_v50  ;;  %v3500_v50 = vld [vmem:[#allocation5 + $0x148] ss:$16 sps:$4 sm:$0xff]  }
 0x521   :  { %2182 = vmatprep.subr.bf16.mxu0 %v4073_v30 }
 0x523   :  { %1285 = vmatpush1.bf16.msra.mxu1 %v3486_v58 }
 0x524   :  { %1286 = vmatprep.subr.bf16.mxu1 %v3489_v60  ;;  %2183 = vmatpush3.bf16.msra.mxu0 %v3034_v48  ;;  %v3509_v48 = vld [vmem:[#allocation5 + $0x18c] ss:$16 sps:$4 sm:$0xff]  }
 0x525   :  { %1441 = vmatprep.subr.bf16.mxu0 %v3338_v4 }
 0x527   :  { %1287 = vmatpush1.bf16.msra.mxu1 %v3494_v55 }
 0x528   :  { %1288 = vmatprep.subr.bf16.mxu1 %v3497_v63 }
 0x52b   :  { %1289 = vmatpush1.bf16.msra.mxu1 %v3500_v50 }
 0x52c   :  { %1290 = vmatprep.subr.bf16.mxu1 %v3503_v54 }
 0x52f   :  { %1291 = vmatpush1.bf16.msra.mxu1 %v3506_v25 }
 0x530   :  { %1292 = vmatprep.subr.bf16.mxu1 %v3509_v48 }
 0x533   :  { %1293 = vmatpush1.bf16.msra.mxu1 %v3512_v32 }
 0x534   :  { %1294 = vmatprep.subr.bf16.mxu1 %v3515_v33 }
 0x537   :  { %1295 = vmatpush1.bf16.msra.mxu1 %v3518_v36 }
 0x538   :  { %1296 = vmatprep.subr.bf16.mxu1 %v3521_v35 }
 0x53b   :  { %1297 = vmatpush1.bf16.msra.mxu1 %v3524_v45 }
 0x53c   :  { %1298 = vmatprep.subr.bf16.mxu1 %v3527_v2 }
 0x53f   :  { %1299 = vmatpush1.bf16.msra.mxu1 %v3530_v6 }
 0x540   :  { %1400 = vmatprep.subr.bf16.mxu1 %v3211_v7 }
 0x542   :  { %1301 = vmatmul.mubr.bf16.vlgmr.msra.gmra.mrb[24].mxu1 %v3450_v26  ;;  %v4170_v26 = vld [vmem:[#allocation36_spill] sm:$0xff] }
 0x543   :  { %1401 = vmatpush1.bf16.msra.mxu1 %v3214_v8 }
 0x544   :  { %1402 = vmatprep.subr.bf16.mxu1 %v3217_v10 }
 0x547   :  { %1403 = vmatpush1.bf16.msra.mxu1 %v3220_v11 }
 0x548   :  { %1404 = vmatprep.subr.bf16.mxu1 %v3359_v38 }
 0x54b   :  { %1405 = vmatpush1.bf16.msra.mxu1 %v3362_v41 }
 0x54c   :  { %1406 = vmatprep.subr.bf16.mxu1 %v3365_v43 }
 0x54f   :  { %1407 = vmatpush1.bf16.msra.mxu1 %v3368_v46 }
 0x550   :  { %1408 = vmatprep.subr.bf16.mxu1 %v3371_v47 }
 0x553   :  { %1409 = vmatpush1.bf16.msra.mxu1 %v3374_v49 }
 0x554   :  { %1410 = vmatprep.subr.bf16.mxu1 %v3377_v51 }
 0x557   :  { %1411 = vmatpush1.bf16.msra.mxu1 %v3380_v56 }
 0x558   :  { %1412 = vmatprep.subr.bf16.mxu1 %v3383_v59 }
 0x55b   :  { %1413 = vmatpush1.bf16.msra.mxu1 %v3386_v61  ;;  %v4179_v61 = vld [vmem:[#allocation46_spill] sm:$0xff] }
 0x55c   :  { %1414 = vmatprep.subr.bf16.mxu1 %v3389_v39 }
 0x55f   :  { %1415 = vmatpush1.bf16.msra.mxu1 %v3392_v53  ;;  %v4178_v53 = vld [vmem:[#allocation45_spill] sm:$0xff] }
 0x560   :  { %1416 = vmatprep.subr.bf16.mxu1 %v3395_v57 }
 0x563   :  { %1417 = vmatpush1.bf16.msra.mxu1 %v4161_v44 }
 0x564   :  { %1418 = vmatprep.subr.bf16.mxu1 %v4162_v34  ;;  %v3564_v34 = vld [vmem:[#allocation5 + $0x1c4] ss:$16 sps:$4 sm:$0xff]  }
 0x565   :  { %4172 = vst [vmem:[#allocation41_spill] sm:$0xff] %v3564_v34 }
 0x567   :  { %1419 = vmatpush1.bf16.msra.mxu1 %v4163_v13 }
 0x568   :  { %1420 = vmatprep.subr.bf16.mxu1 %v4164_v31  ;;  %v3567_v31 = vld [vmem:[#allocation5 + $0x1c0] ss:$16 sps:$4 sm:$0xff]  }
 0x569   :  { %4173 = vst [vmem:[#allocation43_spill] sm:$0xff] %v3567_v31 }
 0x56b   :  { %1421 = vmatpush1.bf16.msra.mxu1 %v4165_v62 }
 0x56c   :  { %1422 = vmatprep.subr.bf16.mxu1 %v4166_v1  ;;  %v3570_v1 = vld [vmem:[#allocation5 + $0x1e4] ss:$16 sps:$4 sm:$0xff]  }
 0x56d   :  { %4174 = vst [vmem:[#allocation44_spill] sm:$0xff] %v3570_v1 }
 0x56f   :  { %1423 = vmatpush1.bf16.msra.mxu1 %v4167_v3 }
 0x570   :  { %1424 = vmatprep.subr.bf16.mxu1 %v4168_v19  ;;  %v3573_v19 = vld [vmem:[#allocation5 + $0x1e0] ss:$16 sps:$4 sm:$0xff]  }
 0x571   :  { %4175 = vst [vmem:[#allocation47_spill] sm:$0xff] %v3573_v19 }
 0x573   :  { %1425 = vmatpush1.bf16.msra.mxu1 %v4169_v12 }
 0x574   :  { %1426 = vmatprep.subr.bf16.mxu1 %v4170_v26 }
 0x577   :  { %1427 = vmatpush1.bf16.msra.mxu1 %v3561_v42  ;;  %v4176_v42 = vld [vmem:[#allocation38_spill] sm:$0xff] }
 0x578   :  { %1428 = vmatprep.subr.bf16.mxu1 %v3564_v34 }
 0x57b   :  { %1429 = vmatpush1.bf16.msra.mxu1 %v3567_v31 }
 0x57c   :  { %1430 = vmatprep.subr.bf16.mxu1 %v3570_v1 }
 0x57f   :  { %1431 = vmatpush1.bf16.msra.mxu1 %v3573_v19 }
 0x580   :  { %2188 = vmatprep.subr.bf16.mxu1 %v4073_v30 }
 0x5d5   :  { %v1194_v26 = vpop.f32.mrb[20].mxu1 }
 0x5d6   :  { %v3578_v12 = vadd.f32 %v1194_v26, %v4176_v42  ;;  %v2166_v3 = vpop.f32.mrb[21].mxu1 }
 0x5d7   :  { %v1197_v34 = vpop.f32.mrb[22].mxu1 }
 0x5d8   :  { %4177 = vst [vmem:[#allocation38_spill] sm:$0xff] %v3578_v12  ;;  %v2167_v62 = vpop.f32.mrb[23].mxu1  ;;  %v1200_v31 = vsel %vm686_vm1, %v3578_v12, -inf }
 0x5d9   :  { %1201 = vmax.xlane.f32.xlu1 %v1200_v31 }
 0x5da   :  { %v1261_v13 = vpop.f32.mrb[24].mxu0 }
 0x5db   :  { %v1263_v44 = vpop.f32.mrb[25].mxu0  ;;  %v1262_v39 = vadd.f32 %v1261_v13, %v4178_v53 }
 0x5dc   :  { %v1265_v1 = vpop.f32.mrb[26].mxu0  ;;  %v1264_v59 = vadd.f32 %v1263_v44, %v4179_v61  ;;  %v1382_v44 = vld [vmem:[#allocation2] sm:$0x4] }
 0x5dd   :  { %v1266_v57 = vpop.f32.mrb[27].mxu0  ;;  %v2008_v19 = vmul.f32 -1.442695, %v1262_v39 }
 0x5de   :  { %v2009_v26 = vmul.f32 -1.442695, %v1264_v59  ;;  %v1383_v59 = vunpack.c.l.bf16 %v1382_v44  ;;  %v3643_v44 = vld [vmem:[#allocation7 + $0x38] sm:$0xff]  }
 0x5df   :  { %2403 = vpow2.f32 %v2008_v19 }
 0x5e0   :  { %2405 = vpow2.f32 %v2009_v26  ;;  %v1384_v26 = vmax.f32 %v1383_v59, 0.0  ;;  %v4180_v59 = vld [vmem:[#allocation18_spill] sm:$0xff] }
 0x5e9   :  { %v2404_v56 = vpop.eup %2403 }
 0x5ea   :  { %v1312_v42 = vadd.f32 1.0, %v2404_v56  ;;  %v2406_v34 = vpop.eup %2405 }
 0x5eb   :  { %v1318_v31 = vadd.f32 1.0, %v2406_v34  ;;  %v1388_v34 = vpack.c.bf16 %v1384_v26, %v1384_v26  ;;  %v4183_v26 = vld [vmem:[#allocation21_spill] sm:$0xff] }
 0x5ec   :  { %2407 = vrcp.f32 %v1312_v42 }
 0x5ed   :  { %2409 = vrcp.f32 %v1318_v31 }
 0x5f6   :  { %v2408_v3 = vpop.eup %2407 }
 0x5f7   :  { %v2410_v56 = vpop.eup %2409 }
 0x5f8   :  { %v1324_v42 = vsub.f32 1.0, %v2410_v56  ;;  %v1326_v49 = vmul.f32 %v2410_v56, %v3444_v40  ;;  %v4181_v56 = vld [vmem:[#allocation19_spill] sm:$0xff] }
 0x615   :  { %v1302_v62 = vpop.f32.mrb[24].mxu1 }
 0x616   :  { %v1304_v12 = vpop.f32.mrb[25].mxu1  ;;  %v1303_v13 = vadd.f32 %v1302_v62, %v3050_v27  ;;  %v3592_v62 = vshrl.u32 %v1388_v34, 16  ;;  %v4188_v34 = vld [vmem:[#allocation26_spill] sm:$0xff] }
 0x617   :  { %v1305_v51 = vadd.f32 %v1304_v12, %v3048_v5  ;;  %v1306_v1 = vpop.f32.mrb[26].mxu1 }
 0x618   :  { %v1307_v57 = vpop.f32.mrb[27].mxu1  ;;  %v3613_v1 = vld [vmem:[#allocation7 + $0x10] sm:$0xff]  }
 0x619   :  { %v1321_v39 = vmul.f32 %v2408_v3, %v1305_v51  ;;  %v3619_v57 = vld [vmem:[#allocation7 + $0x18] sm:$0xff]  }
 0x61b   :  { %v1322_v19 = vadd.f32 %v1321_v39, %v1303_v13  ;;  %v3625_v13 = vld [vmem:[#allocation7 + $0x20] sm:$0xff]   ;;  %v3631_v39 = vld [vmem:[#allocation7 + $0x28] sm:$0xff]  }
 0x61d   :  { %2411 = vtanh.f32 %v1322_v19  ;;  %v3637_v19 = vld [vmem:[#allocation7 + $0x30] sm:$0xff]  }
 0x627   :  { %v2412_v61 = vpop.eup %2411 }
 0x628   :  { %v1325_v53 = vmul.f32 %v2412_v61, %v1324_v42  ;;  %v1393_v61 = vrot.slane %v3592_v62, 2  ;;  %v4187_v42 = vld [vmem:[#allocation25_spill] sm:$0xff] }
 0x629   :  { %v4191_v62 = vld [vmem:[#allocation29_spill] sm:$0xff] }
 0x62a   :  { %v3587_v47 = vadd.f32 %v1326_v49, %v1325_v53  ;;  %v3599_v49 = vld [vmem:[#allocation7] sm:$0xff]   ;;  %v3607_v53 = vld [vmem:[#allocation7 + $0x8] sm:$0xff]  }
 0x62c   :  { %v1328_v12 = vpack.c.bf16 %v3587_v47, %v3587_v47  ;;  %v1386_v51 = vrot.slane %v3587_v47, 3 }
 0x62e   :  { %2185 = vmatmul.mubr.bf16.vlgmr.msra.gmra.mrb[28].mxu0 %v1328_v12  ;;  %v1389_v3 = vpack.c.bf16 %v1386_v51, %v1386_v51  ;;  %v4189_v12 = vld [vmem:[#allocation27_spill] sm:$0xff]  ;;  %v4190_v51 = vld [vmem:[#allocation28_spill] sm:$0xff] }
 0x62f   :  { %1442 = vmatpush1.bf16.msra.mxu0 %v3269_v9 }
 0x630   :  { %1443 = vmatprep.subr.bf16.mxu0 %v3272_v22  ;;  %v1395_v31 = vshrl.u32 %v1389_v3, 16  ;;  %v4192_v3 = vld [vmem:[#allocation30_spill] sm:$0xff] }
 0x632   :  { %v1397_v40 = vrot.slane %v1395_v31, 2  ;;  %v4193_v31 = vld [vmem:[#allocation31_spill] sm:$0xff] }
 0x633   :  { %1444 = vmatpush1.bf16.msra.mxu0 %v3276_v0 }
 0x634   :  { %1432 = vmatprep.mubr.bf16.mxu1 %v1397_v40  ;;  %1473 = vmatprep.mubr.bf16.mxu0 %v1397_v40  ;;  %v4195_v40 = vld [vmem:[#allocation33_spill] sm:$0xff] }
 0x635   :  { %1433 = vmatmul.mubr.bf16.vlgmr.msra.gmra.mrb[28].mxu1 %v1393_v61  ;;  %1445 = vmatprep.subr.bf16.mxu0 %v3281_v15 }
 0x636   :  { %2189 = vmatpush3.bf16.msra.mxu1 %v3599_v49  ;;  %2204 = vmatprep.mubr.msk.bf16.mxu1 %vm2693_vm0, %v4073_v30 }
 0x637   :  { %1446 = vmatpush1.bf16.msra.mxu0 %v3287_v23  ;;  %2190 = vmatprep.subr.bf16.mxu1 %v4073_v30 }
 0x638   :  { %1447 = vmatprep.subr.bf16.mxu0 %v3291_v37 }
 0x63a   :  { %2191 = vmatpush3.bf16.msra.mxu1 %v3607_v53 }
 0x63b   :  { %1448 = vmatpush1.bf16.msra.mxu0 %v3295_v18  ;;  %2192 = vmatprep.subr.bf16.mxu1 %v4073_v30 }
 0x63c   :  { %1449 = vmatprep.subr.bf16.mxu0 %v3299_v14 }
 0x63e   :  { %2193 = vmatpush3.bf16.msra.mxu1 %v3613_v1 }
 0x63f   :  { %1450 = vmatpush1.bf16.msra.mxu0 %v3303_v16  ;;  %2194 = vmatprep.subr.bf16.mxu1 %v4073_v30 }
 0x640   :  { %1451 = vmatprep.subr.bf16.mxu0 %v3307_v17 }
 0x642   :  { %2195 = vmatpush3.bf16.msra.mxu1 %v3619_v57 }
 0x643   :  { %1452 = vmatpush1.bf16.msra.mxu0 %v3311_v20  ;;  %2196 = vmatprep.subr.bf16.mxu1 %v4073_v30 }
 0x644   :  { %1453 = vmatprep.subr.bf16.mxu0 %v3315_v21 }
 0x646   :  { %2197 = vmatpush3.bf16.msra.mxu1 %v3625_v13 }
 0x647   :  { %1454 = vmatpush1.bf16.msra.mxu0 %v3319_v24  ;;  %2198 = vmatprep.subr.bf16.mxu1 %v4073_v30 }
 0x648   :  { %1455 = vmatprep.subr.bf16.mxu0 %v3323_v28 }
 0x64a   :  { %2199 = vmatpush3.bf16.msra.mxu1 %v3631_v39 }
 0x64b   :  { %1456 = vmatpush1.bf16.msra.mxu0 %v3327_v29  ;;  %2200 = vmatprep.subr.bf16.mxu1 %v4073_v30 }
 0x64c   :  { %1457 = vmatprep.subr.bf16.mxu0 %v3481_v52 }
 0x64e   :  { %2201 = vmatpush3.bf16.msra.mxu1 %v3637_v19 }
 0x64f   :  { %1458 = vmatpush1.bf16.msra.mxu0 %v3486_v58  ;;  %2202 = vmatprep.subr.bf16.mxu1 %v4073_v30 }
 0x650   :  { %1459 = vmatprep.subr.bf16.mxu0 %v3489_v60 }
 0x652   :  { %2203 = vmatpush3.bf16.msra.mxu1 %v3643_v44 }
 0x653   :  { %1460 = vmatpush1.bf16.msra.mxu0 %v3494_v55  ;;  %1610 = vmatprep.subr.bf16.mxu1 %v3338_v4 }
 0x654   :  { %1461 = vmatprep.subr.bf16.mxu0 %v3497_v63 }
 0x657   :  { %1462 = vmatpush1.bf16.msra.mxu0 %v3500_v50 }
 0x658   :  { %1463 = vmatprep.subr.bf16.mxu0 %v3503_v54 }
 0x65b   :  { %1464 = vmatpush1.bf16.msra.mxu0 %v3506_v25 }
 0x65c   :  { %1465 = vmatprep.subr.bf16.mxu0 %v3509_v48 }
 0x65f   :  { %1466 = vmatpush1.bf16.msra.mxu0 %v3512_v32 }
 0x660   :  { %1467 = vmatprep.subr.bf16.mxu0 %v3515_v33 }
 0x663   :  { %1468 = vmatpush1.bf16.msra.mxu0 %v3518_v36 }
 0x664   :  { %1469 = vmatprep.subr.bf16.mxu0 %v3521_v35 }
 0x667   :  { %1470 = vmatpush1.bf16.msra.mxu0 %v3524_v45 }
 0x668   :  { %1471 = vmatprep.subr.bf16.mxu0 %v3527_v2 }
 0x66b   :  { %1472 = vmatpush1.bf16.msra.mxu0 %v3530_v6 }
 0x66c   :  { %1569 = vmatprep.subr.bf16.mxu0 %v3211_v7  ;;  %v4182_v7 = vld [vmem:[#allocation20_spill] sm:$0xff] }
 0x66e   :  { %1474 = vmatmul.mubr.bf16.vlgmr.msra.gmra.mrb[32].mxu0 %v1393_v61  ;;  %v4194_v61 = vld [vmem:[#allocation32_spill] sm:$0xff] }
 0x66f   :  { %1570 = vmatpush1.bf16.msra.mxu0 %v3214_v8  ;;  %v4184_v8 = vld [vmem:[#allocation22_spill] sm:$0xff] }
 0x670   :  { %1571 = vmatprep.subr.bf16.mxu0 %v3217_v10  ;;  %v4185_v10 = vld [vmem:[#allocation23_spill] sm:$0xff] }
 0x673   :  { %1572 = vmatpush1.bf16.msra.mxu0 %v3220_v11  ;;  %v4186_v11 = vld [vmem:[#allocation24_spill] sm:$0xff] }
 0x674   :  { %1573 = vmatprep.subr.bf16.mxu0 %v3359_v38 }
 0x677   :  { %1574 = vmatpush1.bf16.msra.mxu0 %v3362_v41 }
 0x678   :  { %1575 = vmatprep.subr.bf16.mxu0 %v3365_v43 }
 0x67b   :  { %1576 = vmatpush1.bf16.msra.mxu0 %v3368_v46 }
 0x67c   :  { %1577 = vmatprep.subr.bf16.mxu0 %v4180_v59 }
 0x67f   :  { %1578 = vmatpush1.bf16.msra.mxu0 %v4181_v56  ;;  %v4207_v56 = vld [vmem:[#allocation46_spill] sm:$0xff] }
 0x680   :  { %1579 = vmatprep.subr.bf16.mxu0 %v4182_v7 }
 0x683   :  { %1580 = vmatpush1.bf16.msra.mxu0 %v4183_v26 }
 0x684   :  { %1581 = vmatprep.subr.bf16.mxu0 %v4184_v8  ;;  %v4206_v8 = vld [vmem:[#allocation45_spill] sm:$0xff] }
 0x687   :  { %1582 = vmatpush1.bf16.msra.mxu0 %v4185_v10  ;;  %v4196_v10 = vld [vmem:[#allocation34_spill] sm:$0xff] }
 0x688   :  { %1583 = vmatprep.subr.bf16.mxu0 %v4186_v11  ;;  %v4197_v11 = vld [vmem:[#allocation35_spill] sm:$0xff] }
 0x68b   :  { %1584 = vmatpush1.bf16.msra.mxu0 %v4187_v42  ;;  %v4198_v42 = vld [vmem:[#allocation36_spill] sm:$0xff] }
 0x68c   :  { %1585 = vmatprep.subr.bf16.mxu0 %v4188_v34  ;;  %v4199_v34 = vld [vmem:[#allocation39_spill] sm:$0xff] }
 0x68f   :  { %1586 = vmatpush1.bf16.msra.mxu0 %v4189_v12  ;;  %v4200_v12 = vld [vmem:[#allocation41_spill] sm:$0xff] }
 0x690   :  { %1587 = vmatprep.subr.bf16.mxu0 %v4190_v51  ;;  %v4201_v51 = vld [vmem:[#allocation43_spill] sm:$0xff] }
 0x693   :  { %1588 = vmatpush1.bf16.msra.mxu0 %v4191_v62  ;;  %v4202_v62 = vld [vmem:[#allocation44_spill] sm:$0xff] }
 0x694   :  { %1589 = vmatprep.subr.bf16.mxu0 %v4192_v3  ;;  %v4203_v3 = vld [vmem:[#allocation47_spill] sm:$0xff] }
 0x697   :  { %1590 = vmatpush1.bf16.msra.mxu0 %v4193_v31 }
 0x698   :  { %1591 = vmatprep.subr.bf16.mxu0 %v4194_v61 }
 0x69b   :  { %1592 = vmatpush1.bf16.msra.mxu0 %v4195_v40 }
 0x69c   :  { %1593 = vmatprep.subr.bf16.mxu0 %v4196_v10  ;;  %v3696_v10 = vld [vmem:[%s3909_s5] sm:$0x1]  ;;  %s2694_s5 = smov [#allocation9]  }
 0x69d   :  { %4204 = vst [vmem:[#allocation48_spill] sm:$0xff] %v3696_v10  ;;  %s1914_s21 = sshll.u32 %s2694_s5, 4  ;;  %s1915_s21 = int_to_ptr.vmem [resolvable:$true] %s1914_s21 }
 0x69e   :  { %s2633_s22 = scalar_lea.vmem %s1915_s21, 16  ;;  %s2637_s23 = scalar_lea.vmem %s1915_s21, 32 }
 0x69f   :  { %1594 = vmatpush1.bf16.msra.mxu0 %v4197_v11  ;;  %p2634_p10 = scmp.ne.s32.totalorder %s1915_s21, %s2633_s22  ;;  %p2638_p11 = scmp.lt.s32.totalorder %s1915_s21, %s1915_s21 }
 0x6a0   :  { %1595 = vmatprep.subr.bf16.mxu0 %v4198_v42  ;;  %p2639_p12 = scmp.lt.s32.totalorder %s2637_s23, %s2633_s22 }
 0x6a2   :  { %p2640_p13 = por %p2639_p12, %p2638_p11 }
 0x6a3   :  { %1596 = vmatpush1.bf16.msra.mxu0 %v4199_v34 }
 0x6a4   :  { %1597 = vmatprep.subr.bf16.mxu0 %v4200_v12  ;;  %p2641_p0 = pnand %p2640_p13, %p2634_p10 }
 0x6a7   :  { %1598 = vmatpush1.bf16.msra.mxu0 %v4201_v51 }
 0x6a8   :  { %1599 = vmatprep.subr.bf16.mxu0 %v4202_v62 }
 0x6ab   :  { %1600 = vmatpush1.bf16.msra.mxu0 %v4203_v3 }
 0x6ac   :  { %2208 = vmatprep.subr.bf16.mxu0 %v4073_v30 }
 0x701   :  { %v1363_v61 = vpop.f32.mrb[28].mxu0 }
 0x702   :  { %v3699_v42 = vadd.f32 %v3696_v10, %v1363_v61  ;;  %v2186_v34 = vpop.f32.mrb[29].mxu0 }
 0x703   :  { %v1366_v11 = vpop.f32.mrb[30].mxu0 }
 0x704   :  { %4205 = vst [vmem:[#allocation49_spill] sm:$0xff] %v3699_v42  ;;  %v2187_v12 = vpop.f32.mrb[31].mxu0  ;;  %v1369_v51 = vsel %vm686_vm1, %v3699_v42, -inf }
 0x705   :  { %1370 = vmax.xlane.f32.xlu0 %v1369_v51 }
 0x708   :  { %v1434_v62 = vpop.f32.mrb[28].mxu1 }
 0x709   :  { %v1436_v3 = vpop.f32.mrb[29].mxu1  ;;  %v1435_v26 = vadd.f32 %v1434_v62, %v4206_v8 }
 0x70a   :  { %v1438_v40 = vpop.f32.mrb[30].mxu1  ;;  %v1437_v59 = vadd.f32 %v1436_v3, %v4207_v56  ;;  %v1555_v3 = vld [vmem:[#allocation2] sm:$0x8] }
 0x70b   :  { %v1439_v31 = vpop.f32.mrb[31].mxu1  ;;  %v2010_v7 = vmul.f32 -1.442695, %v1435_v26 }
 0x70c   :  { %v2011_v61 = vmul.f32 -1.442695, %v1437_v59  ;;  %v1556_v59 = vunpack.c.l.bf16 %v1555_v3  ;;  %v4229_v3 = vld [vmem:[#allocation36_spill] sm:$0xff] }
 0x70d   :  { %2413 = vpow2.f32 %v2010_v7 }
 0x70e   :  { %2415 = vpow2.f32 %v2011_v61  ;;  %v1557_v56 = vmax.f32 %v1556_v59, 0.0  ;;  %v4230_v59 = vld [vmem:[#allocation39_spill] sm:$0xff] }
 0x717   :  { %v2414_v46 = vpop.eup %2413 }
 0x718   :  { %v1485_v10 = vadd.f32 1.0, %v2414_v46  ;;  %v2416_v11 = vpop.eup %2415 }
 0x719   :  { %v1491_v51 = vadd.f32 1.0, %v2416_v11 }
 0x71a   :  { %2417 = vrcp.f32 %v1485_v10 }
 0x71b   :  { %2419 = vrcp.f32 %v1491_v51 }
 0x724   :  { %v2418_v12 = vpop.eup %2417 }
 0x725   :  { %v2420_v46 = vpop.eup %2419 }
 0x726   :  { %v1497_v61 = vsub.f32 1.0, %v2420_v46  ;;  %v1499_v41 = vmul.f32 %v2420_v46, %v3587_v47  ;;  %v4222_v47 = vld [vmem:[#allocation29_spill] sm:$0xff] }
 0x727   :  { %v4231_v46 = vld [vmem:[#allocation41_spill] sm:$0xff] }
 0x741   :  { %v1475_v34 = vpop.f32.mrb[32].mxu0 }
 0x742   :  { %v1477_v42 = vpop.f32.mrb[33].mxu0  ;;  %v1476_v62 = vadd.f32 %v1475_v34, %v3050_v27 }
 0x743   :  { %v1478_v43 = vadd.f32 %v1477_v42, %v3048_v5  ;;  %v1479_v40 = vpop.f32.mrb[34].mxu0  ;;  %v1561_v42 = vpack.c.bf16 %v1557_v56, %v1557_v56  ;;  %v4223_v56 = vld [vmem:[#allocation30_spill] sm:$0xff] }
 0x744   :  { %v1480_v31 = vpop.f32.mrb[35].mxu0 }
 0x745   :  { %v1494_v26 = vmul.f32 %v2418_v12, %v1478_v43  ;;  %v1565_v12 = vrot.slane %v1561_v42, 3  ;;  %v4225_v31 = vld [vmem:[#allocation32_spill] sm:$0xff]  ;;  %v4234_v42 = vld [vmem:[#allocation47_spill] sm:$0xff] }
 0x747   :  { %v1495_v7 = vadd.f32 %v1494_v26, %v1476_v62  ;;  %v4226_v62 = vld [vmem:[#allocation33_spill] sm:$0xff]  ;;  %v4227_v26 = vld [vmem:[#allocation34_spill] sm:$0xff] }
 0x749   :  { %2421 = vtanh.f32 %v1495_v7  ;;  %v4228_v7 = vld [vmem:[#allocation35_spill] sm:$0xff] }
 0x753   :  { %v2422_v10 = vpop.eup %2421 }
 0x754   :  { %v1498_v8 = vmul.f32 %v2422_v10, %v1497_v61  ;;  %v4232_v61 = vld [vmem:[#allocation43_spill] sm:$0xff]  ;;  %v4233_v10 = vld [vmem:[#allocation44_spill] sm:$0xff] }
 0x756   :  { %v3708_v11 = vadd.f32 %v1499_v41, %v1498_v8  ;;  %v4221_v41 = vld [vmem:[#allocation28_spill] sm:$0xff]  ;;  %v4224_v8 = vld [vmem:[#allocation31_spill] sm:$0xff] }
 0x758   :  { %v1501_v40 = vpack.c.bf16 %v3708_v11, %v3708_v11  ;;  %v1559_v43 = vrot.slane %v3708_v11, 2 }
 0x75a   :  { %2205 = vmatmul.mubr.bf16.vlgmr.msra.gmra.mrb[32].mxu1 %v1501_v40  ;;  %v1562_v34 = vpack.c.bf16 %v1559_v43, %v1559_v43  ;;  %v4235_v43 = vld [vmem:[#allocation48_spill] sm:$0xff] }
 0x75b   :  { %1611 = vmatpush1.bf16.msra.mxu1 %v3269_v9  ;;  %v2548_v9 = vld [vmem:[#allocation5 + $0x4] ss:$16 sps:$4 sm:$0xff]  }
 0x75c   :  { %1612 = vmatprep.subr.bf16.mxu1 %v3272_v22  ;;  %v1566_v51 = vrot.slane %v1562_v34, 3  ;;  %v2549_v22 = vld [vmem:[#allocation5] ss:$16 sps:$4 sm:$0xff]  }
 0x75e   :  { %1601 = vmatprep.mubr.bf16.mxu0 %v1566_v51  ;;  %1642 = vmatprep.mubr.bf16.mxu1 %v1566_v51 }
 0x75f   :  { %1613 = vmatpush1.bf16.msra.mxu1 %v3276_v0  ;;  %1602 = vmatmul.mubr.bf16.vlgmr.msra.gmra.mrb[36].mxu0 %v1565_v12  ;;  %v2550_v0 = vld [vmem:[#allocation5 + $0x24] ss:$16 sps:$4 sm:$0xff]  }
 0x760   :  { %1614 = vmatprep.subr.bf16.mxu1 %v3281_v15  ;;  %2209 = vmatpush3.bf16.msra.mxu0 %v3599_v49  ;;  %v2551_v15 = vld [vmem:[#allocation5 + $0x20] ss:$16 sps:$4 sm:$0xff]  }
 0x761   :  { %2210 = vmatprep.subr.bf16.mxu0 %v4073_v30  ;;  %2224 = vmatprep.mubr.msk.bf16.mxu0 %vm2693_vm0, %v4073_v30 }
 0x763   :  { %1615 = vmatpush1.bf16.msra.mxu1 %v3287_v23  ;;  %v4208_v23 = vld [vmem:[#allocation15_spill] sm:$0xff] }
 0x764   :  { %1616 = vmatprep.subr.bf16.mxu1 %v3291_v37  ;;  %2211 = vmatpush3.bf16.msra.mxu0 %v3607_v53  ;;  %v4209_v37 = vld [vmem:[#allocation16_spill] sm:$0xff] }
 0x765   :  { %2212 = vmatprep.subr.bf16.mxu0 %v4073_v30 }
 0x767   :  { %1617 = vmatpush1.bf16.msra.mxu1 %v3295_v18  ;;  %v4210_v18 = vld [vmem:[#allocation17_spill] sm:$0xff] }
 0x768   :  { %1618 = vmatprep.subr.bf16.mxu1 %v3299_v14  ;;  %2213 = vmatpush3.bf16.msra.mxu0 %v3613_v1  ;;  %v4211_v14 = vld [vmem:[#allocation18_spill] sm:$0xff] }
 0x769   :  { %2214 = vmatprep.subr.bf16.mxu0 %v4073_v30 }
 0x76b   :  { %1619 = vmatpush1.bf16.msra.mxu1 %v3303_v16  ;;  %v4212_v16 = vld [vmem:[#allocation19_spill] sm:$0xff] }
 0x76c   :  { %1620 = vmatprep.subr.bf16.mxu1 %v3307_v17  ;;  %2215 = vmatpush3.bf16.msra.mxu0 %v3619_v57  ;;  %v4213_v17 = vld [vmem:[#allocation20_spill] sm:$0xff] }
 0x76d   :  { %2216 = vmatprep.subr.bf16.mxu0 %v4073_v30 }
 0x76f   :  { %1621 = vmatpush1.bf16.msra.mxu1 %v3311_v20  ;;  %v4214_v20 = vld [vmem:[#allocation21_spill] sm:$0xff] }
 0x770   :  { %1622 = vmatprep.subr.bf16.mxu1 %v3315_v21  ;;  %2217 = vmatpush3.bf16.msra.mxu0 %v3625_v13  ;;  %v4215_v21 = vld [vmem:[#allocation22_spill] sm:$0xff] }
 0x771   :  { %2218 = vmatprep.subr.bf16.mxu0 %v4073_v30 }
 0x773   :  { %1623 = vmatpush1.bf16.msra.mxu1 %v3319_v24  ;;  %v4216_v24 = vld [vmem:[#allocation23_spill] sm:$0xff] }
 0x774   :  { %1624 = vmatprep.subr.bf16.mxu1 %v3323_v28  ;;  %2219 = vmatpush3.bf16.msra.mxu0 %v3631_v39  ;;  %v4217_v28 = vld [vmem:[#allocation24_spill] sm:$0xff] }
 0x775   :  { %2220 = vmatprep.subr.bf16.mxu0 %v4073_v30 }
 0x777   :  { %1625 = vmatpush1.bf16.msra.mxu1 %v3327_v29  ;;  %v4218_v29 = vld [vmem:[#allocation25_spill] sm:$0xff] }
 0x778   :  { %1626 = vmatprep.subr.bf16.mxu1 %v3481_v52  ;;  %2221 = vmatpush3.bf16.msra.mxu0 %v3637_v19 }
 0x779   :  { %2222 = vmatprep.subr.bf16.mxu0 %v4073_v30 }
 0x77b   :  { %1627 = vmatpush1.bf16.msra.mxu1 %v3486_v58 }
 0x77c   :  { %1628 = vmatprep.subr.bf16.mxu1 %v3489_v60  ;;  %2223 = vmatpush3.bf16.msra.mxu0 %v3643_v44 }
 0x77d   :  { %1783 = vmatprep.subr.bf16.mxu0 %v3338_v4  ;;  %v4219_v4 = vld [vmem:[#allocation26_spill] sm:$0xff] }
 0x77f   :  { %1629 = vmatpush1.bf16.msra.mxu1 %v3494_v55 }
 0x780   :  { %1630 = vmatprep.subr.bf16.mxu1 %v3497_v63 }
 0x783   :  { %1631 = vmatpush1.bf16.msra.mxu1 %v3500_v50 }
 0x784   :  { %1632 = vmatprep.subr.bf16.mxu1 %v3503_v54 }
 0x787   :  { %1633 = vmatpush1.bf16.msra.mxu1 %v3506_v25 }
 0x788   :  { %1634 = vmatprep.subr.bf16.mxu1 %v3509_v48 }
 0x78b   :  { %1635 = vmatpush1.bf16.msra.mxu1 %v3512_v32 }
 0x78c   :  { %1636 = vmatprep.subr.bf16.mxu1 %v3515_v33 }
 0x78f   :  { %1637 = vmatpush1.bf16.msra.mxu1 %v3518_v36 }
 0x790   :  { %1638 = vmatprep.subr.bf16.mxu1 %v3521_v35 }
 0x793   :  { %1639 = vmatpush1.bf16.msra.mxu1 %v3524_v45 }
 0x794   :  { %1640 = vmatprep.subr.bf16.mxu1 %v3527_v2 }
 0x797   :  { %1641 = vmatpush1.bf16.msra.mxu1 %v3530_v6 }
 0x798   :  { %1742 = vmatprep.subr.bf16.mxu1 %v2548_v9 }
 0x79a   :  { %1643 = vmatmul.mubr.bf16.vlgmr.msra.gmra.mrb[36].mxu1 %v1565_v12 }
 0x79b   :  { %1743 = vmatpush1.bf16.msra.mxu1 %v2549_v22 }
 0x79c   :  { %1744 = vmatprep.subr.bf16.mxu1 %v2550_v0 }
 0x79f   :  { %1745 = vmatpush1.bf16.msra.mxu1 %v2551_v15 }
 0x7a0   :  { %1746 = vmatprep.subr.bf16.mxu1 %v3359_v38  ;;  %v4220_v38 = vld [vmem:[#allocation27_spill] sm:$0xff] }
 0x7a3   :  { %1747 = vmatpush1.bf16.msra.mxu1 %v4208_v23 }
 0x7a4   :  { %1748 = vmatprep.subr.bf16.mxu1 %v4209_v37 }
 0x7a7   :  { %1749 = vmatpush1.bf16.msra.mxu1 %v4210_v18  ;;  %v4236_v18 = vld [vmem:[#allocation45_spill] sm:$0xff] }
 0x7a8   :  { %1750 = vmatprep.subr.bf16.mxu1 %v4211_v14 }
 0x7ab   :  { %1751 = vmatpush1.bf16.msra.mxu1 %v4212_v16 }
 0x7ac   :  { %1752 = vmatprep.subr.bf16.mxu1 %v4213_v17  ;;  %v4237_v17 = vld [vmem:[#allocation46_spill] sm:$0xff] }
 0x7af   :  { %1753 = vmatpush1.bf16.msra.mxu1 %v4214_v20 }
 0x7b0   :  { %1754 = vmatprep.subr.bf16.mxu1 %v4215_v21 }
 0x7b3   :  { %1755 = vmatpush1.bf16.msra.mxu1 %v4216_v24 }
 0x7b4   :  { %1756 = vmatprep.subr.bf16.mxu1 %v4217_v28 }
 0x7b7   :  { %1757 = vmatpush1.bf16.msra.mxu1 %v4218_v29 }
 0x7b8   :  { %1758 = vmatprep.subr.bf16.mxu1 %v4219_v4 }
 0x7bb   :  { %1759 = vmatpush1.bf16.msra.mxu1 %v4220_v38 }
 0x7bc   :  { %1760 = vmatprep.subr.bf16.mxu1 %v4221_v41 }
 0x7bf   :  { %1761 = vmatpush1.bf16.msra.mxu1 %v4222_v47 }
 0x7c0   :  { %1762 = vmatprep.subr.bf16.mxu1 %v4223_v56 }
 0x7c3   :  { %1763 = vmatpush1.bf16.msra.mxu1 %v4224_v8 }
 0x7c4   :  { %1764 = vmatprep.subr.bf16.mxu1 %v4225_v31 }
 0x7c7   :  { %1765 = vmatpush1.bf16.msra.mxu1 %v4226_v62 }
 0x7c8   :  { %1766 = vmatprep.subr.bf16.mxu1 %v4227_v26 }
 0x7cb   :  { %1767 = vmatpush1.bf16.msra.mxu1 %v4228_v7 }
 0x7cc   :  { %1768 = vmatprep.subr.bf16.mxu1 %v4229_v3  ;;  %v1724_v3 = vld [vmem:[#allocation2] sm:$0x8] }
 0x7cf   :  { %1769 = vmatpush1.bf16.msra.mxu1 %v4230_v59  ;;  %v1725_v59 = vunpack.c.l.bf16 %v1724_v3 }
 0x7d0   :  { %1770 = vmatprep.subr.bf16.mxu1 %v4231_v46 }
 0x7d3   :  { %1771 = vmatpush1.bf16.msra.mxu1 %v4232_v61  ;;  %v1726_v61 = vmax.f32 %v1725_v59, 0.0 }
 0x7d4   :  { %1772 = vmatprep.subr.bf16.mxu1 %v4233_v10 }
 0x7d7   :  { %1773 = vmatpush1.bf16.msra.mxu1 %v4234_v42 }
 0x7d8   :  { %2228 = vmatprep.subr.bf16.mxu1 %v4073_v30 }
 0x82d   :  { %v1536_v40 = vpop.f32.mrb[32].mxu1 }
 0x82e   :  { %v3792_v34 = vadd.f32 %v4235_v43, %v1536_v40  ;;  %v2206_v12 = vpop.f32.mrb[33].mxu1 }
 0x82f   :  { %v1539_v51 = vpop.f32.mrb[34].mxu1 }
 0x830   :  { %v2207_v9 = vpop.f32.mrb[35].mxu1  ;;  %v1542_v22 = vsel %vm686_vm1, %v3792_v34, -inf  ;;  %v1730_v51 = vpack.c.bf16 %v1726_v61, %v1726_v61 }
 0x831   :  { %1543 = vmax.xlane.f32.xlu1 %v1542_v22 }
 0x832   :  { %v1603_v0 = vpop.f32.mrb[36].mxu0 }
 0x833   :  { %v1605_v15 = vpop.f32.mrb[37].mxu0  ;;  %v1604_v14 = vadd.f32 %v1603_v0, %v4236_v18 }
 0x834   :  { %v1607_v23 = vpop.f32.mrb[38].mxu0  ;;  %v1606_v20 = vadd.f32 %v1605_v15, %v4237_v17  ;;  %v3806_v15 = vshrl.u32 %v1730_v51, 16 }
 0x835   :  { %v1608_v37 = vpop.f32.mrb[39].mxu0  ;;  %v2012_v16 = vmul.f32 -1.442695, %v1604_v14  ;;  %v2553_v14 = vld [vmem:[#allocation5 + $0x2c] ss:$16 sps:$4 sm:$0xff]  }
 0x836   :  { %v2013_v24 = vmul.f32 -1.442695, %v1606_v20  ;;  %v2552_v37 = vld [vmem:[#allocation5 + $0x8] ss:$16 sps:$4 sm:$0xff]   ;;  %v1735_v20 = vrot.slane %v3806_v15, 3 }
 0x837   :  { %2423 = vpow2.f32 %v2012_v16 }
 0x838   :  { %2425 = vpow2.f32 %v2013_v24  ;;  %v2555_v24 = vld [vmem:[#allocation5 + $0x4c] ss:$16 sps:$4 sm:$0xff]  }
 0x841   :  { %v2424_v21 = vpop.eup %2423 }
 0x842   :  { %v1654_v28 = vadd.f32 1.0, %v2424_v21  ;;  %v2426_v29 = vpop.eup %2425  ;;  %v2554_v21 = vld [vmem:[#allocation5 + $0x28] ss:$16 sps:$4 sm:$0xff]  }
 0x843   :  { %v1660_v47 = vadd.f32 1.0, %v2426_v29  ;;  %v2557_v29 = vld [vmem:[#allocation5 + $0x6c] ss:$16 sps:$4 sm:$0xff]  }
 0x844   :  { %2427 = vrcp.f32 %v1654_v28  ;;  %v2556_v28 = vld [vmem:[#allocation5 + $0x48] ss:$16 sps:$4 sm:$0xff]  }
 0x845   :  { %2429 = vrcp.f32 %v1660_v47  ;;  %v2562_v47 = vld [vmem:[#allocation5 + $0xa8] ss:$16 sps:$4 sm:$0xff]  }
 0x84e   :  { %v2428_v38 = vpop.eup %2427 }
 0x84f   :  { %v2430_v46 = vpop.eup %2429 }
 0x850   :  { %v1666_v10 = vsub.f32 1.0, %v2430_v46  ;;  %v1668_v12 = vmul.f32 %v2430_v46, %v3708_v11 }
 0x86d   :  { %v1644_v4 = vpop.f32.mrb[36].mxu1 }
 0x86e   :  { %v1646_v41 = vpop.f32.mrb[37].mxu1  ;;  %v1645_v62 = vadd.f32 %v1644_v4, %v3050_v27  ;;  %v2558_v4 = vld [vmem:[#allocation5 + $0x68] ss:$16 sps:$4 sm:$0xff]  }
 0x86f   :  { %v1647_v56 = vadd.f32 %v1646_v41, %v3048_v5  ;;  %v1648_v8 = vpop.f32.mrb[38].mxu1  ;;  %v2561_v41 = vld [vmem:[#allocation5 + $0xac] ss:$16 sps:$4 sm:$0xff]  }
 0x870   :  { %v1649_v31 = vpop.f32.mrb[39].mxu1  ;;  %v2566_v8 = vld [vmem:[#allocation5 + $0xe8] ss:$16 sps:$4 sm:$0xff]  }
 0x871   :  { %v1663_v26 = vmul.f32 %v2428_v38, %v1647_v56  ;;  %v2559_v38 = vld [vmem:[#allocation5 + $0x8c] ss:$16 sps:$4 sm:$0xff]   ;;  %v2564_v56 = vld [vmem:[#allocation5 + $0xc8] ss:$16 sps:$4 sm:$0xff]  }
 0x873   :  { %v1664_v7 = vadd.f32 %v1663_v26, %v1645_v62 }
 0x875   :  { %2431 = vtanh.f32 %v1664_v7 }
 0x87f   :  { %v2432_v42 = vpop.eup %2431 }
 0x880   :  { %v1667_v40 = vmul.f32 %v2432_v42, %v1666_v10 }
 0x882   :  { %v3801_v9 = vadd.f32 %v1668_v12, %v1667_v40 }
 0x884   :  { %v1670_v22 = vpack.c.bf16 %v3801_v9, %v3801_v9  ;;  %v1728_v0 = vrot.slane %v3801_v9, 1 }
 0x886   :  { %2225 = vmatmul.mubr.bf16.vlgmr.msra.gmra.mrb[40].mxu0 %v1670_v22  ;;  %v1731_v23 = vpack.c.bf16 %v1728_v0, %v1728_v0 }
 0x887   :  { %1784 = vmatpush1.bf16.msra.mxu0 %v2552_v37 }
 0x888   :  { %1785 = vmatprep.subr.bf16.mxu0 %v2553_v14  ;;  %v1737_v16 = vshrl.u32 %v1731_v23, 16 }
 0x88a   :  { %v1739_v11 = vrot.slane %v1737_v16, 3 }
 0x88b   :  { %1786 = vmatpush1.bf16.msra.mxu0 %v2554_v21 }
 0x88c   :  { %1774 = vmatprep.mubr.bf16.mxu1 %v1739_v11  ;;  %1815 = vmatprep.mubr.bf16.mxu0 %v1739_v11 }
 0x88d   :  { %1775 = vmatmul.mubr.bf16.vlgmr.msra.gmra.mrb[40].mxu1 %v1735_v20  ;;  %1787 = vmatprep.subr.bf16.mxu0 %v2555_v24 }
 0x88e   :  { %2229 = vmatpush3.bf16.msra.mxu1 %v3599_v49  ;;  %2244 = vmatprep.mubr.msk.bf16.mxu1 %vm2693_vm0, %v4073_v30  ;;  %v2560_v49 = vld [vmem:[#allocation5 + $0x88] ss:$16 sps:$4 sm:$0xff]  }
 0x88f   :  { %1788 = vmatpush1.bf16.msra.mxu0 %v2556_v28  ;;  %2230 = vmatprep.subr.bf16.mxu1 %v4073_v30 }
 0x890   :  { %1789 = vmatprep.subr.bf16.mxu0 %v2557_v29 }
 0x892   :  { %2231 = vmatpush3.bf16.msra.mxu1 %v3607_v53  ;;  %v2563_v53 = vld [vmem:[#allocation5 + $0xcc] ss:$16 sps:$4 sm:$0xff]  }
 0x893   :  { %1790 = vmatpush1.bf16.msra.mxu0 %v2558_v4  ;;  %2232 = vmatprep.subr.bf16.mxu1 %v4073_v30 }
 0x894   :  { %1791 = vmatprep.subr.bf16.mxu0 %v2559_v38 }
 0x896   :  { %2233 = vmatpush3.bf16.msra.mxu1 %v3613_v1  ;;  %v2565_v1 = vld [vmem:[#allocation5 + $0xec] ss:$16 sps:$4 sm:$0xff]  }
 0x897   :  { %1792 = vmatpush1.bf16.msra.mxu0 %v2560_v49  ;;  %2234 = vmatprep.subr.bf16.mxu1 %v4073_v30 }
 0x898   :  { %1793 = vmatprep.subr.bf16.mxu0 %v2561_v41 }
 0x89a   :  { %2235 = vmatpush3.bf16.msra.mxu1 %v3619_v57 }
 0x89b   :  { %1794 = vmatpush1.bf16.msra.mxu0 %v2562_v47  ;;  %2236 = vmatprep.subr.bf16.mxu1 %v4073_v30 }
 0x89c   :  { %1795 = vmatprep.subr.bf16.mxu0 %v2563_v53 }
 0x89e   :  { %2237 = vmatpush3.bf16.msra.mxu1 %v3625_v13 }
 0x89f   :  { %1796 = vmatpush1.bf16.msra.mxu0 %v2564_v56  ;;  %2238 = vmatprep.subr.bf16.mxu1 %v4073_v30 }
 0x8a0   :  { %1797 = vmatprep.subr.bf16.mxu0 %v2565_v1 }
 0x8a2   :  { %2239 = vmatpush3.bf16.msra.mxu1 %v3631_v39 }
 0x8a3   :  { %1798 = vmatpush1.bf16.msra.mxu0 %v2566_v8  ;;  %2240 = vmatprep.subr.bf16.mxu1 %v4073_v30 }
 0x8a4   :  { %1799 = vmatprep.subr.bf16.mxu0 %v3481_v52  ;;  %v4238_v52 = vld [vmem:[#allocation40_spill] sm:$0xff] }
 0x8a6   :  { %2241 = vmatpush3.bf16.msra.mxu1 %v3637_v19 }
 0x8a7   :  { %1800 = vmatpush1.bf16.msra.mxu0 %v3486_v58  ;;  %2242 = vmatprep.subr.bf16.mxu1 %v4073_v30  ;;  %v689_v30 = vpop.xlane.xlu0 %688 }
 0x8a8   :  { %1801 = vmatprep.subr.bf16.mxu0 %v3489_v60  ;;  %v3843_v58 = vsub.f32 %v4238_v52, %v689_v30 }
 0x8aa   :  { %2243 = vmatpush3.bf16.msra.mxu1 %v3643_v44 }
 0x8ab   :  { %1802 = vmatpush1.bf16.msra.mxu0 %v3494_v55  ;;  %v3845_v60 = vpop.xlane.xlu0 %859  ;;  %v1029_v55 = vpop.xlane.xlu1 %1028 }
 0x8ac   :  { %1803 = vmatprep.subr.bf16.mxu0 %v3497_v63  ;;  %v691_v63 = vmul.f32 1.442695, %v3843_v58 }
 0x8ae   :  { %2433 = vpow2.f32 %v691_v63 }
 0x8af   :  { %1804 = vmatpush1.bf16.msra.mxu0 %v3500_v50  ;;  %v4239_v50 = vld [vmem:[#allocation37_spill] sm:$0xff] }
 0x8b0   :  { %1805 = vmatprep.subr.bf16.mxu0 %v3503_v54  ;;  %v3849_v54 = vsub.f32 %v4239_v50, %v1029_v55 }
 0x8b3   :  { %1806 = vmatpush1.bf16.msra.mxu0 %v3506_v25  ;;  %v1371_v25 = vpop.xlane.xlu0 %1370 }
 0x8b4   :  { %1807 = vmatprep.subr.bf16.mxu0 %v3509_v48  ;;  %v1031_v48 = vmul.f32 1.442695, %v3849_v54 }
 0x8b6   :  { %2435 = vpow2.f32 %v1031_v48 }
 0x8b7   :  { %1808 = vmatpush1.bf16.msra.mxu0 %v3512_v32  ;;  %v4240_v32 = vld [vmem:[#allocation49_spill] sm:$0xff] }
 0x8b8   :  { %1809 = vmatprep.subr.bf16.mxu0 %v3515_v33  ;;  %v3853_v33 = vsub.f32 %v4240_v32, %v1371_v25  ;;  %v2434_v39 = vpop.eup %2433 }
 0x8b9   :  { %v693_v44 = vsel %vm686_vm1, %v2434_v39, 0.0 }
 0x8bb   :  { %1810 = vmatpush1.bf16.msra.mxu0 %v3518_v36  ;;  %v1373_v36 = vmul.f32 1.442695, %v3853_v33 }
 0x8bc   :  { %1811 = vmatprep.subr.bf16.mxu0 %v3521_v35 }
 0x8bd   :  { %2437 = vpow2.f32 %v1373_v36  ;;  %v4241_v36 = vld [vmem:[#allocation42_spill] sm:$0xff] }
 0x8bf   :  { %1812 = vmatpush1.bf16.msra.mxu0 %v3524_v45 }
 0x8c0   :  { %1813 = vmatprep.subr.bf16.mxu0 %v3527_v2  ;;  %v2436_v31 = vpop.eup %2435 }
 0x8c1   :  { %v1033_v3 = vsel %vm686_vm1, %v2436_v31, 0.0 }
 0x8c3   :  { %1814 = vmatpush1.bf16.msra.mxu0 %v3530_v6 }
 0x8c6   :  { %1816 = vmatmul.mubr.bf16.vlgmr.msra.gmra.mrb[44].mxu0 %v1735_v20 }
 0x8c7   :  { %v2438_v59 = vpop.eup %2437 }
 0x8c8   :  { %v1375_v46 = vsel %vm686_vm1, %v2438_v59, 0.0 }
 0x959   :  { %v1705_v35 = vpop.f32.mrb[40].mxu0 }
 0x95a   :  { %v1706_v45 = vadd.f32 %v4235_v43, %v1705_v35  ;;  %v2226_v2 = vpop.f32.mrb[41].mxu0  ;;  %v861_v35 = vsub.f32 %v4241_v36, %v3845_v60 }
 0x95b   :  { %v1708_v6 = vpop.f32.mrb[42].mxu0 }
 0x95c   :  { %v2227_v57 = vpop.f32.mrb[43].mxu0  ;;  %v1711_v13 = vsel %vm686_vm1, %v1706_v45, -inf  ;;  %v862_v2 = vmul.f32 1.442695, %v861_v35  ;;  %v4242_v6 = vld [vmem:[#allocation38_spill] sm:$0xff] }
 0x95d   :  { %1712 = vmax.xlane.f32.xlu0 %v1711_v13 }
 0x960   :  { %v1776_v19 = vpop.f32.mrb[40].mxu1 }
 0x961   :  { %v1778_v62 = vpop.f32.mrb[41].mxu1  ;;  %694 = vadd.xlane.f32.xlu0 %v693_v44  ;;  %v1777_v61 = vadd.f32 %v1776_v19, %v4236_v18 }
 0x962   :  { %v1780_v26 = vpop.f32.mrb[42].mxu1  ;;  %v1779_v42 = vadd.f32 %v1778_v62, %v4237_v17 }
 0x963   :  { %v1781_v7 = vpop.f32.mrb[43].mxu1  ;;  %v2014_v10 = vmul.f32 -1.442695, %v1777_v61 }
 0x964   :  { %v2015_v12 = vmul.f32 -1.442695, %v1779_v42 }
 0x965   :  { %1034 = vadd.xlane.f32.xlu0 %v1033_v3  ;;  %2439 = vpow2.f32 %v2014_v10 }
 0x966   :  { %2441 = vpow2.f32 %v2015_v12 }
 0x969   :  { %1376 = vadd.xlane.f32.xlu0 %v1375_v46 }
 0x96f   :  { %v2440_v40 = vpop.eup %2439 }
 0x970   :  { %v1827_v51 = vadd.f32 1.0, %v2440_v40  ;;  %v2442_v22 = vpop.eup %2441 }
 0x971   :  { %v1833_v37 = vadd.f32 1.0, %v2442_v22 }
 0x972   :  { %2443 = vrcp.f32 %v1827_v51 }
 0x973   :  { %2445 = vrcp.f32 %v1833_v37 }
 0x97c   :  { %v2444_v15 = vpop.eup %2443 }
 0x97d   :  { %v2446_v17 = vpop.eup %2445 }
 0x97e   :  { %v1839_v24 = vsub.f32 1.0, %v2446_v17  ;;  %v1841_v4 = vmul.f32 %v2446_v17, %v3801_v9 }
 0x999   :  { %v1817_v0 = vpop.f32.mrb[44].mxu0 }
 0x99a   :  { %v1819_v23 = vpop.f32.mrb[45].mxu0  ;;  %v1818_v18 = vadd.f32 %v1817_v0, %v3050_v27 }
 0x99b   :  { %v1820_v14 = vadd.f32 %v1819_v23, %v3048_v5  ;;  %v1821_v16 = vpop.f32.mrb[46].mxu0 }
 0x99c   :  { %v1822_v20 = vpop.f32.mrb[47].mxu0 }
 0x99d   :  { %v1836_v11 = vmul.f32 %v2444_v15, %v1820_v14 }
 0x99f   :  { %v1837_v21 = vadd.f32 %v1836_v11, %v1818_v18 }
 0x9a1   :  { %2447 = vtanh.f32 %v1837_v21 }
 0x9ab   :  { %v2448_v28 = vpop.eup %2447 }
 0x9ac   :  { %v1840_v29 = vmul.f32 %v2448_v28, %v1839_v24 }
 0x9ae   :  { %v1842_v38 = vadd.f32 %v1841_v4, %v1840_v29 }
 0x9b0   :  { %v1843_v49 = vpack.c.bf16 %v1842_v38, %v1842_v38  ;;  %1897 = vst [vmem:[#allocation9] sm:$0x1] %v1842_v38 }
 0x9b2   :  { %2245 = vmatmul.mubr.bf16.vlgmr.msra.gmra.mrb[44].mxu1 %v1843_v49 }
 0x9ea   :  { %v1713_v41 = vpop.xlane.xlu0 %1712 }
 0x9eb   :  { %v1714_v5 = vsub.f32 %v1706_v45, %v1713_v41  ;;  %v1202_v45 = vpop.xlane.xlu1 %1201 }
 0x9ec   :  { %v1203_v57 = vsub.f32 %v4242_v6, %v1202_v45 }
 0x9ed   :  { %v1715_v47 = vmul.f32 1.442695, %v1714_v5 }
 0x9ee   :  { %v695_v53 = vpop.xlane.xlu0 %694 }
 0x9ef   :  { %2449 = vpow2.f32 %v1715_v47  ;;  %v1544_v13 = vpop.xlane.xlu1 %1543 }
 0x9f0   :  { %2451 = vlog2.f32 %v695_v53  ;;  %v1545_v39 = vsub.f32 %v3792_v34, %v1544_v13 }
 0x9f2   :  { %v1035_v27 = vpop.xlane.xlu0 %1034 }
 0x9f3   :  { %2453 = vlog2.f32 %v1035_v27 }
 0x9f6   :  { %v1377_v56 = vpop.xlane.xlu0 %1376 }
 0x9f7   :  { %2455 = vlog2.f32 %v1377_v56 }
 0x9f8   :  { %2457 = vpow2.f32 %v862_v2 }
 0x9f9   :  { %v2450_v1 = vpop.eup %2449 }
 0x9fa   :  { %v2452_v8 = vpop.eup %2451  ;;  %v1717_v30 = vsel %vm686_vm1, %v2450_v1, 0.0 }
 0x9fb   :  { %v697_v52 = vmul.f32 0.6931472, %v2452_v8  ;;  %1718 = vadd.xlane.f32.xlu0 %v1717_v30 }
 0x9fd   :  { %v2454_v9 = vpop.eup %2453  ;;  %v698_v55 = vsub.f32 %v3843_v58, %v697_v52  ;;  %v1204_v58 = vmul.f32 1.442695, %v1203_v57 }
 0x9fe   :  { %v1037_v63 = vmul.f32 0.6931472, %v2454_v9 }
 0x9ff   :  { %699 = vst [vmem:[#allocation8] sm:$0x1] %v698_v55  ;;  %2459 = vpow2.f32 %v1204_v58 }
 0xa00   :  { %v1038_v50 = vsub.f32 %v3849_v54, %v1037_v63  ;;  %v1546_v54 = vmul.f32 1.442695, %v1545_v39 }
 0xa01   :  { %v2456_v25 = vpop.eup %2455 }
 0xa02   :  { %1039 = vst [vmem:[#allocation8 + $0x2] sm:$0x1] %v1038_v50  ;;  %v1379_v48 = vmul.f32 0.6931472, %v2456_v25  ;;  %2461 = vpow2.f32 %v1546_v54  ;;  %v2458_v7 = vpop.eup %2457 }
 0xa03   :  { %v864_v3 = vsel %vm686_vm1, %v2458_v7, 0.0 }
 0xa04   :  { %v1380_v32 = vsub.f32 %v3853_v33, %v1379_v48 }
 0xa06   :  { %1381 = vst [vmem:[#allocation8 + $0x4] sm:$0x1] %v1380_v32 }
 0xa09   :  { %v2460_v59 = vpop.eup %2459 }
 0xa0a   :  { %v1206_v34 = vsel %vm686_vm1, %v2460_v59, 0.0 }
 0xa0c   :  { %v2462_v46 = vpop.eup %2461 }
 0xa0d   :  { %v1548_v10 = vsel %vm686_vm1, %v2462_v46, 0.0 }
 0xa85   :  { %v1878_v19 = vpop.f32.mrb[44].mxu1 }
 0xa86   :  { %v1879_v44 = vadd.f32 %v4235_v43, %v1878_v19  ;;  %v2246_v31 = vpop.f32.mrb[45].mxu1 }
 0xa87   :  { %v1881_v33 = vpop.f32.mrb[46].mxu1 }
 0xa88   :  { %v2247_v62 = vpop.f32.mrb[47].mxu1  ;;  %v1719_v26 = vpop.xlane.xlu0 %1718  ;;  %v1884_v60 = vsel %vm686_vm1, %v1879_v44, -inf }
 0xa89   :  { %2463 = vlog2.f32 %v1719_v26  ;;  %1885 = vmax.xlane.f32.xlu1 %v1884_v60 }
 0xa8d   :  { %865 = vadd.xlane.f32.xlu1 %v864_v3 }
 0xa91   :  { %1207 = vadd.xlane.f32.xlu1 %v1206_v34 }
 0xa93   :  { %v2464_v61 = vpop.eup %2463 }
 0xa94   :  { %v1721_v43 = vmul.f32 0.6931472, %v2464_v61 }
 0xa95   :  { %1549 = vadd.xlane.f32.xlu1 %v1548_v10 }
 0xa96   :  { %v1722_v42 = vsub.f32 %v1714_v5, %v1721_v43 }
 0xa98   :  { %1723 = vst [vmem:[#allocation8 + $0x6] sm:$0x1] %v1722_v42 }
 0xb16   :  { %v1886_v40 = vpop.xlane.xlu1 %1885 }
 0xb17   :  { %v1887_v12 = vsub.f32 %v1879_v44, %v1886_v40 }
 0xb19   :  { %v1888_v51 = vmul.f32 1.442695, %v1887_v12 }
 0xb1a   :  { %v866_v22 = vpop.xlane.xlu1 %865 }
 0xb1b   :  { %2465 = vpow2.f32 %v1888_v51 }
 0xb1c   :  { %2467 = vlog2.f32 %v866_v22 }
 0xb1e   :  { %v1208_v0 = vpop.xlane.xlu1 %1207 }
 0xb1f   :  { %2469 = vlog2.f32 %v1208_v0 }
 0xb22   :  { %v1550_v15 = vpop.xlane.xlu1 %1549 }
 0xb23   :  { %2471 = vlog2.f32 %v1550_v15 }
 0xb25   :  { %v2466_v23 = vpop.eup %2465 }
 0xb26   :  { %v2468_v37 = vpop.eup %2467  ;;  %v1890_v14 = vsel %vm686_vm1, %v2466_v23, 0.0 }
 0xb27   :  { %v868_v16 = vmul.f32 0.6931472, %v2468_v37  ;;  %1891 = vadd.xlane.f32.xlu1 %v1890_v14 }
 0xb29   :  { %v2470_v20 = vpop.eup %2469  ;;  %v869_v18 = vsub.f32 %v861_v35, %v868_v16 }
 0xb2a   :  { %v1210_v11 = vmul.f32 0.6931472, %v2470_v20 }
 0xb2b   :  { %870 = vst [vmem:[#allocation8 + $0x1] sm:$0x1] %v869_v18 }
 0xb2c   :  { %v1211_v21 = vsub.f32 %v1203_v57, %v1210_v11 }
 0xb2d   :  { %v2472_v17 = vpop.eup %2471 }
 0xb2e   :  { %1212 = vst [vmem:[#allocation8 + $0x3] sm:$0x1] %v1211_v21  ;;  %v1552_v24 = vmul.f32 0.6931472, %v2472_v17 }
 0xb30   :  { %v1553_v28 = vsub.f32 %v1545_v39, %v1552_v24 }
 0xb32   :  { %1554 = vst [vmem:[#allocation8 + $0x5] sm:$0x1] %v1553_v28 }
 0xb33   :  { %2644 = shalt.err (!%p2641_p0)
}
 0xb34   :  { %s2645_s2 = scalar_lea.hbm %s3911_s7, 16 }
 0xb35   :  { %p2646_p1 = scmp.ne.s32.totalorder %s3911_s7, %s2645_s2  ;;  %p2649_p2 = scmp.lt.u32.totalorder %s2645_s2, %s3911_s7 }
 0xb37   :  { %p2651_p3 = pnand %p2649_p2, %p2646_p1 }
 0xb39   :  { %2654 = shalt.err (!%p2651_p3)
}
 0xb3a   :  { %1917 = dma.vmem_to_hbm [thread:$0]  %s1915_s21, 16, %s3911_s7, [#allocation10]  }
 0xb3b   :  { %s2695_s9 = smov [#allocation8]  }
 0xb3c   :  { %s1904_s10 = sshll.u32 %s2695_s9, 4  ;;  %s1905_s10 = int_to_ptr.vmem [resolvable:$true] %s1904_s10 }
 0xb3d   :  { %s2655_s11 = scalar_lea.vmem %s1905_s10, 128  ;;  %p2660_p5 = scmp.lt.s32.totalorder %s1905_s10, %s1905_s10 }
 0xb3e   :  { %p2656_p4 = scmp.ne.s32.totalorder %s1905_s10, %s2655_s11  ;;  %p2661_p6 = scmp.lt.s32.totalorder %s2655_s11, %s2655_s11 }
 0xb40   :  { %p2662_p7 = por %p2661_p6, %p2660_p5 }
 0xb42   :  { %p2663_p8 = pnand %p2662_p7, %p2656_p4 }
 0xbb4   :  { %v1892_v29 = vpop.xlane.xlu1 %1891 }
 0xbb5   :  { %2473 = vlog2.f32 %v1892_v29 }
 0xbbf   :  { %v2474_v4 = vpop.eup %2473 }
 0xbc0   :  { %v1894_v38 = vmul.f32 0.6931472, %v2474_v4 }
 0xbc2   :  { %v1895_v49 = vsub.f32 %v1887_v12, %v1894_v38 }
 0xbc4   :  { %1896 = vst [vmem:[#allocation8 + $0x7] sm:$0x1] %v1895_v49 }
 0xbc5   :  { %2666 = shalt.err (!%p2663_p8)
}
 0xbc6   :  { %s2667_s7 = scalar_lea.hbm %s3910_s6, 128 }
 0xbc7   :  { %p2668_p9 = scmp.ne.s32.totalorder %s3910_s6, %s2667_s7  ;;  %p2671_p10 = scmp.lt.u32.totalorder %s2667_s7, %s3910_s6 }
 0xbc9   :  { %p2673_p11 = pnand %p2671_p10, %p2668_p9 }
 0xbcb   :  { %2676 = shalt.err (!%p2673_p11)
}
 0xbcc   :  { %1907 = dma.vmem_to_hbm [thread:$0]  %s1905_s10, 128, %s3910_s6, [#allocation4]  }
 0xbcd   :  { %2681 = dma.done.wait [#allocation4], 128  }
 0xbce   :  { %2682 = vsyncadd [#allocation4], 4294967168 }
 0xbcf   :  { %2683 = dma.done.wait [#allocation10], 16  }
 0xbd0   :  { %2684 = vsyncadd [#allocation10], 4294967280 }
 0xbd1   :  { %1924 = vsyncpa [#allocation3], 1 }
 0xbd2   :  { %1925 = vsyncpa [#allocation6], 1 }
 0xbd3   :  { %1926 = vsyncpa [#allocation4], 1 }
 0xbd4   :  { %1927 = vsyncpa [#allocation10], 1 }

</bundles_post_ra>
